<compile_context>
chip_gen: v7x
topology: tpu7x:2x2x1
jax: 0.10.0
libtpu: 0.0.40
codegen_flags: <defaults>
</compile_context>

<pallas_src>
import jax
import jax.numpy as jnp
from jax.experimental import pallas as pl
from jax.experimental.pallas import tpu as pltpu

# ----------------------------- model config (cfg.MODEL.*) ----------------------
BATCH = 2
NUM_NODES = 16
RNN_UNITS = 32
OUTPUT_DIM = 4
MAX_DIFFUSION_STEP = 2
NUM_RNN_LAYERS = 2
FILTER_TYPE = "dual_random_walk"          # -> 2 supports
NUM_SUPPORTS = 2
NUM_MATRICES = NUM_SUPPORTS * MAX_DIFFUSION_STEP + 1   # Chebyshev terms (incl. identity)
BN = BATCH * NUM_NODES

F_PAD = 128                                 # lane-padded joint [h | x] feature slot
KF = NUM_MATRICES * F_PAD                   # contraction dim of the collapsed matmul
OUT_PAD = 128                               # lane-dense projection output width


# ----------------------------- fused Pallas kernel ------------------------------
def _decoder_step_kernel(xslot_ref, h_ref, s_ref,
                         wr_ref, wu_ref, wc_ref,
                         br_ref, bu_ref, bc_ref,
                         wp_ref, bp_ref,
                         o_ref, hout_ref):
    """One full decoder step: NUM_RNN_LAYERS stacked DCGRU cells + linear projection.

    xslot : (BN, F_PAD)     layer-0 input placed at columns [U : U+OUTPUT_DIM]
    h     : (L, BN, U)      incoming hidden state (HBM-aliased with hout)
    s     : (NSUP, BN, BN)  block-diagonal random-walk supports
    wr/wu/wc : (L, KF, U)   prepacked gconv weights (reset gate, update gate, candidate)
    br/bu/bc : (L, 1, U)    biases
    wp : (U, OUT_PAD), bp : (1, OUT_PAD)   lane-padded projection
    """
    supports = s_ref[...]                     # loaded once, reused by all 4 gconvs
    h_in = h_ref[...]                         # load all layers before any store
    zeros_tail = jnp.zeros((BN, F_PAD - RNN_UNITS), jnp.float32)

    def place_state(state):                   # (BN, U) -> (BN, F_PAD), state at cols [0:U]
        return jnp.concatenate([state, zeros_tail], axis=1)

    def cheb_concat(z0):
        # Chebyshev diffusion terms (identity first), concatenated along lanes.
        # Each term is a full (BN, 128) block -> the concat is 128-lane aligned.
        xs = [z0]
        for si in range(NUM_SUPPORTS):
            s = supports[si]
            x1 = jnp.dot(s, z0, preferred_element_type=jnp.float32)
            xs.append(x1)
            xk_2, xk_1 = z0, x1
            for _ in range(2, MAX_DIFFUSION_STEP + 1):
                x2 = 2.0 * jnp.dot(s, xk_1, preferred_element_type=jnp.float32) - xk_2
                xs.append(x2)
                xk_2, xk_1 = xk_1, x2
        return jnp.concatenate(xs, axis=1)    # (BN, KF)

    inp_slot = xslot_ref[...]
    h_last = None
    for layer in range(NUM_RNN_LAYERS):
        h = h_in[layer]
        wr, wu, wc = wr_ref[layer], wu_ref[layer], wc_ref[layer]
        br, bu, bc = br_ref[layer], bu_ref[layer], bc_ref[layer]

        # gate gconv: joint diffusion of [h | x], one wide matmul per gate half
        xg = cheb_concat(place_state(h) + inp_slot)
        r = jax.nn.sigmoid(jnp.dot(xg, wr, preferred_element_type=jnp.float32) + br)
        u = jax.nn.sigmoid(jnp.dot(xg, wu, preferred_element_type=jnp.float32) + bu)

        # candidate gconv: joint diffusion of [r*h | x]
        xc = cheb_concat(place_state(r * h) + inp_slot)
        c = jnp.tanh(jnp.dot(xc, wc, preferred_element_type=jnp.float32) + bc)

        h_new = u * h + (1.0 - u) * c
        hout_ref[layer] = h_new
        h_last = h_new
        if layer + 1 < NUM_RNN_LAYERS:
            # next layer's input occupies columns [U : 2U] of the joint slot
            inp_slot = jnp.concatenate(
                [jnp.zeros((BN, RNN_UNITS), jnp.float32), h_new,
                 jnp.zeros((BN, F_PAD - 2 * RNN_UNITS), jnp.float32)], axis=1)

    # lane-dense (128-wide) projection output; sliced to OUTPUT_DIM outside the kernel
    o_ref[...] = (jnp.dot(h_last, wp_ref[...], preferred_element_type=jnp.float32)
                  + bp_ref[...])


def _fs(shape):
    nd = len(shape)
    return pl.BlockSpec(shape, lambda i, _nd=nd: (0,) * _nd)


# ----------------------------- decoder forward (glue) --------------------------
def decoder_forward(inputs, hidden_state, params):
    """inputs: (B, N*OUTPUT_DIM); hidden_state: (L, B, N*U).
    Returns (output (B, N*OUTPUT_DIM), new_hidden (L, B, N*U))."""
    x = inputs.reshape(BN, OUTPUT_DIM)
    xslot = jnp.zeros((BN, F_PAD), jnp.float32)
    xslot = xslot.at[:, RNN_UNITS:RNN_UNITS + OUTPUT_DIM].set(x)
    h = hidden_state.reshape(NUM_RNN_LAYERS, BN, RNN_UNITS)

    args = (xslot, h, params["supports_bd"],
            params["wr"], params["wu"], params["wc"],
            params["br"], params["bu"], params["bc"],
            params["wp_pad"], params["bp_pad"])
    out_shapes = (jax.ShapeDtypeStruct((BN, OUT_PAD), jnp.float32),
                  jax.ShapeDtypeStruct((NUM_RNN_LAYERS, BN, RNN_UNITS), jnp.float32))

    o_pad, h_new = pl.pallas_call(
        _decoder_step_kernel,
        out_shape=out_shapes,
        grid=(1,),
        in_specs=[_fs(a.shape) for a in args],
        out_specs=tuple(_fs(s.shape) for s in out_shapes),
        input_output_aliases={1: 1},          # hidden-state in -> hidden-state out
        compiler_params=pltpu.CompilerParams(dimension_semantics=("arbitrary",)),
    )(*args)

    out = o_pad[:, :OUTPUT_DIM].reshape(BATCH, NUM_NODES * OUTPUT_DIM)
    return out, h_new.reshape(NUM_RNN_LAYERS, BATCH, NUM_NODES * RNN_UNITS)


# ----------------------------- deterministic parameter init --------------------
def init_params(key):
    keys = jax.random.split(key, 16)

    # synthetic adjacency + dual random-walk supports (filter_type="dual_random_walk")
    adj = jax.random.uniform(keys[0], (NUM_NODES, NUM_NODES), jnp.float32)
    adj = 0.5 * (adj + adj.T) + jnp.eye(NUM_NODES, dtype=jnp.float32)

    def random_walk(a):
        return a / jnp.sum(a, axis=1, keepdims=True)

    supports = [random_walk(adj).T, random_walk(adj.T).T]
    # TODO(synk): the kron(I_B, S) block-diagonal form scales as (B*N)^2 in VMEM and
    # multiplies mostly zeros once B*N grows (hits v7x's 64 MiB VMEM first); switch to
    # a per-batch (N,N) diffusion before scaling up.  At BN=32 it is one MXU tile.
    supports_bd = jnp.stack(
        [jnp.kron(jnp.eye(BATCH, dtype=jnp.float32), s) for s in supports], axis=0)

    layers = []
    wr_l, wu_l, wc_l, br_l, bu_l, bc_l = [], [], [], [], [], []
    k_idx = 1
    for layer in range(NUM_RNN_LAYERS):
        din = OUTPUT_DIM if layer == 0 else RNN_UNITS
        scale = 0.1
        wgx = scale * jax.random.normal(keys[k_idx], (NUM_MATRICES, din, 2 * RNN_UNITS), jnp.float32); k_idx += 1
        wgh = scale * jax.random.normal(keys[k_idx], (NUM_MATRICES, RNN_UNITS, 2 * RNN_UNITS), jnp.float32); k_idx += 1
        bg = jnp.full((1, 2 * RNN_UNITS), 1.0, jnp.float32)   # bias_start=1.0 for gates
        wcx = scale * jax.random.normal(keys[k_idx], (NUM_MATRICES, din, RNN_UNITS), jnp.float32); k_idx += 1
        wch = scale * jax.random.normal(keys[k_idx], (NUM_MATRICES, RNN_UNITS, RNN_UNITS), jnp.float32); k_idx += 1
        bc = jnp.zeros((1, RNN_UNITS), jnp.float32)
        layers.append(dict(wgx=wgx, wgh=wgh, bg=bg, wcx=wcx, wch=wch, bc=bc))

        # ---- host-side prepack: per-Chebyshev-order slots of width F_PAD -------
        # rows [k*F_PAD + 0 : +U]       -> state weights  W_h[k]
        # rows [k*F_PAD + U : +U+din]   -> input weights  W_x[k]
        # remaining rows                 -> zero (matches zero-padded lanes)
        def pack(wh, wx, _din=din):
            o = wh.shape[-1]
            w = jnp.zeros((NUM_MATRICES, F_PAD, o), jnp.float32)
            w = w.at[:, :RNN_UNITS, :].set(wh)
            w = w.at[:, RNN_UNITS:RNN_UNITS + _din, :].set(wx)
            return w.reshape(NUM_MATRICES * F_PAD, o)

        wr_l.append(pack(wgh[..., :RNN_UNITS], wgx[..., :RNN_UNITS]))
        wu_l.append(pack(wgh[..., RNN_UNITS:], wgx[..., RNN_UNITS:]))
        wc_l.append(pack(wch, wcx))
        br_l.append(bg[:, :RNN_UNITS])
        bu_l.append(bg[:, RNN_UNITS:])
        bc_l.append(bc)

    w_proj = 0.1 * jax.random.normal(keys[k_idx], (RNN_UNITS, OUTPUT_DIM), jnp.float32); k_idx += 1
    b_proj = jnp.zeros((1, OUTPUT_DIM), jnp.float32)

    wp_pad = jnp.zeros((RNN_UNITS, OUT_PAD), jnp.float32).at[:, :OUTPUT_DIM].set(w_proj)
    bp_pad = jnp.zeros((1, OUT_PAD), jnp.float32).at[:, :OUTPUT_DIM].set(b_proj)

    return dict(
        supports=supports, supports_bd=supports_bd, layers=layers,
        w_proj=w_proj, b_proj=b_proj,
        wr=jnp.stack(wr_l), wu=jnp.stack(wu_l), wc=jnp.stack(wc_l),
        br=jnp.stack(br_l), bu=jnp.stack(bu_l), bc=jnp.stack(bc_l),
        wp_pad=wp_pad, bp_pad=bp_pad,
    )


# ----------------------------- pure-JAX reference (torch semantics) ------------
_HI = jax.lax.Precision.HIGHEST


def _flat_weight(wx, wh):
    # Recreate torch layout: rows ordered feature-major, Chebyshev-order-minor.
    wcat = jnp.concatenate([wx, wh], axis=1)               # (K, F, O)
    return jnp.transpose(wcat, (1, 0, 2)).reshape(-1, wcat.shape[-1])


def _gconv_ref(inp_flat, state_flat, supports, w_flat, bias, out_size):
    B, N = BATCH, NUM_NODES
    inp = inp_flat.reshape(B, N, -1)
    st = state_flat.reshape(B, N, -1)
    feat = jnp.concatenate([inp, st], axis=2)
    F = feat.shape[2]
    x0 = jnp.transpose(feat, (1, 2, 0)).reshape(N, F * B)
    xs = [x0]
    for S in supports:
        a0, a1 = x0, jnp.matmul(S, x0, precision=_HI)
        xs.append(a1)
        for _ in range(2, MAX_DIFFUSION_STEP + 1):
            a2 = 2.0 * jnp.matmul(S, a1, precision=_HI) - a0
            xs.append(a2)
            a1, a0 = a2, a1
    x = jnp.stack(xs, 0).reshape(NUM_MATRICES, N, F, B)
    x = jnp.transpose(x, (3, 1, 2, 0)).reshape(B * N, F * NUM_MATRICES)
    out = jnp.matmul(x, w_flat, precision=_HI) + bias.reshape(-1)
    return out.reshape(B, N * out_size)


def _dcgru_ref(inputs, hx, supports, p):
    U = RNN_UNITS
    wg = _flat_weight(p["wgx"], p["wgh"])
    value = jax.nn.sigmoid(_gconv_ref(inputs, hx, supports, wg, p["bg"], 2 * U))
    value = value.reshape(BATCH, NUM_NODES, 2 * U)
    r = value[..., :U].reshape(BATCH, NUM_NODES * U)
    u = value[..., U:].reshape(BATCH, NUM_NODES * U)
    wc = _flat_weight(p["wcx"], p["wch"])
    c = jnp.tanh(_gconv_ref(inputs, r * hx, supports, wc, p["bc"], U))
    return u * hx + (1.0 - u) * c


def decoder_ref(inputs, hidden_state, params):
    output = inputs
    hs = []
    for layer in range(NUM_RNN_LAYERS):
        h_new = _dcgru_ref(output, hidden_state[layer], params["supports"],
                           params["layers"][layer])
        hs.append(h_new)
        output = h_new
    proj = jnp.matmul(output.reshape(-1, RNN_UNITS), params["w_proj"],
                      precision=_HI) + params["b_proj"].reshape(-1)
    return proj.reshape(-1, NUM_NODES * OUTPUT_DIM), jnp.stack(hs)


# ----------------------------- main ---------------------------------------------
if __name__ == "__main__":
    key = jax.random.PRNGKey(0)
    pkey, ikey, hkey = jax.random.split(key, 3)
    params = init_params(pkey)

    inputs = jax.random.normal(ikey, (BATCH, NUM_NODES * OUTPUT_DIM), jnp.float32)
    hidden = 0.1 * jax.random.normal(
        hkey, (NUM_RNN_LAYERS, BATCH, NUM_NODES * RNN_UNITS), jnp.float32)

    out, new_h = jax.jit(decoder_forward)(inputs, hidden, params)
    jax.block_until_ready((out, new_h))

    assert out.shape == (BATCH, NUM_NODES * OUTPUT_DIM)
    assert new_h.shape == (NUM_RNN_LAYERS, BATCH, NUM_NODES * RNN_UNITS)

    ref_out, ref_h = decoder_ref(inputs, hidden, params)
    assert jnp.allclose(out, ref_out, atol=1e-3, rtol=1e-3)
    assert jnp.allclose(new_h, ref_h, atol=1e-3, rtol=1e-3)

    print("KERNEL_OK")
</pallas_src>

<mosaic_0001>
module attributes {stable_mosaic.version = 11 : i64} {
  func.func @_decoder_step_kernel(%arg0: i32, %arg1: memref<32x128xf32, #tpu.memory_space<vmem>>, %arg2: memref<2x32x32xf32, #tpu.memory_space<vmem>>, %arg3: memref<2x32x32xf32, #tpu.memory_space<vmem>>, %arg4: memref<2x640x32xf32, #tpu.memory_space<vmem>>, %arg5: memref<2x640x32xf32, #tpu.memory_space<vmem>>, %arg6: memref<2x640x32xf32, #tpu.memory_space<vmem>>, %arg7: memref<2x1x32xf32, #tpu.memory_space<vmem>>, %arg8: memref<2x1x32xf32, #tpu.memory_space<vmem>>, %arg9: memref<2x1x32xf32, #tpu.memory_space<vmem>>, %arg10: memref<32x128xf32, #tpu.memory_space<vmem>>, %arg11: memref<1x128xf32, #tpu.memory_space<vmem>>, %arg12: memref<32x128xf32, #tpu.memory_space<vmem>>, %arg13: memref<2x32x32xf32, #tpu.memory_space<vmem>>) attributes {dimension_semantics = [#tpu.dimension_semantics<arbitrary>], iteration_bounds = array<i64: 1>, scalar_prefetch = 0 : i64, scratch_operands = 0 : i64, tpu.core_type = #tpu.core_type<tc>, window_params = [{pipeline_mode = #tpu.pipeline_mode<synchronous>, transform_indices = @transform_0, window_bounds = array<i64: 32, 128>}, {pipeline_mode = #tpu.pipeline_mode<synchronous>, transform_indices = @transform_1, window_bounds = array<i64: 2, 32, 32>}, {pipeline_mode = #tpu.pipeline_mode<synchronous>, transform_indices = @transform_2, window_bounds = array<i64: 2, 32, 32>}, {pipeline_mode = #tpu.pipeline_mode<synchronous>, transform_indices = @transform_3, window_bounds = array<i64: 2, 640, 32>}, {pipeline_mode = #tpu.pipeline_mode<synchronous>, transform_indices = @transform_4, window_bounds = array<i64: 2, 640, 32>}, {pipeline_mode = #tpu.pipeline_mode<synchronous>, transform_indices = @transform_5, window_bounds = array<i64: 2, 640, 32>}, {pipeline_mode = #tpu.pipeline_mode<synchronous>, transform_indices = @transform_6, window_bounds = array<i64: 2, 1, 32>}, {pipeline_mode = #tpu.pipeline_mode<synchronous>, transform_indices = @transform_7, window_bounds = array<i64: 2, 1, 32>}, {pipeline_mode = #tpu.pipeline_mode<synchronous>, transform_indices = @transform_8, window_bounds = array<i64: 2, 1, 32>}, {pipeline_mode = #tpu.pipeline_mode<synchronous>, transform_indices = @transform_9, window_bounds = array<i64: 32, 128>}, {pipeline_mode = #tpu.pipeline_mode<synchronous>, transform_indices = @transform_10, window_bounds = array<i64: 1, 128>}, {pipeline_mode = #tpu.pipeline_mode<synchronous>, transform_indices = @transform_11, window_bounds = array<i64: 32, 128>}, {pipeline_mode = #tpu.pipeline_mode<synchronous>, transform_indices = @transform_12, window_bounds = array<i64: 2, 32, 32>}]} {
    %c0 = arith.constant 0 : index
    %c0_0 = arith.constant 0 : index
    %c0_1 = arith.constant 0 : index
    %0 = vector.load %arg3[%c0, %c0_0, %c0_1] : memref<2x32x32xf32, #tpu.memory_space<vmem>>, vector<2x32x32xf32>
    %c0_2 = arith.constant 0 : index
    %c0_3 = arith.constant 0 : index
    %c0_4 = arith.constant 0 : index
    %1 = vector.load %arg2[%c0_2, %c0_3, %c0_4] : memref<2x32x32xf32, #tpu.memory_space<vmem>>, vector<2x32x32xf32>
    %cst = arith.constant 0.000000e+00 : f32
    %2 = vector.broadcast %cst : f32 to vector<32x96xf32>
    %c0_5 = arith.constant 0 : index
    %c0_6 = arith.constant 0 : index
    %3 = vector.load %arg1[%c0_5, %c0_6] : memref<32x128xf32, #tpu.memory_space<vmem>>, vector<32x128xf32>
    %4 = vector.extract_strided_slice %1 {offsets = [0, 0, 0], sizes = [1, 32, 32], strides = [1, 1, 1]} : vector<2x32x32xf32> to vector<1x32x32xf32>
    %5 = vector.shape_cast %4 : vector<1x32x32xf32> to vector<32x32xf32>
    %c0_7 = arith.constant 0 : index
    %c0_8 = arith.constant 0 : index
    %c0_9 = arith.constant 0 : index
    %6 = vector.load %arg4[%c0_7, %c0_8, %c0_9] : memref<2x640x32xf32, #tpu.memory_space<vmem>>, vector<1x640x32xf32>
    %7 = vector.shape_cast %6 : vector<1x640x32xf32> to vector<640x32xf32>
    %c0_10 = arith.constant 0 : index
    %c0_11 = arith.constant 0 : index
    %c0_12 = arith.constant 0 : index
    %8 = vector.load %arg5[%c0_10, %c0_11, %c0_12] : memref<2x640x32xf32, #tpu.memory_space<vmem>>, vector<1x640x32xf32>
    %9 = vector.shape_cast %8 : vector<1x640x32xf32> to vector<640x32xf32>
    %c0_13 = arith.constant 0 : index
    %c0_14 = arith.constant 0 : index
    %c0_15 = arith.constant 0 : index
    %10 = vector.load %arg6[%c0_13, %c0_14, %c0_15] : memref<2x640x32xf32, #tpu.memory_space<vmem>>, vector<1x640x32xf32>
    %11 = vector.shape_cast %10 : vector<1x640x32xf32> to vector<640x32xf32>
    %c0_16 = arith.constant 0 : index
    %c0_17 = arith.constant 0 : index
    %c0_18 = arith.constant 0 : index
    %12 = vector.load %arg7[%c0_16, %c0_17, %c0_18] : memref<2x1x32xf32, #tpu.memory_space<vmem>>, vector<1x1x32xf32>
    %13 = vector.shape_cast %12 : vector<1x1x32xf32> to vector<1x32xf32>
    %c0_19 = arith.constant 0 : index
    %c0_20 = arith.constant 0 : index
    %c0_21 = arith.constant 0 : index
    %14 = vector.load %arg8[%c0_19, %c0_20, %c0_21] : memref<2x1x32xf32, #tpu.memory_space<vmem>>, vector<1x1x32xf32>
    %15 = vector.shape_cast %14 : vector<1x1x32xf32> to vector<1x32xf32>
    %c0_22 = arith.constant 0 : index
    %c0_23 = arith.constant 0 : index
    %c0_24 = arith.constant 0 : index
    %16 = vector.load %arg9[%c0_22, %c0_23, %c0_24] : memref<2x1x32xf32, #tpu.memory_space<vmem>>, vector<1x1x32xf32>
    %17 = vector.shape_cast %16 : vector<1x1x32xf32> to vector<1x32xf32>
    %18 = tpu.concatenate %5, %2 in 1 : vector<32x32xf32>, vector<32x96xf32> -> vector<32x128xf32>
    %19 = arith.addf %18, %3 : vector<32x128xf32>
    %20 = vector.extract_strided_slice %0 {offsets = [0, 0, 0], sizes = [1, 32, 32], strides = [1, 1, 1]} : vector<2x32x32xf32> to vector<1x32x32xf32>
    %21 = vector.shape_cast %20 : vector<1x32x32xf32> to vector<32x32xf32>
    %cst_25 = arith.constant dense<0.000000e+00> : vector<32x128xf32>
    %22 = tpu.matmul %21, %19, %cst_25 {dimension_numbers = #tpu.dot_dimension_numbers<[1], [0], [0], [1], [0, 0, 1, 1], [], []>} : vector<32x32xf32>, vector<32x128xf32>, vector<32x128xf32> -> vector<32x128xf32>
    %cst_26 = arith.constant dense<0.000000e+00> : vector<32x128xf32>
    %23 = tpu.matmul %21, %22, %cst_26 {dimension_numbers = #tpu.dot_dimension_numbers<[1], [0], [0], [1], [0, 0, 1, 1], [], []>} : vector<32x32xf32>, vector<32x128xf32>, vector<32x128xf32> -> vector<32x128xf32>
    %cst_27 = arith.constant 2.000000e+00 : f32
    %24 = vector.broadcast %cst_27 : f32 to vector<32x128xf32>
    %25 = arith.mulf %24, %23 : vector<32x128xf32>
    %26 = arith.subf %25, %19 : vector<32x128xf32>
    %27 = vector.extract_strided_slice %0 {offsets = [1, 0, 0], sizes = [1, 32, 32], strides = [1, 1, 1]} : vector<2x32x32xf32> to vector<1x32x32xf32>
    %28 = vector.shape_cast %27 : vector<1x32x32xf32> to vector<32x32xf32>
    %cst_28 = arith.constant dense<0.000000e+00> : vector<32x128xf32>
    %29 = tpu.matmul %28, %19, %cst_28 {dimension_numbers = #tpu.dot_dimension_numbers<[1], [0], [0], [1], [0, 0, 1, 1], [], []>} : vector<32x32xf32>, vector<32x128xf32>, vector<32x128xf32> -> vector<32x128xf32>
    %cst_29 = arith.constant dense<0.000000e+00> : vector<32x128xf32>
    %30 = tpu.matmul %28, %29, %cst_29 {dimension_numbers = #tpu.dot_dimension_numbers<[1], [0], [0], [1], [0, 0, 1, 1], [], []>} : vector<32x32xf32>, vector<32x128xf32>, vector<32x128xf32> -> vector<32x128xf32>
    %cst_30 = arith.constant 2.000000e+00 : f32
    %31 = vector.broadcast %cst_30 : f32 to vector<32x128xf32>
    %32 = arith.mulf %31, %30 : vector<32x128xf32>
    %33 = arith.subf %32, %19 : vector<32x128xf32>
    %34 = tpu.concatenate %19, %22, %26, %29, %33 in 1 : vector<32x128xf32>, vector<32x128xf32>, vector<32x128xf32>, vector<32x128xf32>, vector<32x128xf32> -> vector<32x640xf32>
    %cst_31 = arith.constant dense<0.000000e+00> : vector<32x32xf32>
    %35 = tpu.matmul %34, %7, %cst_31 {dimension_numbers = #tpu.dot_dimension_numbers<[1], [0], [0], [1], [0, 0, 1, 1], [], []>} : vector<32x640xf32>, vector<640x32xf32>, vector<32x32xf32> -> vector<32x32xf32>
    %36 = vector.broadcast %13 : vector<1x32xf32> to vector<32x32xf32>
    %37 = arith.addf %35, %36 : vector<32x32xf32>
    %38 = arith.negf %37 : vector<32x32xf32>
    %39 = math.exp %38 : vector<32x32xf32>
    %cst_32 = arith.constant 1.000000e+00 : f32
    %40 = vector.broadcast %cst_32 : f32 to vector<32x32xf32>
    %41 = arith.addf %40, %39 : vector<32x32xf32>
    %42 = arith.divf %40, %41 : vector<32x32xf32>
    %cst_33 = arith.constant dense<0.000000e+00> : vector<32x32xf32>
    %43 = tpu.matmul %34, %9, %cst_33 {dimension_numbers = #tpu.dot_dimension_numbers<[1], [0], [0], [1], [0, 0, 1, 1], [], []>} : vector<32x640xf32>, vector<640x32xf32>, vector<32x32xf32> -> vector<32x32xf32>
    %44 = vector.broadcast %15 : vector<1x32xf32> to vector<32x32xf32>
    %45 = arith.addf %43, %44 : vector<32x32xf32>
    %46 = arith.negf %45 : vector<32x32xf32>
    %47 = math.exp %46 : vector<32x32xf32>
    %cst_34 = arith.constant 1.000000e+00 : f32
    %48 = vector.broadcast %cst_34 : f32 to vector<32x32xf32>
    %49 = arith.addf %48, %47 : vector<32x32xf32>
    %50 = arith.divf %48, %49 : vector<32x32xf32>
    %51 = arith.mulf %42, %5 : vector<32x32xf32>
    %52 = tpu.concatenate %51, %2 in 1 : vector<32x32xf32>, vector<32x96xf32> -> vector<32x128xf32>
    %53 = arith.addf %52, %3 : vector<32x128xf32>
    %54 = vector.extract_strided_slice %0 {offsets = [0, 0, 0], sizes = [1, 32, 32], strides = [1, 1, 1]} : vector<2x32x32xf32> to vector<1x32x32xf32>
    %55 = vector.shape_cast %54 : vector<1x32x32xf32> to vector<32x32xf32>
    %cst_35 = arith.constant dense<0.000000e+00> : vector<32x128xf32>
    %56 = tpu.matmul %55, %53, %cst_35 {dimension_numbers = #tpu.dot_dimension_numbers<[1], [0], [0], [1], [0, 0, 1, 1], [], []>} : vector<32x32xf32>, vector<32x128xf32>, vector<32x128xf32> -> vector<32x128xf32>
    %cst_36 = arith.constant dense<0.000000e+00> : vector<32x128xf32>
    %57 = tpu.matmul %55, %56, %cst_36 {dimension_numbers = #tpu.dot_dimension_numbers<[1], [0], [0], [1], [0, 0, 1, 1], [], []>} : vector<32x32xf32>, vector<32x128xf32>, vector<32x128xf32> -> vector<32x128xf32>
    %cst_37 = arith.constant 2.000000e+00 : f32
    %58 = vector.broadcast %cst_37 : f32 to vector<32x128xf32>
    %59 = arith.mulf %58, %57 : vector<32x128xf32>
    %60 = arith.subf %59, %53 : vector<32x128xf32>
    %61 = vector.extract_strided_slice %0 {offsets = [1, 0, 0], sizes = [1, 32, 32], strides = [1, 1, 1]} : vector<2x32x32xf32> to vector<1x32x32xf32>
    %62 = vector.shape_cast %61 : vector<1x32x32xf32> to vector<32x32xf32>
    %cst_38 = arith.constant dense<0.000000e+00> : vector<32x128xf32>
    %63 = tpu.matmul %62, %53, %cst_38 {dimension_numbers = #tpu.dot_dimension_numbers<[1], [0], [0], [1], [0, 0, 1, 1], [], []>} : vector<32x32xf32>, vector<32x128xf32>, vector<32x128xf32> -> vector<32x128xf32>
    %cst_39 = arith.constant dense<0.000000e+00> : vector<32x128xf32>
    %64 = tpu.matmul %62, %63, %cst_39 {dimension_numbers = #tpu.dot_dimension_numbers<[1], [0], [0], [1], [0, 0, 1, 1], [], []>} : vector<32x32xf32>, vector<32x128xf32>, vector<32x128xf32> -> vector<32x128xf32>
    %cst_40 = arith.constant 2.000000e+00 : f32
    %65 = vector.broadcast %cst_40 : f32 to vector<32x128xf32>
    %66 = arith.mulf %65, %64 : vector<32x128xf32>
    %67 = arith.subf %66, %53 : vector<32x128xf32>
    %68 = tpu.concatenate %53, %56, %60, %63, %67 in 1 : vector<32x128xf32>, vector<32x128xf32>, vector<32x128xf32>, vector<32x128xf32>, vector<32x128xf32> -> vector<32x640xf32>
    %cst_41 = arith.constant dense<0.000000e+00> : vector<32x32xf32>
    %69 = tpu.matmul %68, %11, %cst_41 {dimension_numbers = #tpu.dot_dimension_numbers<[1], [0], [0], [1], [0, 0, 1, 1], [], []>} : vector<32x640xf32>, vector<640x32xf32>, vector<32x32xf32> -> vector<32x32xf32>
    %70 = vector.broadcast %17 : vector<1x32xf32> to vector<32x32xf32>
    %71 = arith.addf %69, %70 : vector<32x32xf32>
    %72 = math.tanh %71 : vector<32x32xf32>
    %73 = arith.mulf %50, %5 : vector<32x32xf32>
    %cst_42 = arith.constant 1.000000e+00 : f32
    %74 = vector.broadcast %cst_42 : f32 to vector<32x32xf32>
    %75 = arith.subf %74, %50 : vector<32x32xf32>
    %76 = arith.mulf %75, %72 : vector<32x32xf32>
    %77 = arith.addf %73, %76 : vector<32x32xf32>
    %c0_43 = arith.constant 0 : index
    %c0_44 = arith.constant 0 : index
    %c0_45 = arith.constant 0 : index
    %78 = vector.load %arg13[%c0_43, %c0_44, %c0_45] : memref<2x32x32xf32, #tpu.memory_space<vmem>>, vector<1x32x32xf32>
    %79 = vector.shape_cast %78 : vector<1x32x32xf32> to vector<32x32xf32>
    %80 = vector.shape_cast %77 : vector<32x32xf32> to vector<1x32x32xf32>
    tpu.vector_store %arg13[%c0_43, %c0_44, %c0_45], %80 {strides = array<i32>} : memref<2x32x32xf32, #tpu.memory_space<vmem>>, vector<1x32x32xf32>,
    %cst_46 = arith.constant 0.000000e+00 : f32
    %81 = vector.broadcast %cst_46 : f32 to vector<32x32xf32>
    %cst_47 = arith.constant 0.000000e+00 : f32
    %82 = vector.broadcast %cst_47 : f32 to vector<32x64xf32>
    %83 = tpu.concatenate %81, %77, %82 in 1 : vector<32x32xf32>, vector<32x32xf32>, vector<32x64xf32> -> vector<32x128xf32>
    %84 = vector.extract_strided_slice %1 {offsets = [1, 0, 0], sizes = [1, 32, 32], strides = [1, 1, 1]} : vector<2x32x32xf32> to vector<1x32x32xf32>
    %85 = vector.shape_cast %84 : vector<1x32x32xf32> to vector<32x32xf32>
    %c1 = arith.constant 1 : index
    %c0_48 = arith.constant 0 : index
    %c0_49 = arith.constant 0 : index
    %86 = vector.load %arg4[%c1, %c0_48, %c0_49] : memref<2x640x32xf32, #tpu.memory_space<vmem>>, vector<1x640x32xf32>
    %87 = vector.shape_cast %86 : vector<1x640x32xf32> to vector<640x32xf32>
    %c1_50 = arith.constant 1 : index
    %c0_51 = arith.constant 0 : index
    %c0_52 = arith.constant 0 : index
    %88 = vector.load %arg5[%c1_50, %c0_51, %c0_52] : memref<2x640x32xf32, #tpu.memory_space<vmem>>, vector<1x640x32xf32>
    %89 = vector.shape_cast %88 : vector<1x640x32xf32> to vector<640x32xf32>
    %c1_53 = arith.constant 1 : index
    %c0_54 = arith.constant 0 : index
    %c0_55 = arith.constant 0 : index
    %90 = vector.load %arg6[%c1_53, %c0_54, %c0_55] : memref<2x640x32xf32, #tpu.memory_space<vmem>>, vector<1x640x32xf32>
    %91 = vector.shape_cast %90 : vector<1x640x32xf32> to vector<640x32xf32>
    %c1_56 = arith.constant 1 : index
    %c0_57 = arith.constant 0 : index
    %c0_58 = arith.constant 0 : index
    %92 = vector.load %arg7[%c1_56, %c0_57, %c0_58] : memref<2x1x32xf32, #tpu.memory_space<vmem>>, vector<1x1x32xf32>
    %93 = vector.shape_cast %92 : vector<1x1x32xf32> to vector<1x32xf32>
    %c1_59 = arith.constant 1 : index
    %c0_60 = arith.constant 0 : index
    %c0_61 = arith.constant 0 : index
    %94 = vector.load %arg8[%c1_59, %c0_60, %c0_61] : memref<2x1x32xf32, #tpu.memory_space<vmem>>, vector<1x1x32xf32>
    %95 = vector.shape_cast %94 : vector<1x1x32xf32> to vector<1x32xf32>
    %c1_62 = arith.constant 1 : index
    %c0_63 = arith.constant 0 : index
    %c0_64 = arith.constant 0 : index
    %96 = vector.load %arg9[%c1_62, %c0_63, %c0_64] : memref<2x1x32xf32, #tpu.memory_space<vmem>>, vector<1x1x32xf32>
    %97 = vector.shape_cast %96 : vector<1x1x32xf32> to vector<1x32xf32>
    %98 = tpu.concatenate %85, %2 in 1 : vector<32x32xf32>, vector<32x96xf32> -> vector<32x128xf32>
    %99 = arith.addf %98, %83 : vector<32x128xf32>
    %100 = vector.extract_strided_slice %0 {offsets = [0, 0, 0], sizes = [1, 32, 32], strides = [1, 1, 1]} : vector<2x32x32xf32> to vector<1x32x32xf32>
    %101 = vector.shape_cast %100 : vector<1x32x32xf32> to vector<32x32xf32>
    %cst_65 = arith.constant dense<0.000000e+00> : vector<32x128xf32>
    %102 = tpu.matmul %101, %99, %cst_65 {dimension_numbers = #tpu.dot_dimension_numbers<[1], [0], [0], [1], [0, 0, 1, 1], [], []>} : vector<32x32xf32>, vector<32x128xf32>, vector<32x128xf32> -> vector<32x128xf32>
    %cst_66 = arith.constant dense<0.000000e+00> : vector<32x128xf32>
    %103 = tpu.matmul %101, %102, %cst_66 {dimension_numbers = #tpu.dot_dimension_numbers<[1], [0], [0], [1], [0, 0, 1, 1], [], []>} : vector<32x32xf32>, vector<32x128xf32>, vector<32x128xf32> -> vector<32x128xf32>
    %cst_67 = arith.constant 2.000000e+00 : f32
    %104 = vector.broadcast %cst_67 : f32 to vector<32x128xf32>
    %105 = arith.mulf %104, %103 : vector<32x128xf32>
    %106 = arith.subf %105, %99 : vector<32x128xf32>
    %107 = vector.extract_strided_slice %0 {offsets = [1, 0, 0], sizes = [1, 32, 32], strides = [1, 1, 1]} : vector<2x32x32xf32> to vector<1x32x32xf32>
    %108 = vector.shape_cast %107 : vector<1x32x32xf32> to vector<32x32xf32>
    %cst_68 = arith.constant dense<0.000000e+00> : vector<32x128xf32>
    %109 = tpu.matmul %108, %99, %cst_68 {dimension_numbers = #tpu.dot_dimension_numbers<[1], [0], [0], [1], [0, 0, 1, 1], [], []>} : vector<32x32xf32>, vector<32x128xf32>, vector<32x128xf32> -> vector<32x128xf32>
    %cst_69 = arith.constant dense<0.000000e+00> : vector<32x128xf32>
    %110 = tpu.matmul %108, %109, %cst_69 {dimension_numbers = #tpu.dot_dimension_numbers<[1], [0], [0], [1], [0, 0, 1, 1], [], []>} : vector<32x32xf32>, vector<32x128xf32>, vector<32x128xf32> -> vector<32x128xf32>
    %cst_70 = arith.constant 2.000000e+00 : f32
    %111 = vector.broadcast %cst_70 : f32 to vector<32x128xf32>
    %112 = arith.mulf %111, %110 : vector<32x128xf32>
    %113 = arith.subf %112, %99 : vector<32x128xf32>
    %114 = tpu.concatenate %99, %102, %106, %109, %113 in 1 : vector<32x128xf32>, vector<32x128xf32>, vector<32x128xf32>, vector<32x128xf32>, vector<32x128xf32> -> vector<32x640xf32>
    %cst_71 = arith.constant dense<0.000000e+00> : vector<32x32xf32>
    %115 = tpu.matmul %114, %87, %cst_71 {dimension_numbers = #tpu.dot_dimension_numbers<[1], [0], [0], [1], [0, 0, 1, 1], [], []>} : vector<32x640xf32>, vector<640x32xf32>, vector<32x32xf32> -> vector<32x32xf32>
    %116 = vector.broadcast %93 : vector<1x32xf32> to vector<32x32xf32>
    %117 = arith.addf %115, %116 : vector<32x32xf32>
    %118 = arith.negf %117 : vector<32x32xf32>
    %119 = math.exp %118 : vector<32x32xf32>
    %cst_72 = arith.constant 1.000000e+00 : f32
    %120 = vector.broadcast %cst_72 : f32 to vector<32x32xf32>
    %121 = arith.addf %120, %119 : vector<32x32xf32>
    %122 = arith.divf %120, %121 : vector<32x32xf32>
    %cst_73 = arith.constant dense<0.000000e+00> : vector<32x32xf32>
    %123 = tpu.matmul %114, %89, %cst_73 {dimension_numbers = #tpu.dot_dimension_numbers<[1], [0], [0], [1], [0, 0, 1, 1], [], []>} : vector<32x640xf32>, vector<640x32xf32>, vector<32x32xf32> -> vector<32x32xf32>
    %124 = vector.broadcast %95 : vector<1x32xf32> to vector<32x32xf32>
    %125 = arith.addf %123, %124 : vector<32x32xf32>
    %126 = arith.negf %125 : vector<32x32xf32>
    %127 = math.exp %126 : vector<32x32xf32>
    %cst_74 = arith.constant 1.000000e+00 : f32
    %128 = vector.broadcast %cst_74 : f32 to vector<32x32xf32>
    %129 = arith.addf %128, %127 : vector<32x32xf32>
    %130 = arith.divf %128, %129 : vector<32x32xf32>
    %131 = arith.mulf %122, %85 : vector<32x32xf32>
    %132 = tpu.concatenate %131, %2 in 1 : vector<32x32xf32>, vector<32x96xf32> -> vector<32x128xf32>
    %133 = arith.addf %132, %83 : vector<32x128xf32>
    %134 = vector.extract_strided_slice %0 {offsets = [0, 0, 0], sizes = [1, 32, 32], strides = [1, 1, 1]} : vector<2x32x32xf32> to vector<1x32x32xf32>
    %135 = vector.shape_cast %134 : vector<1x32x32xf32> to vector<32x32xf32>
    %cst_75 = arith.constant dense<0.000000e+00> : vector<32x128xf32>
    %136 = tpu.matmul %135, %133, %cst_75 {dimension_numbers = #tpu.dot_dimension_numbers<[1], [0], [0], [1], [0, 0, 1, 1], [], []>} : vector<32x32xf32>, vector<32x128xf32>, vector<32x128xf32> -> vector<32x128xf32>
    %cst_76 = arith.constant dense<0.000000e+00> : vector<32x128xf32>
    %137 = tpu.matmul %135, %136, %cst_76 {dimension_numbers = #tpu.dot_dimension_numbers<[1], [0], [0], [1], [0, 0, 1, 1], [], []>} : vector<32x32xf32>, vector<32x128xf32>, vector<32x128xf32> -> vector<32x128xf32>
    %cst_77 = arith.constant 2.000000e+00 : f32
    %138 = vector.broadcast %cst_77 : f32 to vector<32x128xf32>
    %139 = arith.mulf %138, %137 : vector<32x128xf32>
    %140 = arith.subf %139, %133 : vector<32x128xf32>
    %141 = vector.extract_strided_slice %0 {offsets = [1, 0, 0], sizes = [1, 32, 32], strides = [1, 1, 1]} : vector<2x32x32xf32> to vector<1x32x32xf32>
    %142 = vector.shape_cast %141 : vector<1x32x32xf32> to vector<32x32xf32>
    %cst_78 = arith.constant dense<0.000000e+00> : vector<32x128xf32>
    %143 = tpu.matmul %142, %133, %cst_78 {dimension_numbers = #tpu.dot_dimension_numbers<[1], [0], [0], [1], [0, 0, 1, 1], [], []>} : vector<32x32xf32>, vector<32x128xf32>, vector<32x128xf32> -> vector<32x128xf32>
    %cst_79 = arith.constant dense<0.000000e+00> : vector<32x128xf32>
    %144 = tpu.matmul %142, %143, %cst_79 {dimension_numbers = #tpu.dot_dimension_numbers<[1], [0], [0], [1], [0, 0, 1, 1], [], []>} : vector<32x32xf32>, vector<32x128xf32>, vector<32x128xf32> -> vector<32x128xf32>
    %cst_80 = arith.constant 2.000000e+00 : f32
    %145 = vector.broadcast %cst_80 : f32 to vector<32x128xf32>
    %146 = arith.mulf %145, %144 : vector<32x128xf32>
    %147 = arith.subf %146, %133 : vector<32x128xf32>
    %148 = tpu.concatenate %133, %136, %140, %143, %147 in 1 : vector<32x128xf32>, vector<32x128xf32>, vector<32x128xf32>, vector<32x128xf32>, vector<32x128xf32> -> vector<32x640xf32>
    %cst_81 = arith.constant dense<0.000000e+00> : vector<32x32xf32>
    %149 = tpu.matmul %148, %91, %cst_81 {dimension_numbers = #tpu.dot_dimension_numbers<[1], [0], [0], [1], [0, 0, 1, 1], [], []>} : vector<32x640xf32>, vector<640x32xf32>, vector<32x32xf32> -> vector<32x32xf32>
    %150 = vector.broadcast %97 : vector<1x32xf32> to vector<32x32xf32>
    %151 = arith.addf %149, %150 : vector<32x32xf32>
    %152 = math.tanh %151 : vector<32x32xf32>
    %153 = arith.mulf %130, %85 : vector<32x32xf32>
    %cst_82 = arith.constant 1.000000e+00 : f32
    %154 = vector.broadcast %cst_82 : f32 to vector<32x32xf32>
    %155 = arith.subf %154, %130 : vector<32x32xf32>
    %156 = arith.mulf %155, %152 : vector<32x32xf32>
    %157 = arith.addf %153, %156 : vector<32x32xf32>
    %c1_83 = arith.constant 1 : index
    %c0_84 = arith.constant 0 : index
    %c0_85 = arith.constant 0 : index
    %158 = vector.load %arg13[%c1_83, %c0_84, %c0_85] : memref<2x32x32xf32, #tpu.memory_space<vmem>>, vector<1x32x32xf32>
    %159 = vector.shape_cast %158 : vector<1x32x32xf32> to vector<32x32xf32>
    %160 = vector.shape_cast %157 : vector<32x32xf32> to vector<1x32x32xf32>
    tpu.vector_store %arg13[%c1_83, %c0_84, %c0_85], %160 {strides = array<i32>} : memref<2x32x32xf32, #tpu.memory_space<vmem>>, vector<1x32x32xf32>,
    %c0_86 = arith.constant 0 : index
    %c0_87 = arith.constant 0 : index
    %161 = vector.load %arg10[%c0_86, %c0_87] : memref<32x128xf32, #tpu.memory_space<vmem>>, vector<32x128xf32>
    %cst_88 = arith.constant dense<0.000000e+00> : vector<32x128xf32>
    %162 = tpu.matmul %157, %161, %cst_88 {dimension_numbers = #tpu.dot_dimension_numbers<[1], [0], [0], [1], [0, 0, 1, 1], [], []>} : vector<32x32xf32>, vector<32x128xf32>, vector<32x128xf32> -> vector<32x128xf32>
    %c0_89 = arith.constant 0 : index
    %c0_90 = arith.constant 0 : index
    %163 = vector.load %arg11[%c0_89, %c0_90] : memref<1x128xf32, #tpu.memory_space<vmem>>, vector<1x128xf32>
    %164 = vector.broadcast %163 : vector<1x128xf32> to vector<32x128xf32>
    %165 = arith.addf %162, %164 : vector<32x128xf32>
    %c0_91 = arith.constant 0 : index
    %c0_92 = arith.constant 0 : index
    %166 = vector.load %arg12[%c0_91, %c0_92] : memref<32x128xf32, #tpu.memory_space<vmem>>, vector<32x128xf32>
    tpu.vector_store %arg12[%c0_91, %c0_92], %165 {strides = array<i32>} : memref<32x128xf32, #tpu.memory_space<vmem>>, vector<32x128xf32>,
    return
  }
  func.func @transform_0(%arg0: i32) -> (i32, i32) {
    %c0_i32 = arith.constant 0 : i32
    %c0_i32_0 = arith.constant 0 : i32
    %c0_i32_1 = arith.constant 0 : i32
    return %c0_i32, %c0_i32_0 : i32, i32
  }
  func.func @transform_1(%arg0: i32) -> (i32, i32, i32) {
    %c0_i32 = arith.constant 0 : i32
    %c0_i32_0 = arith.constant 0 : i32
    %c0_i32_1 = arith.constant 0 : i32
    %c0_i32_2 = arith.constant 0 : i32
    return %c0_i32, %c0_i32_0, %c0_i32_1 : i32, i32, i32
  }
  func.func @transform_2(%arg0: i32) -> (i32, i32, i32) {
    %c0_i32 = arith.constant 0 : i32
    %c0_i32_0 = arith.constant 0 : i32
    %c0_i32_1 = arith.constant 0 : i32
    %c0_i32_2 = arith.constant 0 : i32
    return %c0_i32, %c0_i32_0, %c0_i32_1 : i32, i32, i32
  }
  func.func @transform_3(%arg0: i32) -> (i32, i32, i32) {
    %c0_i32 = arith.constant 0 : i32
    %c0_i32_0 = arith.constant 0 : i32
    %c0_i32_1 = arith.constant 0 : i32
    %c0_i32_2 = arith.constant 0 : i32
    return %c0_i32, %c0_i32_0, %c0_i32_1 : i32, i32, i32
  }
  func.func @transform_4(%arg0: i32) -> (i32, i32, i32) {
    %c0_i32 = arith.constant 0 : i32
    %c0_i32_0 = arith.constant 0 : i32
    %c0_i32_1 = arith.constant 0 : i32
    %c0_i32_2 = arith.constant 0 : i32
    return %c0_i32, %c0_i32_0, %c0_i32_1 : i32, i32, i32
  }
  func.func @transform_5(%arg0: i32) -> (i32, i32, i32) {
    %c0_i32 = arith.constant 0 : i32
    %c0_i32_0 = arith.constant 0 : i32
    %c0_i32_1 = arith.constant 0 : i32
    %c0_i32_2 = arith.constant 0 : i32
    return %c0_i32, %c0_i32_0, %c0_i32_1 : i32, i32, i32
  }
  func.func @transform_6(%arg0: i32) -> (i32, i32, i32) {
    %c0_i32 = arith.constant 0 : i32
    %c0_i32_0 = arith.constant 0 : i32
    %c0_i32_1 = arith.constant 0 : i32
    %c0_i32_2 = arith.constant 0 : i32
    return %c0_i32, %c0_i32_0, %c0_i32_1 : i32, i32, i32
  }
  func.func @transform_7(%arg0: i32) -> (i32, i32, i32) {
    %c0_i32 = arith.constant 0 : i32
    %c0_i32_0 = arith.constant 0 : i32
    %c0_i32_1 = arith.constant 0 : i32
    %c0_i32_2 = arith.constant 0 : i32
    return %c0_i32, %c0_i32_0, %c0_i32_1 : i32, i32, i32
  }
  func.func @transform_8(%arg0: i32) -> (i32, i32, i32) {
    %c0_i32 = arith.constant 0 : i32
    %c0_i32_0 = arith.constant 0 : i32
    %c0_i32_1 = arith.constant 0 : i32
    %c0_i32_2 = arith.constant 0 : i32
    return %c0_i32, %c0_i32_0, %c0_i32_1 : i32, i32, i32
  }
  func.func @transform_9(%arg0: i32) -> (i32, i32) {
    %c0_i32 = arith.constant 0 : i32
    %c0_i32_0 = arith.constant 0 : i32
    %c0_i32_1 = arith.constant 0 : i32
    return %c0_i32, %c0_i32_0 : i32, i32
  }
  func.func @transform_10(%arg0: i32) -> (i32, i32) {
    %c0_i32 = arith.constant 0 : i32
    %c0_i32_0 = arith.constant 0 : i32
    %c0_i32_1 = arith.constant 0 : i32
    return %c0_i32, %c0_i32_0 : i32, i32
  }
  func.func @transform_11(%arg0: i32) -> (i32, i32) {
    %c0_i32 = arith.constant 0 : i32
    %c0_i32_0 = arith.constant 0 : i32
    %c0_i32_1 = arith.constant 0 : i32
    return %c0_i32, %c0_i32_0 : i32, i32
  }
  func.func @transform_12(%arg0: i32) -> (i32, i32, i32) {
    %c0_i32 = arith.constant 0 : i32
    %c0_i32_0 = arith.constant 0 : i32
    %c0_i32_1 = arith.constant 0 : i32
    %c0_i32_2 = arith.constant 0 : i32
    return %c0_i32, %c0_i32_0, %c0_i32_1 : i32, i32, i32
  }
}

</mosaic_0001>

<bundles_post_ra>
// kernel: decoder_forward.1
= control target key start
LH: loop header
LB: loop body
LE: loop exit
PB: predicated region body
PF: predicated region fallthrough
CT: control target
= control target key end

     0   :  { %vm303_vm0 = vcmask 261120   ;;  %s6309_s23 = smov 32   ;;  %vm1935_vm1 = vcmask 523264   ;;  %s8643_s0 = inlined_call_operand.vmem [shape: f32[32,128], index: 0, kind: input, shape index: {}]   ;;  %s8644_s1 = inlined_call_operand.vmem [shape: f32[2,32,32], index: 1, kind: input, shape index: {}, may-alias: {1,12}]   ;;  %s8645_s2 = inlined_call_operand.vmem [shape: f32[2,32,32], index: 2, kind: input, shape index: {}]   ;;  %s8646_s3 = inlined_call_operand.vmem [shape: f32[2,640,32], index: 3, kind: input, shape index: {}]   ;;  %s8647_s4 = inlined_call_operand.vmem [shape: f32[2,640,32], index: 4, kind: input, shape index: {}]   ;;  %s8648_s6 = inlined_call_operand.vmem [shape: f32[2,1,32], index: 6, kind: input, shape index: {}]   ;;  %s8649_s7 = inlined_call_operand.vmem [shape: f32[2,1,32], index: 7, kind: input, shape index: {}]   ;;  %s8650_s5 = inlined_call_operand.vmem [shape: f32[2,640,32], index: 5, kind: input, shape index: {}]   ;;  %s8651_s8 = inlined_call_operand.vmem [shape: f32[2,1,32], index: 8, kind: input, shape index: {}]   ;;  %s8652_s12 = inlined_call_operand.vmem [shape: f32[2,32,32], index: 12, kind: output, shape index: {1}, may-alias: {1,12}]   ;;  %s8653_s9 = inlined_call_operand.vmem [shape: f32[32,128], index: 9, kind: input, shape index: {}]   ;;  %s8654_s10 = inlined_call_operand.vmem [shape: f32[1,128], index: 10, kind: input, shape index: {}]   ;;  %s8655_s11 = inlined_call_operand.vmem [shape: f32[32,128], index: 11, kind: output, shape index: {0}]  }
   0x1   :  { %v48_v0 = vld [vmem:[%s8644_s1] sm:$0xff]  ;;  %v49_v1 = vld [vmem:[%s8644_s1 + $0x8] sm:$0xff]  ;;  %v50_v6 = vld [vmem:[%s8644_s1 + $0x10] sm:$0xff] }
   0x2   :  { %v56_v2 = vld [vmem:[%s8643_s0] sm:$0xff]  ;;  %v57_v3 = vld [vmem:[%s8643_s0 + $0x8] sm:$0xff]  ;;  %v304_v4 = vsel %vm303_vm0, %v48_v0, 0.0  ;;  %v305_v5 = vsel %vm303_vm0, %v49_v1, 0.0  ;;  %v51_v7 = vld [vmem:[%s8644_s1 + $0x18] sm:$0xff]  ;;  %v306_v12 = vsel %vm303_vm0, %v50_v6, 0.0 }
   0x3   :  { %v6395_v8 = vadd.f32 %v304_v4, %v56_v2  ;;  %v6397_v9 = vadd.f32 %v305_v5, %v57_v3  ;;  %v58_v10 = vld [vmem:[%s8643_s0 + $0x10] sm:$0xff]  ;;  %v59_v11 = vld [vmem:[%s8643_s0 + $0x18] sm:$0xff]  ;;  %v307_v13 = vsel %vm303_vm0, %v51_v7, 0.0  ;;  %v6410_v14 = vld [vmem:[%s8645_s2] sm:$0xff] }
   0x4   :  { %v6412_v15 = vadd.f32 %v306_v12, %v58_v10  ;;  %v6414_v16 = vadd.f32 %v307_v13, %v59_v11  ;;  %5027 = vmatprep.mubr.msk.f32.mxu0 %vm303_vm0, %v6410_v14  ;;  %5041 = vmatprep.mubr.msk.f32.mxu1 %vm303_vm0, %v6410_v14  ;;  %v6427_v19 = vld [vmem:[%s8645_s2 + $0x8] sm:$0xff]  ;;  %v6432_v20 = vld [vmem:[%s8645_s2 + $0x10] sm:$0xff]  ;;  %v76_v21 = vld [vmem:[%s8646_s3 + $0x80] sm:$0xff] }
   0x5   :  { %v5485_v17 = vpack.c.bf16 %v6397_v9, %v6395_v8  ;;  %v77_v22 = vld [vmem:[%s8646_s3 + $0x88] sm:$0xff]  ;;  %v6447_v23 = vld [vmem:[%s8645_s2 + $0x18] sm:$0xff]  ;;  %v6452_v24 = vld [vmem:[%s8645_s2 + $0x20] sm:$0xff] }
   0x6   :  { %v5489_v18 = vpack.c.bf16 %v6414_v16, %v6412_v15  ;;  %v5517_v25 = vpack.c.bf16 %v77_v22, %v76_v21  ;;  %v60_v26 = vld [vmem:[%s8646_s3] sm:$0xff]  ;;  %v61_v27 = vld [vmem:[%s8646_s3 + $0x8] sm:$0xff]  ;;  %v78_v28 = vld [vmem:[%s8646_s3 + $0x90] sm:$0xff] }
   0x7   :  { %5486 = vmatprep.subr.bf16.mxu0 %v5485_v17  ;;  %v79_v29 = vld [vmem:[%s8646_s3 + $0x98] sm:$0xff]  ;;  %v6473_v30 = vld [vmem:[%s8645_s2 + $0x28] sm:$0xff]  ;;  %v5519_v31 = vpack.c.bf16 %v61_v27, %v60_v26  ;;  %v6478_v32 = vld [vmem:[%s8645_s2 + $0x30] sm:$0xff] }
   0x8   :  { %5488 = vmatpush3.bf16.msra.mxu0 %v5485_v17  ;;  %v5521_v33 = vpack.c.bf16 %v79_v29, %v78_v28  ;;  %v62_v34 = vld [vmem:[%s8646_s3 + $0x10] sm:$0xff]  ;;  %v63_v35 = vld [vmem:[%s8646_s3 + $0x18] sm:$0xff]  ;;  %v80_v36 = vld [vmem:[%s8646_s3 + $0xa0] sm:$0xff] }
   0x9   :  { %5490 = vmatprep.subr.bf16.mxu0 %v5489_v18  ;;  %v81_v37 = vld [vmem:[%s8646_s3 + $0xa8] sm:$0xff]  ;;  %v6499_v38 = vld [vmem:[%s8645_s2 + $0x38] sm:$0xff]  ;;  %v5523_v39 = vpack.c.bf16 %v63_v35, %v62_v34  ;;  %v64_v41 = vld [vmem:[%s8646_s3 + $0x20] sm:$0xff] }
   0xa   :  { %v5525_v40 = vpack.c.bf16 %v81_v37, %v80_v36  ;;  %v65_v42 = vld [vmem:[%s8646_s3 + $0x28] sm:$0xff]  ;;  %v82_v43 = vld [vmem:[%s8646_s3 + $0xb0] sm:$0xff]  ;;  %v83_v44 = vld [vmem:[%s8646_s3 + $0xb8] sm:$0xff] }
   0xb   :  { %v5527_v45 = vpack.c.bf16 %v65_v42, %v64_v41  ;;  %v5529_v46 = vpack.c.bf16 %v83_v44, %v82_v43  ;;  %v66_v47 = vld [vmem:[%s8646_s3 + $0x30] sm:$0xff]  ;;  %v67_v48 = vld [vmem:[%s8646_s3 + $0x38] sm:$0xff]  ;;  %v84_v49 = vld [vmem:[%s8646_s3 + $0xc0] sm:$0xff] }
   0xc   :  { %5492 = vmatpush3.bf16.msra.mxu0 %v5489_v18  ;;  %v85_v50 = vld [vmem:[%s8646_s3 + $0xc8] sm:$0xff]  ;;  %v5531_v51 = vpack.c.bf16 %v67_v48, %v66_v47  ;;  %v68_v53 = vld [vmem:[%s8646_s3 + $0x40] sm:$0xff]  ;;  %v86_v55 = vld [vmem:[%s8646_s3 + $0xd0] sm:$0xff] }
   0xd   :  { %5502 = vmatprep.subr.bf16.mxu0 %v5485_v17  ;;  %v5533_v52 = vpack.c.bf16 %v85_v50, %v84_v49  ;;  %v69_v54 = vld [vmem:[%s8646_s3 + $0x48] sm:$0xff]  ;;  %v87_v56 = vld [vmem:[%s8646_s3 + $0xd8] sm:$0xff]  ;;  %v70_v59 = vld [vmem:[%s8646_s3 + $0x50] sm:$0xff] }
   0xe   :  { %v5535_v57 = vpack.c.bf16 %v69_v54, %v68_v53  ;;  %v5537_v58 = vpack.c.bf16 %v87_v56, %v86_v55  ;;  %v71_v60 = vld [vmem:[%s8646_s3 + $0x58] sm:$0xff]  ;;  %v88_v61 = vld [vmem:[%s8646_s3 + $0xe0] sm:$0xff]  ;;  %v89_v62 = vld [vmem:[%s8646_s3 + $0xe8] sm:$0xff] }
   0xf   :  { %5028 = vmatmul.mubr.msk.f32.vlgmr.msra.gmra.mrb[0].mxu0 %vm303_vm0, %v6427_v19  ;;  %v5539_v63 = vpack.c.bf16 %v71_v60, %v70_v59  ;;  %v5541_v0 = vpack.c.bf16 %v89_v62, %v88_v61  ;;  %v72_v1 = vld [vmem:[%s8646_s3 + $0x60] sm:$0xff]  ;;  %v73_v2 = vld [vmem:[%s8646_s3 + $0x68] sm:$0xff]  ;;  %v90_v3 = vld [vmem:[%s8646_s3 + $0xf0] sm:$0xff] }
  0x10   :  { %5504 = vmatpush3.bf16.msra.mxu0 %v5485_v17  ;;  %5030 = vmatprep.mubr.msk.f32.mxu0 %vm303_vm0, %v6432_v20  ;;  %v91_v4 = vld [vmem:[%s8646_s3 + $0xf8] sm:$0xff]  ;;  %v5543_v5 = vpack.c.bf16 %v73_v2, %v72_v1  ;;  %v74_v7 = vld [vmem:[%s8646_s3 + $0x70] sm:$0xff]  ;;  %v124_v12 = vld [vmem:[%s8646_s3 + $0x200] sm:$0xff] }
  0x11   :  { %5506 = vmatprep.subr.bf16.mxu0 %v5489_v18  ;;  %v5545_v6 = vpack.c.bf16 %v91_v4, %v90_v3  ;;  %v75_v10 = vld [vmem:[%s8646_s3 + $0x78] sm:$0xff]  ;;  %v125_v13 = vld [vmem:[%s8646_s3 + $0x208] sm:$0xff]  ;;  %v128_v28 = vld [vmem:[%s8646_s3 + $0x220] sm:$0xff] }
  0x12   :  { %v5547_v11 = vpack.c.bf16 %v75_v10, %v74_v7  ;;  %v5581_v17 = vpack.c.bf16 %v125_v13, %v124_v12  ;;  %v127_v21 = vld [vmem:[%s8646_s3 + $0x218] sm:$0xff]  ;;  %v129_v29 = vld [vmem:[%s8646_s3 + $0x228] sm:$0xff]  ;;  %v130_v37 = vld [vmem:[%s8646_s3 + $0x230] sm:$0xff] }
  0x13   :  { %5031 = vmatmul.mubr.msk.f32.gmra.mrb[2].mxu0 %vm303_vm0, %v6447_v23  ;;  %v5589_v35 = vpack.c.bf16 %v129_v29, %v128_v28  ;;  %v108_v42 = vld [vmem:[%s8646_s3 + $0x180] sm:$0xff]  ;;  %v109_v43 = vld [vmem:[%s8646_s3 + $0x188] sm:$0xff]  ;;  %v111_v53 = vld [vmem:[%s8646_s3 + $0x198] sm:$0xff] }
  0x14   :  { %5508 = vmatpush3.bf16.msra.mxu0 %v5489_v18  ;;  %5055 = vmatprep.mubr.msk.f32.mxu0 %vm303_vm0, %v6452_v24  ;;  %v126_v18 = vld [vmem:[%s8646_s3 + $0x210] sm:$0xff]  ;;  %v133_v47 = vld [vmem:[%s8646_s3 + $0x248] sm:$0xff]  ;;  %v92_v50 = vld [vmem:[%s8646_s3 + $0x100] sm:$0xff] }
  0x15   :  { %5518 = vmatprep.subr.bf16.mxu0 %v5517_v25  ;;  %v5585_v27 = vpack.c.bf16 %v127_v21, %v126_v18  ;;  %v94_v56 = vld [vmem:[%s8646_s3 + $0x110] sm:$0xff]  ;;  %v96_v60 = vld [vmem:[%s8646_s3 + $0x120] sm:$0xff]  ;;  %v97_v61 = vld [vmem:[%s8646_s3 + $0x128] sm:$0xff] }
  0x16   :  { %v5559_v62 = vpack.c.bf16 %v97_v61, %v96_v60  ;;  %v99_v1 = vld [vmem:[%s8646_s3 + $0x138] sm:$0xff]  ;;  %v116_v2 = vld [vmem:[%s8646_s3 + $0x1c0] sm:$0xff]  ;;  %v118_v7 = vld [vmem:[%s8646_s3 + $0x1d0] sm:$0xff] }
  0x17   :  { %5056 = vmatmul.mubr.msk.f32.vlgmr.msra.gmra.mrb[4].mxu0 %vm303_vm0, %v6473_v30  ;;  %v119_v10 = vld [vmem:[%s8646_s3 + $0x1d8] sm:$0xff]  ;;  %v102_v13 = vld [vmem:[%s8646_s3 + $0x150] sm:$0xff]  ;;  %v120_v18 = vld [vmem:[%s8646_s3 + $0x1e0] sm:$0xff] }
  0x18   :  { %5058 = vmatprep.mubr.msk.f32.mxu0 %vm303_vm0, %v6478_v32  ;;  %5520 = vmatpush3.bf16.msra.mxu0 %v5519_v31  ;;  %v5569_v12 = vpack.c.bf16 %v119_v10, %v118_v7  ;;  %v121_v21 = vld [vmem:[%s8646_s3 + $0x1e8] sm:$0xff]  ;;  %v104_v28 = vld [vmem:[%s8646_s3 + $0x160] sm:$0xff]  ;;  %v142_v10 = vld [vmem:[%s8647_s4 + $0x10] sm:$0xff] }
  0x19   :  { %5522 = vmatprep.subr.bf16.mxu0 %v5521_v33  ;;  %v105_v29 = vld [vmem:[%s8646_s3 + $0x168] sm:$0xff] }
  0x1b   :  { %5059 = vmatmul.mubr.msk.f32.gmra.mrb[6].mxu0 %vm303_vm0, %v6499_v38 }
  0x1c   :  { %5524 = vmatpush3.bf16.msra.mxu0 %v5523_v39  ;;  %v131_v39 = vld [vmem:[%s8646_s3 + $0x238] sm:$0xff] }
  0x1d   :  { %5526 = vmatprep.subr.bf16.mxu0 %v5525_v40  ;;  %v5593_v44 = vpack.c.bf16 %v131_v39, %v130_v37  ;;  %v123_v37 = vld [vmem:[%s8646_s3 + $0x1f8] sm:$0xff] }
  0x20   :  { %5528 = vmatpush3.bf16.msra.mxu0 %v5527_v45 }
  0x21   :  { %5530 = vmatprep.subr.bf16.mxu0 %v5529_v46  ;;  %v132_v46 = vld [vmem:[%s8646_s3 + $0x240] sm:$0xff] }
  0x24   :  { %5532 = vmatpush3.bf16.msra.mxu0 %v5531_v51  ;;  %v93_v51 = vld [vmem:[%s8646_s3 + $0x108] sm:$0xff] }
  0x25   :  { %5534 = vmatprep.subr.bf16.mxu0 %v5533_v52  ;;  %v110_v52 = vld [vmem:[%s8646_s3 + $0x190] sm:$0xff]  ;;  %v5551_v54 = vpack.c.bf16 %v93_v51, %v92_v50  ;;  %v136_v51 = vld [vmem:[%s8646_s3 + $0x260] sm:$0xff] }
  0x26   :  { %v5553_v55 = vpack.c.bf16 %v111_v53, %v110_v52  ;;  %v137_v52 = vld [vmem:[%s8646_s3 + $0x268] sm:$0xff] }
  0x27   :  { %v5605_v53 = vpack.c.bf16 %v137_v52, %v136_v51 }
  0x28   :  { %5536 = vmatpush3.bf16.msra.mxu0 %v5535_v57  ;;  %v95_v57 = vld [vmem:[%s8646_s3 + $0x118] sm:$0xff] }
  0x29   :  { %5538 = vmatprep.subr.bf16.mxu0 %v5537_v58  ;;  %v5555_v58 = vpack.c.bf16 %v95_v57, %v94_v56  ;;  %v188_v56 = vld [vmem:[%s8647_s4 + $0x180] sm:$0xff]  ;;  %v189_v57 = vld [vmem:[%s8647_s4 + $0x188] sm:$0xff] }
  0x2c   :  { %5540 = vmatpush3.bf16.msra.mxu0 %v5539_v63 }
  0x2d   :  { %5542 = vmatprep.subr.bf16.mxu0 %v5541_v0  ;;  %v98_v0 = vld [vmem:[%s8646_s3 + $0x130] sm:$0xff] }
  0x2e   :  { %v5563_v3 = vpack.c.bf16 %v99_v1, %v98_v0  ;;  %v158_v1 = vld [vmem:[%s8647_s4 + $0x90] sm:$0xff] }
  0x30   :  { %5544 = vmatpush3.bf16.msra.mxu0 %v5543_v5  ;;  %v100_v5 = vld [vmem:[%s8646_s3 + $0x140] sm:$0xff] }
  0x31   :  { %5546 = vmatprep.subr.bf16.mxu0 %v5545_v6  ;;  %v101_v6 = vld [vmem:[%s8646_s3 + $0x148] sm:$0xff] }
  0x34   :  { %5548 = vmatpush3.bf16.msra.mxu0 %v5547_v11  ;;  %v5567_v11 = vpack.c.bf16 %v101_v6, %v100_v5 }
  0x35   :  { %5582 = vmatprep.subr.bf16.mxu0 %v5581_v17 }
  0xe2   :  { %v6581_v22 = vpop.f32.mrb[0].mxu0 }
  0xe3   :  { %v6583_v25 = vpop.f32.mrb[1].mxu0 }
  0xe4   :  { %762 = vmatprep.mubr.f32.mxu0 %v6583_v25  ;;  %v5493_v26 = vpack.c.bf16 %v6581_v22, %v6583_v25 }
  0xe5   :  { %763 = vmatmul.mubr.f32.vlgmr.msra.gmra.mrb[8].mxu0 %v6395_v8 }
  0xe6   :  { %v6595_v31 = vpop.f32.mrb[2].mxu0  ;;  %5494 = vmatprep.subr.bf16.mxu1 %v5493_v26  ;;  %767 = vmatprep.mubr.f32.mxu0 %v6581_v22 }
  0xe7   :  { %v6598_v33 = vpop.f32.mrb[3].mxu0  ;;  %5496 = vmatpush3.bf16.msra.mxu1 %v5493_v26  ;;  %5584 = vmatpush3.bf16.msra.mxu0 %v5581_v17  ;;  %v103_v17 = vld [vmem:[%s8646_s3 + $0x158] sm:$0xff] }
  0xe8   :  { %v5497_v34 = vpack.c.bf16 %v6595_v31, %v6598_v33  ;;  %5586 = vmatprep.subr.bf16.mxu0 %v5585_v27  ;;  %v5571_v26 = vpack.c.bf16 %v103_v17, %v102_v13  ;;  %v160_v13 = vld [vmem:[%s8647_s4 + $0xa0] sm:$0xff]  ;;  %v161_v17 = vld [vmem:[%s8647_s4 + $0xa8] sm:$0xff] }
  0xe9   :  { %768 = vmatmul.mubr.f32.gmra.mrb[10].mxu0 %v6397_v9 }
  0xea   :  { %5498 = vmatprep.subr.bf16.mxu1 %v5497_v34  ;;  %v6603_v36 = vpop.f32.mrb[4].mxu0  ;;  %772 = vmatprep.mubr.f32.mxu0 %v6598_v33 }
  0xeb   :  { %5500 = vmatpush3.bf16.msra.mxu1 %v5497_v34  ;;  %v6612_v40 = vpop.f32.mrb[5].mxu0  ;;  %5588 = vmatpush3.bf16.msra.mxu0 %v5585_v27  ;;  %v5573_v27 = vpack.c.bf16 %v121_v21, %v120_v18  ;;  %v5575_v34 = vpack.c.bf16 %v105_v29, %v104_v28  ;;  %v144_v21 = vld [vmem:[%s8647_s4 + $0x20] sm:$0xff]  ;;  %v5621_v29 = vpack.c.bf16 %v161_v17, %v160_v13 }
  0xec   :  { %v5509_v41 = vpack.c.bf16 %v6603_v36, %v6612_v40  ;;  %5590 = vmatprep.subr.bf16.mxu0 %v5589_v35  ;;  %v176_v17 = vld [vmem:[%s8647_s4 + $0x120] sm:$0xff] }
  0xed   :  { %773 = vmatmul.mubr.f32.gmra.mrb[12].mxu0 %v6412_v15 }
  0xee   :  { %5042 = vmatmul.mubr.msk.f32.vlgmr.msra.gmra.mrb[0].mxu1 %vm303_vm0, %v6427_v19  ;;  %v6625_v45 = vpop.f32.mrb[6].mxu0  ;;  %5510 = vmatprep.subr.bf16.mxu1 %v5509_v41  ;;  %v5549_v19 = vpack.c.bf16 %v109_v43, %v108_v42  ;;  %v107_v42 = vld [vmem:[%s8646_s3 + $0x178] sm:$0xff]  ;;  %v134_v43 = vld [vmem:[%s8646_s3 + $0x250] sm:$0xff] }
  0xef   :  { %777 = vmatprep.mubr.f32.mxu0 %v6595_v31  ;;  %v6634_v48 = vpop.f32.mrb[7].mxu0  ;;  %5512 = vmatpush3.bf16.msra.mxu1 %v5509_v41  ;;  %v106_v41 = vld [vmem:[%s8646_s3 + $0x170] sm:$0xff] }
  0xf0   :  { %v5513_v49 = vpack.c.bf16 %v6625_v45, %v6634_v48  ;;  %5044 = vmatprep.mubr.msk.f32.mxu1 %vm303_vm0, %v6432_v20  ;;  %5592 = vmatpush3.bf16.msra.mxu0 %v5589_v35  ;;  %v5597_v20 = vpack.c.bf16 %v133_v47, %v132_v46  ;;  %v122_v35 = vld [vmem:[%s8646_s3 + $0x1f0] sm:$0xff]  ;;  %v135_v46 = vld [vmem:[%s8646_s3 + $0x258] sm:$0xff] }
  0xf1   :  { %5594 = vmatprep.subr.bf16.mxu0 %v5593_v44  ;;  %778 = vmatmul.mubr.f32.gmra.mrb[14].mxu0 %v6414_v16  ;;  %v5577_v39 = vpack.c.bf16 %v123_v37, %v122_v35  ;;  %v5601_v47 = vpack.c.bf16 %v135_v46, %v134_v43  ;;  %v162_v35 = vld [vmem:[%s8647_s4 + $0xb0] sm:$0xff]  ;;  %v163_v37 = vld [vmem:[%s8647_s4 + $0xb8] sm:$0xff]  ;;  %v172_v43 = vld [vmem:[%s8647_s4 + $0x100] sm:$0xff] }
  0xf2   :  { %5045 = vmatmul.mubr.msk.f32.gmra.mrb[2].mxu1 %vm303_vm0, %v6447_v23  ;;  %5514 = vmatprep.subr.bf16.mxu1 %v5513_v49  ;;  %v112_v23 = vld [vmem:[%s8646_s3 + $0x1a0] sm:$0xff] }
  0xf3   :  { %5516 = vmatpush3.bf16.msra.mxu1 %v5513_v49  ;;  %5069 = vmatprep.mubr.msk.f32.mxu1 %vm303_vm0, %v6452_v24  ;;  %v113_v24 = vld [vmem:[%s8646_s3 + $0x1a8] sm:$0xff]  ;;  %v156_v49 = vld [vmem:[%s8647_s4 + $0x80] sm:$0xff] }
  0xf4   :  { %5550 = vmatprep.subr.bf16.mxu1 %v5549_v19  ;;  %5596 = vmatpush3.bf16.msra.mxu0 %v5593_v44  ;;  %v5557_v59 = vpack.c.bf16 %v113_v24, %v112_v23  ;;  %v5579_v44 = vpack.c.bf16 %v107_v42, %v106_v41  ;;  %v157_v19 = vld [vmem:[%s8647_s4 + $0x88] sm:$0xff]  ;;  %v5645_v23 = vpack.c.bf16 %v189_v57, %v188_v56 }
  0xf5   :  { %5598 = vmatprep.subr.bf16.mxu0 %v5597_v20  ;;  %v5613_v50 = vpack.c.bf16 %v157_v19, %v156_v49  ;;  %v146_v49 = vld [vmem:[%s8647_s4 + $0x30] sm:$0xff] }
  0xf6   :  { %5070 = vmatmul.mubr.msk.f32.vlgmr.msra.gmra.mrb[4].mxu1 %vm303_vm0, %v6473_v30  ;;  %v114_v30 = vld [vmem:[%s8646_s3 + $0x1b0] sm:$0xff] }
  0xf7   :  { %5072 = vmatprep.mubr.msk.f32.mxu1 %vm303_vm0, %v6478_v32  ;;  %5552 = vmatpush3.bf16.msra.mxu1 %v5551_v54  ;;  %v115_v32 = vld [vmem:[%s8646_s3 + $0x1b8] sm:$0xff] }
  0xf8   :  { %5554 = vmatprep.subr.bf16.mxu1 %v5553_v55  ;;  %5600 = vmatpush3.bf16.msra.mxu0 %v5597_v20  ;;  %v5561_v63 = vpack.c.bf16 %v115_v32, %v114_v30  ;;  %v138_v20 = vld [vmem:[%s8646_s3 + $0x270] sm:$0xff]  ;;  %v139_v54 = vld [vmem:[%s8646_s3 + $0x278] sm:$0xff] }
  0xf9   :  { %5602 = vmatprep.subr.bf16.mxu0 %v5601_v47  ;;  %v5609_v55 = vpack.c.bf16 %v139_v54, %v138_v20  ;;  %v147_v20 = vld [vmem:[%s8647_s4 + $0x38] sm:$0xff]  ;;  %v190_v54 = vld [vmem:[%s8647_s4 + $0x190] sm:$0xff] }
  0xfa   :  { %5073 = vmatmul.mubr.msk.f32.gmra.mrb[6].mxu1 %vm303_vm0, %v6499_v38  ;;  %v117_v38 = vld [vmem:[%s8646_s3 + $0x1c8] sm:$0xff] }
  0xfb   :  { %847 = vmatprep.mubr.f32.mxu1 %v6612_v40  ;;  %5556 = vmatpush3.bf16.msra.mxu1 %v5555_v58  ;;  %v5565_v4 = vpack.c.bf16 %v117_v38, %v116_v2  ;;  %v159_v2 = vld [vmem:[%s8647_s4 + $0x98] sm:$0xff] }
  0xfc   :  { %5558 = vmatprep.subr.bf16.mxu1 %v5557_v59  ;;  %5604 = vmatpush3.bf16.msra.mxu0 %v5601_v47  ;;  %v5617_v7 = vpack.c.bf16 %v159_v2, %v158_v1  ;;  %v5625_v47 = vpack.c.bf16 %v163_v37, %v162_v35  ;;  %v193_v1 = vld [vmem:[%s8647_s4 + $0x1a8] sm:$0xff]  ;;  %v151_v35 = vld [vmem:[%s8647_s4 + $0x58] sm:$0xff] }
  0xfd   :  { %5606 = vmatprep.subr.bf16.mxu0 %v5605_v53 }
  0xff   :  { %5560 = vmatpush3.bf16.msra.mxu1 %v5559_v62  ;;  %v140_v62 = vld [vmem:[%s8647_s4] sm:$0xff] }
 0x100   :  { %5562 = vmatprep.subr.bf16.mxu1 %v5561_v63  ;;  %5608 = vmatpush3.bf16.msra.mxu0 %v5605_v53  ;;  %v141_v63 = vld [vmem:[%s8647_s4 + $0x8] sm:$0xff] }
 0x101   :  { %5610 = vmatprep.subr.bf16.mxu0 %v5609_v55 }
 0x103   :  { %5564 = vmatpush3.bf16.msra.mxu1 %v5563_v3  ;;  %v5615_v3 = vpack.c.bf16 %v141_v63, %v140_v62  ;;  %v165_v63 = vld [vmem:[%s8647_s4 + $0xc8] sm:$0xff] }
 0x104   :  { %5566 = vmatprep.subr.bf16.mxu1 %v5565_v4  ;;  %5612 = vmatpush3.bf16.msra.mxu0 %v5609_v55  ;;  %v191_v55 = vld [vmem:[%s8647_s4 + $0x198] sm:$0xff] }
 0x105   :  { %5646 = vmatprep.subr.bf16.mxu0 %v5645_v23  ;;  %v5649_v62 = vpack.c.bf16 %v191_v55, %v190_v54  ;;  %v171_v54 = vld [vmem:[%s8647_s4 + $0xf8] sm:$0xff] }
 0x107   :  { %5568 = vmatpush3.bf16.msra.mxu1 %v5567_v11  ;;  %v143_v11 = vld [vmem:[%s8647_s4 + $0x18] sm:$0xff] }
 0x108   :  { %5570 = vmatprep.subr.bf16.mxu1 %v5569_v12  ;;  %v5619_v18 = vpack.c.bf16 %v143_v11, %v142_v10  ;;  %v166_v10 = vld [vmem:[%s8647_s4 + $0xd0] sm:$0xff]  ;;  %v167_v11 = vld [vmem:[%s8647_s4 + $0xd8] sm:$0xff] }
 0x10b   :  { %5572 = vmatpush3.bf16.msra.mxu1 %v5571_v26 }
 0x10c   :  { %5574 = vmatprep.subr.bf16.mxu1 %v5573_v27 }
 0x10f   :  { %5576 = vmatpush3.bf16.msra.mxu1 %v5575_v34  ;;  %v145_v34 = vld [vmem:[%s8647_s4 + $0x28] sm:$0xff] }
 0x110   :  { %5578 = vmatprep.subr.bf16.mxu1 %v5577_v39  ;;  %v5623_v46 = vpack.c.bf16 %v145_v34, %v144_v21  ;;  %v150_v34 = vld [vmem:[%s8647_s4 + $0x50] sm:$0xff] }
 0x113   :  { %5580 = vmatpush3.bf16.msra.mxu1 %v5579_v44  ;;  %v173_v44 = vld [vmem:[%s8647_s4 + $0x108] sm:$0xff] }
 0x114   :  { %5614 = vmatprep.subr.bf16.mxu1 %v5613_v50  ;;  %v5647_v23 = vpack.c.bf16 %v173_v44, %v172_v43  ;;  %v5635_v43 = vpack.c.bf16 %v151_v35, %v150_v34  ;;  %v196_v44 = vld [vmem:[%s8647_s4 + $0x1c0] sm:$0xff]  ;;  %v203_v34 = vld [vmem:[%s8647_s4 + $0x1f8] sm:$0xff] }
 0x1b8   :  { %v4299_v24 = vpop.f32.mrb[8].mxu0 }
 0x1b9   :  { %v4300_v58 = vpop.f32.mrb[9].mxu0 }
 0x1ba   :  { %v6772_v59 = vadd.f32 %v4300_v58, %v4299_v24  ;;  %v174_v58 = vld [vmem:[%s8647_s4 + $0x110] sm:$0xff] }
 0x1bc   :  { %v4302_v60 = vpop.f32.mrb[10].mxu0 }
 0x1bd   :  { %v4303_v61 = vpop.f32.mrb[11].mxu0 }
 0x1be   :  { %v6774_v30 = vadd.f32 %v4303_v61, %v4302_v60  ;;  %v175_v60 = vld [vmem:[%s8647_s4 + $0x118] sm:$0xff]  ;;  %v164_v61 = vld [vmem:[%s8647_s4 + $0xc0] sm:$0xff] }
 0x1c1   :  { %v5043_v32 = vpop.f32.mrb[0].mxu1 }
 0x1c2   :  { %v475_v0 = vpop.f32.mrb[1].mxu1  ;;  %v495_v4 = vmul.f32 2.0, %v5043_v32  ;;  %v5627_v32 = vpack.c.bf16 %v147_v20, %v146_v49  ;;  %v152_v49 = vld [vmem:[%s8647_s4 + $0x60] sm:$0xff]  ;;  %v170_v20 = vld [vmem:[%s8647_s4 + $0xf0] sm:$0xff] }
 0x1c3   :  { %v494_v38 = vmul.f32 2.0, %v475_v0  ;;  %v192_v0 = vld [vmem:[%s8647_s4 + $0x1a0] sm:$0xff] }
 0x1c4   :  { %v6809_v26 = vsub.f32 %v495_v4, %v6397_v9  ;;  %v148_v4 = vld [vmem:[%s8647_s4 + $0x40] sm:$0xff]  ;;  %v5653_v13 = vpack.c.bf16 %v193_v1, %v192_v0  ;;  %v205_v0 = vld [vmem:[%s8647_s4 + $0x208] sm:$0xff] }
 0x1c5   :  { %v6789_v5 = vsub.f32 %v494_v38, %v6395_v8  ;;  %v5046_v6 = vpop.f32.mrb[2].mxu1 }
 0x1c6   :  { %v485_v12 = vpop.f32.mrb[3].mxu1  ;;  %v497_v19 = vmul.f32 2.0, %v5046_v6  ;;  %v149_v6 = vld [vmem:[%s8647_s4 + $0x48] sm:$0xff] }
 0x1c7   :  { %848 = vmatmul.mubr.f32.vlgmr.msra.gmra.mrb[8].mxu1 %v6789_v5  ;;  %v496_v27 = vmul.f32 2.0, %v485_v12  ;;  %v5629_v12 = vpack.c.bf16 %v165_v63, %v164_v61  ;;  %v5631_v21 = vpack.c.bf16 %v149_v6, %v148_v4  ;;  %v154_v61 = vld [vmem:[%s8647_s4 + $0x70] sm:$0xff]  ;;  %v204_v63 = vld [vmem:[%s8647_s4 + $0x200] sm:$0xff]  ;;  %v183_v6 = vld [vmem:[%s8647_s4 + $0x158] sm:$0xff] }
 0x1c8   :  { %5616 = vmatpush3.bf16.msra.mxu1 %v5615_v3  ;;  %852 = vmatprep.mubr.f32.mxu1 %v6603_v36  ;;  %v6871_v2 = vsub.f32 %v497_v19, %v6414_v16  ;;  %v153_v19 = vld [vmem:[%s8647_s4 + $0x68] sm:$0xff]  ;;  %v182_v4 = vld [vmem:[%s8647_s4 + $0x150] sm:$0xff] }
 0x1c9   :  { %v5071_v28 = vpop.f32.mrb[4].mxu1  ;;  %5618 = vmatprep.subr.bf16.mxu1 %v5617_v7  ;;  %v6832_v50 = vsub.f32 %v496_v27, %v6412_v15  ;;  %v5651_v7 = vpack.c.bf16 %v175_v60, %v174_v58  ;;  %v194_v27 = vld [vmem:[%s8647_s4 + $0x1b0] sm:$0xff]  ;;  %v199_v58 = vld [vmem:[%s8647_s4 + $0x1d8] sm:$0xff]  ;;  %v5641_v60 = vpack.c.bf16 %v171_v54, %v170_v20  ;;  %v3913_v54 = vld [vmem:[%s8648_s6] ss:$0 sm:$0xff] }
 0x1ca   :  { %v685_v39 = vmul.f32 2.0, %v5071_v28  ;;  %v665_v41 = vpop.f32.mrb[5].mxu1  ;;  %v195_v28 = vld [vmem:[%s8647_s4 + $0x1b8] sm:$0xff] }
 0x1cb   :  { %v684_v42 = vmul.f32 2.0, %v665_v41  ;;  %853 = vmatmul.mubr.f32.gmra.mrb[10].mxu1 %v6809_v26  ;;  %v5657_v41 = vpack.c.bf16 %v195_v28, %v194_v27  ;;  %v184_v27 = vld [vmem:[%s8647_s4 + $0x160] sm:$0xff]  ;;  %v185_v28 = vld [vmem:[%s8647_s4 + $0x168] sm:$0xff] }
 0x1cc   :  { %5620 = vmatpush3.bf16.msra.mxu1 %v5619_v18  ;;  %857 = vmatprep.mubr.f32.mxu1 %v6634_v48  ;;  %v6835_v51 = vsub.f32 %v685_v39, %v6397_v9  ;;  %v177_v18 = vld [vmem:[%s8647_s4 + $0x128] sm:$0xff]  ;;  %v168_v39 = vld [vmem:[%s8647_s4 + $0xe0] sm:$0xff] }
 0x1cd   :  { %v6838_v52 = vsub.f32 %v684_v42, %v6395_v8  ;;  %v5074_v53 = vpop.f32.mrb[6].mxu1  ;;  %5622 = vmatprep.subr.bf16.mxu1 %v5621_v29  ;;  %v5633_v29 = vpack.c.bf16 %v167_v11, %v166_v10  ;;  %v5655_v37 = vpack.c.bf16 %v177_v18, %v176_v17  ;;  %v178_v42 = vld [vmem:[%s8647_s4 + $0x130] sm:$0xff]  ;;  %v200_v10 = vld [vmem:[%s8647_s4 + $0x1e0] sm:$0xff]  ;;  %v201_v11 = vld [vmem:[%s8647_s4 + $0x1e8] sm:$0xff] }
 0x1ce   :  { %v687_v56 = vmul.f32 2.0, %v5074_v53  ;;  %v675_v57 = vpop.f32.mrb[7].mxu1  ;;  %v206_v17 = vld [vmem:[%s8647_s4 + $0x210] sm:$0xff]  ;;  %v207_v18 = vld [vmem:[%s8647_s4 + $0x218] sm:$0xff] }
 0x1cf   :  { %v686_v24 = vmul.f32 2.0, %v675_v57  ;;  %858 = vmatmul.mubr.f32.gmra.mrb[12].mxu1 %v6832_v50  ;;  %5107 = vmatprep.mubr.f32.mxu0 %v6838_v52  ;;  %v181_v57 = vld [vmem:[%s8647_s4 + $0x148] sm:$0xff]  ;;  %v5681_v35 = vpack.c.bf16 %v207_v18, %v206_v17 }
 0x1d0   :  { %5624 = vmatpush3.bf16.msra.mxu1 %v5623_v46  ;;  %862 = vmatprep.mubr.f32.mxu1 %v6625_v45  ;;  %v6874_v38 = vsub.f32 %v687_v56, %v6414_v16  ;;  %v197_v46 = vld [vmem:[%s8647_s4 + $0x1c8] sm:$0xff]  ;;  %v180_v56 = vld [vmem:[%s8647_s4 + $0x140] sm:$0xff] }
 0x1d1   :  { %v6877_v3 = vsub.f32 %v686_v24, %v6412_v15  ;;  %5108 = vmatmul.mubr.f32.vlgmr.msra.gmra.mrb[16].mxu0 %v6835_v51  ;;  %5626 = vmatprep.subr.bf16.mxu1 %v5625_v47  ;;  %v5661_v55 = vpack.c.bf16 %v197_v46, %v196_v44  ;;  %v198_v24 = vld [vmem:[%s8647_s4 + $0x1d0] sm:$0xff]  ;;  %v211_v46 = vld [vmem:[%s8647_s4 + $0x238] sm:$0xff] }
 0x1d2   :  { %5648 = vmatpush3.bf16.msra.mxu0 %v5647_v23  ;;  %v5639_v23 = vpack.c.bf16 %v153_v19, %v152_v49  ;;  %v5665_v1 = vpack.c.bf16 %v199_v58, %v198_v24  ;;  %v213_v49 = vld [vmem:[%s8647_s4 + $0x248] sm:$0xff]  ;;  %v215_v19 = vld [vmem:[%s8647_s4 + $0x258] sm:$0xff] }
 0x1d3   :  { %863 = vmatmul.mubr.f32.gmra.mrb[14].mxu1 %v6871_v2  ;;  %5110 = vmatprep.mubr.f32.mxu0 %v6877_v3 }
 0x1d4   :  { %5628 = vmatpush3.bf16.msra.mxu1 %v5627_v32  ;;  %5650 = vmatprep.subr.bf16.mxu0 %v5649_v62  ;;  %v155_v32 = vld [vmem:[%s8647_s4 + $0x78] sm:$0xff]  ;;  %v5663_v62 = vpack.c.bf16 %v181_v57, %v180_v56 }
 0x1d5   :  { %5111 = vmatmul.mubr.f32.gmra.mrb[18].mxu0 %v6874_v38  ;;  %1047 = vmatprep.mubr.f32.mxu1 %v6583_v25  ;;  %v169_v25 = vld [vmem:[%s8647_s4 + $0xe8] sm:$0xff] }
 0x1d6   :  { %5652 = vmatpush3.bf16.msra.mxu0 %v5651_v7  ;;  %1132 = vmatprep.mubr.f32.mxu0 %v6612_v40  ;;  %v179_v40 = vld [vmem:[%s8647_s4 + $0x138] sm:$0xff]  ;;  %v5637_v47 = vpack.c.bf16 %v169_v25, %v168_v39  ;;  %v5643_v7 = vpack.c.bf16 %v155_v32, %v154_v61  ;;  %v208_v39 = vld [vmem:[%s8647_s4 + $0x220] sm:$0xff]  ;;  %v209_v25 = vld [vmem:[%s8647_s4 + $0x228] sm:$0xff] }
 0x1d7   :  { %5630 = vmatprep.subr.bf16.mxu1 %v5629_v12  ;;  %5654 = vmatprep.subr.bf16.mxu0 %v5653_v13  ;;  %v5659_v53 = vpack.c.bf16 %v179_v40, %v178_v42  ;;  %v5677_v12 = vpack.c.bf16 %v205_v0, %v204_v63  ;;  %v5667_v13 = vpack.c.bf16 %v183_v6, %v182_v4  ;;  %v186_v42 = vld [vmem:[%s8647_s4 + $0x170] sm:$0xff]  ;;  %v187_v40 = vld [vmem:[%s8647_s4 + $0x178] sm:$0xff] }
 0x1d8   :  { %5632 = vmatpush3.bf16.msra.mxu1 %v5631_v21  ;;  %v5669_v21 = vpack.c.bf16 %v201_v11, %v200_v10  ;;  %v5675_v44 = vpack.c.bf16 %v187_v40, %v186_v42 }
 0x1d9   :  { %5634 = vmatprep.subr.bf16.mxu1 %v5633_v29  ;;  %v202_v29 = vld [vmem:[%s8647_s4 + $0x1f0] sm:$0xff] }
 0x1da   :  { %5656 = vmatpush3.bf16.msra.mxu0 %v5655_v37  ;;  %v5671_v37 = vpack.c.bf16 %v185_v28, %v184_v27 }
 0x1db   :  { %5658 = vmatprep.subr.bf16.mxu0 %v5657_v41  ;;  %v5673_v41 = vpack.c.bf16 %v203_v34, %v202_v29 }
 0x1dc   :  { %5636 = vmatpush3.bf16.msra.mxu1 %v5635_v43  ;;  %v5685_v43 = vpack.c.bf16 %v209_v25, %v208_v39 }
 0x1dd   :  { %5638 = vmatprep.subr.bf16.mxu1 %v5637_v47  ;;  %v212_v47 = vld [vmem:[%s8647_s4 + $0x240] sm:$0xff] }
 0x1de   :  { %5660 = vmatpush3.bf16.msra.mxu0 %v5659_v53 }
 0x1df   :  { %5662 = vmatprep.subr.bf16.mxu0 %v5661_v55 }
 0x1e0   :  { %5640 = vmatpush3.bf16.msra.mxu1 %v5639_v23 }
 0x1e1   :  { %5642 = vmatprep.subr.bf16.mxu1 %v5641_v60 }
 0x1e2   :  { %5664 = vmatpush3.bf16.msra.mxu0 %v5663_v62 }
 0x1e3   :  { %5666 = vmatprep.subr.bf16.mxu0 %v5665_v1 }
 0x1e4   :  { %5644 = vmatpush3.bf16.msra.mxu1 %v5643_v7 }
 0x1e5   :  { %5678 = vmatprep.subr.bf16.mxu1 %v5677_v12 }
 0x1e6   :  { %5668 = vmatpush3.bf16.msra.mxu0 %v5667_v13 }
 0x1e7   :  { %1048 = vmatmul.mubr.f32.vlgmr.msra.gmra.mrb[16].mxu1 %v6395_v8  ;;  %5670 = vmatprep.subr.bf16.mxu0 %v5669_v21  ;;  %v210_v8 = vld [vmem:[%s8647_s4 + $0x230] sm:$0xff] }
 0x1e8   :  { %1052 = vmatprep.mubr.f32.mxu1 %v6581_v22  ;;  %5680 = vmatpush3.bf16.msra.mxu1 %v5677_v12  ;;  %v5689_v22 = vpack.c.bf16 %v211_v46, %v210_v8 }
 0x1e9   :  { %5682 = vmatprep.subr.bf16.mxu1 %v5681_v35 }
 0x1ea   :  { %5672 = vmatpush3.bf16.msra.mxu0 %v5671_v37 }
 0x1eb   :  { %1053 = vmatmul.mubr.f32.gmra.mrb[18].mxu1 %v6397_v9  ;;  %5674 = vmatprep.subr.bf16.mxu0 %v5673_v41  ;;  %v5693_v9 = vpack.c.bf16 %v213_v49, %v212_v47 }
 0x1ec   :  { %1057 = vmatprep.mubr.f32.mxu1 %v6598_v33  ;;  %5684 = vmatpush3.bf16.msra.mxu1 %v5681_v35  ;;  %v214_v33 = vld [vmem:[%s8647_s4 + $0x250] sm:$0xff] }
 0x1ed   :  { %5686 = vmatprep.subr.bf16.mxu1 %v5685_v43 }
 0x1ee   :  { %5676 = vmatpush3.bf16.msra.mxu0 %v5675_v44 }
 0x1ef   :  { %1058 = vmatmul.mubr.f32.gmra.mrb[20].mxu1 %v6412_v15  ;;  %v5697_v15 = vpack.c.bf16 %v215_v19, %v214_v33  ;;  %v7071_v33 = vld [vmem:[%s8644_s1 + $0x8] sm:$0xff] }
 0x1f0   :  { %1062 = vmatprep.mubr.f32.mxu1 %v6595_v31  ;;  %5688 = vmatpush3.bf16.msra.mxu1 %v5685_v43  ;;  %v216_v31 = vld [vmem:[%s8647_s4 + $0x260] sm:$0xff] }
 0x1f1   :  { %1133 = vmatmul.mubr.f32.vlgmr.msra.gmra.mrb[20].mxu0 %v6789_v5  ;;  %5690 = vmatprep.subr.bf16.mxu1 %v5689_v22  ;;  %v218_v5 = vld [vmem:[%s8647_s4 + $0x270] sm:$0xff] }
 0x1f2   :  { %1137 = vmatprep.mubr.f32.mxu0 %v6603_v36  ;;  %v217_v36 = vld [vmem:[%s8647_s4 + $0x268] sm:$0xff] }
 0x1f3   :  { %1063 = vmatmul.mubr.f32.gmra.mrb[22].mxu1 %v6414_v16  ;;  %v5701_v16 = vpack.c.bf16 %v217_v36, %v216_v31  ;;  %v7080_v31 = vld [vmem:[%s8644_s1] sm:$0xff] }
 0x1f4   :  { %5692 = vmatpush3.bf16.msra.mxu1 %v5689_v22  ;;  %5145 = vmatprep.mubr.f32.mxu1 %v6838_v52 }
 0x1f5   :  { %1138 = vmatmul.mubr.f32.gmra.mrb[22].mxu0 %v6809_v26  ;;  %5694 = vmatprep.subr.bf16.mxu1 %v5693_v9 }
 0x1f6   :  { %1142 = vmatprep.mubr.f32.mxu0 %v6634_v48  ;;  %v219_v48 = vld [vmem:[%s8647_s4 + $0x278] sm:$0xff] }
 0x1f7   :  { %v5705_v26 = vpack.c.bf16 %v219_v48, %v218_v5 }
 0x1f8   :  { %5696 = vmatpush3.bf16.msra.mxu1 %v5693_v9 }
 0x1f9   :  { %1143 = vmatmul.mubr.f32.gmra.mrb[24].mxu0 %v6832_v50  ;;  %5698 = vmatprep.subr.bf16.mxu1 %v5697_v15 }
 0x1fa   :  { %1147 = vmatprep.mubr.f32.mxu0 %v6625_v45  ;;  %v4305_v45 = vpop.f32.mrb[12].mxu0 }
 0x1fb   :  { %v4306_v50 = vpop.f32.mrb[13].mxu0 }
 0x1fc   :  { %5700 = vmatpush3.bf16.msra.mxu1 %v5697_v15  ;;  %v4307_v52 = vadd.f32 %v4306_v50, %v4305_v45  ;;  %v3918_v15 = vld [vmem:[%s8649_s7] ss:$0 sm:$0xff] }
 0x1fd   :  { %1148 = vmatmul.mubr.f32.gmra.mrb[26].mxu0 %v6871_v2  ;;  %5702 = vmatprep.subr.bf16.mxu1 %v5701_v16  ;;  %v4308_v2 = vpop.f32.mrb[14].mxu0 }
 0x1fe   :  { %5173 = vmatprep.mubr.msk.f32.mxu0 %vm303_vm0, %v6410_v14  ;;  %v4309_v53 = vpop.f32.mrb[15].mxu0  ;;  %v775_v32 = vadd.f32 %v4307_v52, %v3913_v54  ;;  %v6280_v52 = vld [vmem:[%s8643_s0 + $0x8] sm:$0xff] }
 0x1ff   :  { %v4310_v20 = vadd.f32 %v4309_v53, %v4308_v2 }
 0x200   :  { %5704 = vmatpush3.bf16.msra.mxu1 %v5701_v16 }
 0x201   :  { %5706 = vmatprep.subr.bf16.mxu1 %v5705_v26  ;;  %v780_v11 = vadd.f32 %v4310_v20, %v3913_v54 }
 0x204   :  { %5708 = vmatpush3.bf16.msra.mxu1 %v5705_v26 }
 0x207   :  { %5146 = vmatmul.mubr.f32.vlgmr.msra.gmra.mrb[24].mxu1 %v6835_v51  ;;  %v765_v51 = vadd.f32 %v6772_v59, %v3913_v54 }
 0x208   :  { %5148 = vmatprep.mubr.f32.mxu1 %v6877_v3 }
 0x20b   :  { %5149 = vmatmul.mubr.f32.gmra.mrb[26].mxu1 %v6874_v38 }
 0x20c   :  { %5159 = vmatprep.mubr.msk.f32.mxu1 %vm303_vm0, %v6410_v14  ;;  %v770_v14 = vadd.f32 %v6774_v30, %v3913_v54 }
 0x29a   :  { %v4343_v55 = vpop.f32.mrb[8].mxu1 }
 0x29b   :  { %v4344_v56 = vpop.f32.mrb[9].mxu1 }
 0x29c   :  { %v4345_v3 = vadd.f32 %v4344_v56, %v4343_v55  ;;  %v6281_v55 = vld [vmem:[%s8643_s0] sm:$0xff] }
 0x29e   :  { %v4346_v57 = vpop.f32.mrb[10].mxu1  ;;  %v850_v38 = vadd.f32 %v4345_v3, %v765_v51  ;;  %v7098_v51 = vld [vmem:[%s8644_s1 + $0x10] sm:$0xff] }
 0x29f   :  { %v4347_v23 = vpop.f32.mrb[11].mxu1 }
 0x2a0   :  { %v4348_v24 = vadd.f32 %v4347_v23, %v4346_v57 }
 0x2a2   :  { %v4349_v58 = vpop.f32.mrb[12].mxu1  ;;  %v855_v60 = vadd.f32 %v4348_v24, %v770_v14 }
 0x2a3   :  { %v4350_v61 = vpop.f32.mrb[13].mxu1 }
 0x2a4   :  { %v4351_v62 = vadd.f32 %v4350_v61, %v4349_v58  ;;  %v5109_v63 = vpop.f32.mrb[16].mxu0 }
 0x2a5   :  { %v940_v0 = vadd.f32 %v5109_v63, %v855_v60  ;;  %v934_v1 = vpop.f32.mrb[17].mxu0  ;;  %v7106_v60 = vld [vmem:[%s8644_s1 + $0x18] sm:$0xff] }
 0x2a6   :  { %v935_v4 = vadd.f32 %v934_v1, %v850_v38  ;;  %v4352_v6 = vpop.f32.mrb[14].mxu1  ;;  %v860_v7 = vadd.f32 %v4351_v62, %v775_v32 }
 0x2a7   :  { %v3915_v10 = vmul.f32 -1.442695, %v940_v0  ;;  %v4353_v59 = vpop.f32.mrb[15].mxu1 }
 0x2a8   :  { %v3914_v12 = vmul.f32 -1.442695, %v935_v4  ;;  %v4354_v13 = vadd.f32 %v4353_v59, %v4352_v6  ;;  %v5112_v17 = vpop.f32.mrb[18].mxu0  ;;  %v6285_v59 = vld [vmem:[%s8643_s0 + $0x18] sm:$0xff] }
 0x2a9   :  { %6198 = vpow2.f32 %v3915_v10  ;;  %v944_v30 = vpop.f32.mrb[19].mxu0 }
 0x2aa   :  { %6200 = vpow2.f32 %v3914_v12  ;;  %v865_v18 = vadd.f32 %v4354_v13, %v780_v11  ;;  %v945_v21 = vadd.f32 %v944_v30, %v860_v7  ;;  %v6284_v7 = vld [vmem:[%s8643_s0 + $0x10] sm:$0xff] }
 0x2ac   :  { %v950_v27 = vadd.f32 %v5112_v17, %v865_v18  ;;  %v3916_v28 = vmul.f32 -1.442695, %v945_v21 }
 0x2ae   :  { %v3917_v29 = vmul.f32 -1.442695, %v950_v27  ;;  %6202 = vpow2.f32 %v3916_v28 }
 0x2b0   :  { %6204 = vpow2.f32 %v3917_v29 }
 0x2b3   :  { %v6199_v34 = vpop.eup %6198 }
 0x2b4   :  { %v6201_v35 = vpop.eup %6200  ;;  %v966_v37 = vadd.f32 1.0, %v6199_v34 }
 0x2b5   :  { %v965_v39 = vadd.f32 1.0, %v6201_v35 }
 0x2b6   :  { %6206 = vrcp.f32 %v966_v37  ;;  %v236_v37 = vld [vmem:[%s8650_s5 + $0x80] sm:$0xff] }
 0x2b7   :  { %6208 = vrcp.f32 %v965_v39  ;;  %v237_v39 = vld [vmem:[%s8650_s5 + $0x88] sm:$0xff] }
 0x2b8   :  { %v6203_v25 = vpop.eup %6202 }
 0x2b9   :  { %v967_v41 = vadd.f32 1.0, %v6203_v25  ;;  %v7132_v25 = vld [vmem:[%s8645_s2 + $0x8] sm:$0xff] }
 0x2ba   :  { %v6205_v42 = vpop.eup %6204  ;;  %v4407_v40 = vpop.f32.mrb[16].mxu1 }
 0x2bb   :  { %v968_v43 = vadd.f32 1.0, %v6205_v42  ;;  %6210 = vrcp.f32 %v967_v41  ;;  %v4408_v44 = vpop.f32.mrb[17].mxu1  ;;  %v7139_v41 = vld [vmem:[%s8645_s2 + $0x10] sm:$0xff] }
 0x2bc   :  { %v4409_v8 = vadd.f32 %v4408_v44, %v4407_v40  ;;  %v5741_v40 = vpack.c.bf16 %v237_v39, %v236_v37  ;;  %v221_v44 = vld [vmem:[%s8650_s5 + $0x8] sm:$0xff]  ;;  %v250_v39 = vld [vmem:[%s8650_s5 + $0xf0] sm:$0xff] }
 0x2bd   :  { %6212 = vrcp.f32 %v968_v43  ;;  %v220_v43 = vld [vmem:[%s8650_s5] sm:$0xff]  ;;  %v233_v37 = vld [vmem:[%s8650_s5 + $0x68] sm:$0xff] }
 0x2be   :  { %v4410_v46 = vpop.f32.mrb[18].mxu1  ;;  %v1050_v26 = vadd.f32 %v4409_v8, %v3918_v15  ;;  %v238_v8 = vld [vmem:[%s8650_s5 + $0x90] sm:$0xff] }
 0x2bf   :  { %v4411_v22 = vpop.f32.mrb[19].mxu1 }
 0x2c0   :  { %v6207_v47 = vpop.eup %6206  ;;  %v4412_v49 = vadd.f32 %v4411_v22, %v4410_v46  ;;  %v239_v46 = vld [vmem:[%s8650_s5 + $0x98] sm:$0xff] }
 0x2c1   :  { %v6209_v9 = vpop.eup %6208  ;;  %v1263_v19 = vmul.f32 %v7071_v33, %v6207_v47  ;;  %v7158_v22 = vld [vmem:[%s8645_s2 + $0x18] sm:$0xff]  ;;  %v7165_v47 = vld [vmem:[%s8645_s2 + $0x20] sm:$0xff] }
 0x2c2   :  { %v1262_v36 = vmul.f32 %v7080_v31, %v6209_v9  ;;  %v4413_v16 = vpop.f32.mrb[20].mxu1  ;;  %v1055_v14 = vadd.f32 %v4412_v49, %v3918_v15  ;;  %v5743_v49 = vpack.c.bf16 %v221_v44, %v220_v43  ;;  %v5745_v9 = vpack.c.bf16 %v239_v46, %v238_v8  ;;  %v234_v44 = vld [vmem:[%s8650_s5 + $0x70] sm:$0xff]  ;;  %v235_v8 = vld [vmem:[%s8650_s5 + $0x78] sm:$0xff] }
 0x2c3   :  { %v1267_v5 = vsel %vm303_vm0, %v1263_v19, 0.0  ;;  %v4414_v48 = vpop.f32.mrb[21].mxu1  ;;  %v222_v19 = vld [vmem:[%s8650_s5 + $0x10] sm:$0xff]  ;;  %v5771_v46 = vpack.c.bf16 %v235_v8, %v234_v44  ;;  %v277_v44 = vld [vmem:[%s8650_s5 + $0x1c8] sm:$0xff] }
 0x2c4   :  { %v4451_v45 = vpop.f32.mrb[20].mxu0  ;;  %v1266_v50 = vsel %vm303_vm0, %v1262_v36, 0.0  ;;  %v7088_v2 = vadd.f32 %v6280_v52, %v1267_v5  ;;  %v4415_v53 = vadd.f32 %v4414_v48, %v4413_v16  ;;  %v240_v16 = vld [vmem:[%s8650_s5 + $0xa0] sm:$0xff]  ;;  %v241_v5 = vld [vmem:[%s8650_s5 + $0xa8] sm:$0xff]  ;;  %v7195_v52 = vld [vmem:[%s8645_s2 + $0x30] sm:$0xff] }
 0x2c5   :  { %v6211_v20 = vpop.eup %6210  ;;  %v4452_v54 = vpop.f32.mrb[21].mxu0  ;;  %v7093_v56 = vadd.f32 %v6281_v55, %v1266_v50  ;;  %v225_v55 = vld [vmem:[%s8650_s5 + $0x28] sm:$0xff] }
 0x2c6   :  { %v1264_v3 = vmul.f32 %v7098_v51, %v6211_v20  ;;  %v4453_v57 = vadd.f32 %v4452_v54, %v4451_v45  ;;  %v4416_v38 = vpop.f32.mrb[22].mxu1  ;;  %v1060_v12 = vadd.f32 %v4415_v53, %v3918_v15  ;;  %v7186_v45 = vld [vmem:[%s8645_s2 + $0x28] sm:$0xff]  ;;  %v5749_v20 = vpack.c.bf16 %v241_v5, %v240_v16  ;;  %v224_v54 = vld [vmem:[%s8650_s5 + $0x20] sm:$0xff] }
 0x2c7   :  { %v6213_v23 = vpop.eup %6212  ;;  %v5709_v24 = vpack.c.bf16 %v7088_v2, %v7093_v56  ;;  %v4417_v58 = vpop.f32.mrb[23].mxu1 }
 0x2c8   :  { %v1265_v61 = vmul.f32 %v7106_v60, %v6213_v23  ;;  %v4454_v32 = vpop.f32.mrb[22].mxu0  ;;  %v4418_v62 = vadd.f32 %v4417_v58, %v4416_v38  ;;  %v1268_v63 = vsel %vm303_vm0, %v1264_v3, 0.0  ;;  %v1135_v0 = vadd.f32 %v4453_v57, %v1050_v26  ;;  %v242_v57 = vld [vmem:[%s8650_s5 + $0xb0] sm:$0xff]  ;;  %v243_v38 = vld [vmem:[%s8650_s5 + $0xb8] sm:$0xff] }
 0x2c9   :  { %v4455_v1 = vpop.f32.mrb[23].mxu0  ;;  %5710 = vmatprep.subr.bf16.mxu1 %v5709_v24  ;;  %v7114_v10 = vadd.f32 %v6284_v7, %v1268_v63  ;;  %v227_v63 = vld [vmem:[%s8650_s5 + $0x38] sm:$0xff]  ;;  %v228_v7 = vld [vmem:[%s8650_s5 + $0x40] sm:$0xff] }
 0x2ca   :  { %v4456_v4 = vadd.f32 %v4455_v1, %v4454_v32  ;;  %5712 = vmatpush3.bf16.msra.mxu1 %v5709_v24  ;;  %v1269_v6 = vsel %vm303_vm0, %v1265_v61, 0.0  ;;  %v1065_v27 = vadd.f32 %v4418_v62, %v3918_v15  ;;  %v223_v15 = vld [vmem:[%s8650_s5 + $0x18] sm:$0xff]  ;;  %v5751_v61 = vpack.c.bf16 %v225_v55, %v224_v54  ;;  %v226_v62 = vld [vmem:[%s8650_s5 + $0x30] sm:$0xff]  ;;  %v245_v1 = vld [vmem:[%s8650_s5 + $0xc8] sm:$0xff] }
 0x2cb   :  { %v7119_v11 = vadd.f32 %v6285_v59, %v1269_v6  ;;  %v5747_v53 = vpack.c.bf16 %v223_v15, %v222_v19  ;;  %v5753_v32 = vpack.c.bf16 %v243_v38, %v242_v57  ;;  %v229_v59 = vld [vmem:[%s8650_s5 + $0x48] sm:$0xff]  ;;  %v286_v15 = vld [vmem:[%s8650_s5 + $0x210] sm:$0xff] }
 0x2cc   :  { %v4457_v13 = vpop.f32.mrb[24].mxu0  ;;  %v1140_v17 = vadd.f32 %v4456_v4, %v1055_v14  ;;  %v5755_v4 = vpack.c.bf16 %v227_v63, %v226_v62 }
 0x2cd   :  { %v4458_v30 = vpop.f32.mrb[25].mxu0  ;;  %v5713_v18 = vpack.c.bf16 %v7119_v11, %v7114_v10 }
 0x2ce   :  { %v4459_v21 = vadd.f32 %v4458_v30, %v4457_v13  ;;  %v247_v13 = vld [vmem:[%s8650_s5 + $0xd8] sm:$0xff] }
 0x2cf   :  { %5714 = vmatprep.subr.bf16.mxu1 %v5713_v18 }
 0x2d0   :  { %v4460_v28 = vpop.f32.mrb[26].mxu0  ;;  %5716 = vmatpush3.bf16.msra.mxu1 %v5713_v18  ;;  %v1145_v29 = vadd.f32 %v4459_v21, %v1060_v12  ;;  %v246_v12 = vld [vmem:[%s8650_s5 + $0xd0] sm:$0xff]  ;;  %v231_v21 = vld [vmem:[%s8650_s5 + $0x58] sm:$0xff] }
 0x2d1   :  { %v4461_v34 = vpop.f32.mrb[27].mxu0  ;;  %5726 = vmatprep.subr.bf16.mxu1 %v5709_v24  ;;  %v5761_v30 = vpack.c.bf16 %v247_v13, %v246_v12  ;;  %v254_v13 = vld [vmem:[%s8650_s5 + $0x110] sm:$0xff] }
 0x2d2   :  { %v4462_v35 = vadd.f32 %v4461_v34, %v4460_v28  ;;  %v249_v28 = vld [vmem:[%s8650_s5 + $0xe8] sm:$0xff] }
 0x2d3   :  { %5160 = vmatmul.mubr.msk.f32.vlgmr.msra.gmra.mrb[28].mxu1 %vm303_vm0, %v7132_v25 }
 0x2d4   :  { %5728 = vmatpush3.bf16.msra.mxu1 %v5709_v24  ;;  %5162 = vmatprep.mubr.msk.f32.mxu1 %vm303_vm0, %v7139_v41  ;;  %v1150_v42 = vadd.f32 %v4462_v35, %v1065_v27  ;;  %v7216_v24 = vld [vmem:[%s8645_s2 + $0x38] sm:$0xff]  ;;  %v248_v27 = vld [vmem:[%s8650_s5 + $0xe0] sm:$0xff] }
 0x2d5   :  { %5730 = vmatprep.subr.bf16.mxu1 %v5713_v18  ;;  %v5765_v34 = vpack.c.bf16 %v249_v28, %v248_v27  ;;  %v232_v35 = vld [vmem:[%s8650_s5 + $0x60] sm:$0xff] }
 0x2d6   :  { %v256_v28 = vld [vmem:[%s8650_s5 + $0x120] sm:$0xff] }
 0x2d7   :  { %5163 = vmatmul.mubr.msk.f32.gmra.mrb[30].mxu1 %vm303_vm0, %v7158_v22 }
 0x2d8   :  { %5732 = vmatpush3.bf16.msra.mxu1 %v5713_v18  ;;  %5187 = vmatprep.mubr.msk.f32.mxu1 %vm303_vm0, %v7165_v47  ;;  %v230_v18 = vld [vmem:[%s8650_s5 + $0x50] sm:$0xff] }
 0x2d9   :  { %5742 = vmatprep.subr.bf16.mxu1 %v5741_v40  ;;  %v5767_v40 = vpack.c.bf16 %v233_v37, %v232_v35  ;;  %v275_v35 = vld [vmem:[%s8650_s5 + $0x1b8] sm:$0xff] }
 0x2da   :  { %v5147_v36 = vpop.f32.mrb[24].mxu1 }
 0x2db   :  { %v7181_v48 = vadd.f32 %v5147_v36, %v1140_v17  ;;  %v1219_v26 = vpop.f32.mrb[25].mxu1  ;;  %5188 = vmatmul.mubr.msk.f32.vlgmr.msra.gmra.mrb[32].mxu1 %vm303_vm0, %v7186_v45  ;;  %v5759_v17 = vpack.c.bf16 %v229_v59, %v228_v7  ;;  %v287_v36 = vld [vmem:[%s8650_s5 + $0x218] sm:$0xff] }
 0x2dc   :  { %v7190_v50 = vadd.f32 %v1219_v26, %v1135_v0  ;;  %5190 = vmatprep.mubr.msk.f32.mxu1 %vm303_vm0, %v7195_v52  ;;  %5744 = vmatpush3.bf16.msra.mxu1 %v5743_v49  ;;  %v244_v0 = vld [vmem:[%s8650_s5 + $0xc0] sm:$0xff]  ;;  %v271_v7 = vld [vmem:[%s8650_s5 + $0x198] sm:$0xff] }
 0x2dd   :  { %5746 = vmatprep.subr.bf16.mxu1 %v5745_v9  ;;  %v5757_v6 = vpack.c.bf16 %v245_v1, %v244_v0  ;;  %v284_v49 = vld [vmem:[%s8650_s5 + $0x200] sm:$0xff]  ;;  %v285_v9 = vld [vmem:[%s8650_s5 + $0x208] sm:$0xff] }
 0x2de   :  { %v5150_v3 = vpop.f32.mrb[26].mxu1  ;;  %v5805_v19 = vpack.c.bf16 %v285_v9, %v284_v49  ;;  %v252_v1 = vld [vmem:[%s8650_s5 + $0x100] sm:$0xff]  ;;  %v261_v9 = vld [vmem:[%s8650_s5 + $0x148] sm:$0xff] }
 0x2df   :  { %v7211_v23 = vadd.f32 %v5150_v3, %v1150_v42  ;;  %v1229_v14 = vpop.f32.mrb[27].mxu1  ;;  %5191 = vmatmul.mubr.msk.f32.gmra.mrb[34].mxu1 %vm303_vm0, %v7216_v24  ;;  %v251_v42 = vld [vmem:[%s8650_s5 + $0xf8] sm:$0xff]  ;;  %v260_v49 = vld [vmem:[%s8650_s5 + $0x140] sm:$0xff] }
 0x2e0   :  { %v7220_v58 = vadd.f32 %v1229_v14, %v1145_v29  ;;  %5748 = vmatpush3.bf16.msra.mxu1 %v5747_v53  ;;  %v5763_v29 = vpack.c.bf16 %v231_v21, %v230_v18  ;;  %v5769_v43 = vpack.c.bf16 %v251_v42, %v250_v39  ;;  %v5809_v53 = vpack.c.bf16 %v287_v36, %v286_v15  ;;  %v268_v14 = vld [vmem:[%s8650_s5 + $0x180] sm:$0xff]  ;;  %v273_v18 = vld [vmem:[%s8650_s5 + $0x1a8] sm:$0xff]  ;;  %v258_v42 = vld [vmem:[%s8650_s5 + $0x130] sm:$0xff] }
 0x2e1   :  { %5750 = vmatprep.subr.bf16.mxu1 %v5749_v20  ;;  %v5791_v15 = vpack.c.bf16 %v261_v9, %v260_v49  ;;  %v289_v36 = vld [vmem:[%s8650_s5 + $0x228] sm:$0xff] }
 0x2e4   :  { %5752 = vmatpush3.bf16.msra.mxu1 %v5751_v61  ;;  %v269_v61 = vld [vmem:[%s8650_s5 + $0x188] sm:$0xff] }
 0x2e5   :  { %5754 = vmatprep.subr.bf16.mxu1 %v5753_v32  ;;  %v5773_v0 = vpack.c.bf16 %v269_v61, %v268_v14  ;;  %v280_v61 = vld [vmem:[%s8650_s5 + $0x1e0] sm:$0xff] }
 0x2e8   :  { %5756 = vmatpush3.bf16.msra.mxu1 %v5755_v4  ;;  %v253_v4 = vld [vmem:[%s8650_s5 + $0x108] sm:$0xff] }
 0x2e9   :  { %5758 = vmatprep.subr.bf16.mxu1 %v5757_v6  ;;  %v270_v6 = vld [vmem:[%s8650_s5 + $0x190] sm:$0xff]  ;;  %v5775_v59 = vpack.c.bf16 %v253_v4, %v252_v1  ;;  %v264_v1 = vld [vmem:[%s8650_s5 + $0x160] sm:$0xff]  ;;  %v265_v4 = vld [vmem:[%s8650_s5 + $0x168] sm:$0xff] }
 0x2ea   :  { %v5777_v12 = vpack.c.bf16 %v271_v7, %v270_v6  ;;  %v292_v6 = vld [vmem:[%s8650_s5 + $0x240] sm:$0xff]  ;;  %v5799_v7 = vpack.c.bf16 %v265_v4, %v264_v1 }
 0x2ec   :  { %5760 = vmatpush3.bf16.msra.mxu1 %v5759_v17  ;;  %v255_v17 = vld [vmem:[%s8650_s5 + $0x118] sm:$0xff] }
 0x2ed   :  { %5762 = vmatprep.subr.bf16.mxu1 %v5761_v30  ;;  %v272_v30 = vld [vmem:[%s8650_s5 + $0x1a0] sm:$0xff]  ;;  %v5779_v21 = vpack.c.bf16 %v255_v17, %v254_v13  ;;  %v282_v13 = vld [vmem:[%s8650_s5 + $0x1f0] sm:$0xff]  ;;  %v283_v17 = vld [vmem:[%s8650_s5 + $0x1f8] sm:$0xff] }
 0x2ee   :  { %v5781_v27 = vpack.c.bf16 %v273_v18, %v272_v30  ;;  %v5801_v30 = vpack.c.bf16 %v283_v17, %v282_v13  ;;  %v266_v18 = vld [vmem:[%s8650_s5 + $0x170] sm:$0xff] }
 0x2f0   :  { %5764 = vmatpush3.bf16.msra.mxu1 %v5763_v29  ;;  %v257_v29 = vld [vmem:[%s8650_s5 + $0x128] sm:$0xff] }
 0x2f1   :  { %5766 = vmatprep.subr.bf16.mxu1 %v5765_v34  ;;  %v274_v34 = vld [vmem:[%s8650_s5 + $0x1b0] sm:$0xff]  ;;  %v5783_v37 = vpack.c.bf16 %v257_v29, %v256_v28  ;;  %v295_v29 = vld [vmem:[%s8650_s5 + $0x258] sm:$0xff] }
 0x2f2   :  { %v5785_v39 = vpack.c.bf16 %v275_v35, %v274_v34  ;;  %v296_v35 = vld [vmem:[%s8650_s5 + $0x260] sm:$0xff] }
 0x2f4   :  { %5768 = vmatpush3.bf16.msra.mxu1 %v5767_v40  ;;  %v259_v40 = vld [vmem:[%s8650_s5 + $0x138] sm:$0xff] }
 0x2f5   :  { %5770 = vmatprep.subr.bf16.mxu1 %v5769_v43  ;;  %v276_v43 = vld [vmem:[%s8650_s5 + $0x1c0] sm:$0xff]  ;;  %v5787_v8 = vpack.c.bf16 %v259_v40, %v258_v42  ;;  %v298_v42 = vld [vmem:[%s8650_s5 + $0x270] sm:$0xff]  ;;  %v299_v40 = vld [vmem:[%s8650_s5 + $0x278] sm:$0xff] }
 0x2f8   :  { %5772 = vmatpush3.bf16.msra.mxu1 %v5771_v46  ;;  %v5789_v46 = vpack.c.bf16 %v277_v44, %v276_v43  ;;  %v5833_v43 = vpack.c.bf16 %v299_v40, %v298_v42 }
 0x2f9   :  { %5806 = vmatprep.subr.bf16.mxu1 %v5805_v19 }
 0x3a6   :  { %v5161_v16 = vpop.f32.mrb[28].mxu1 }
 0x3a7   :  { %v1340_v5 = vpop.f32.mrb[29].mxu1 }
 0x3a8   :  { %v5717_v26 = vpack.c.bf16 %v5161_v16, %v1340_v5  ;;  %1700 = vmatprep.mubr.f32.mxu1 %v1340_v5  ;;  %v278_v5 = vld [vmem:[%s8650_s5 + $0x1d0] sm:$0xff] }
 0x3a9   :  { %1701 = vmatmul.mubr.f32.vlgmr.msra.gmra.mrb[36].mxu1 %v7093_v56 }
 0x3aa   :  { %v5164_v20 = vpop.f32.mrb[30].mxu1  ;;  %5718 = vmatprep.subr.bf16.mxu0 %v5717_v26  ;;  %1705 = vmatprep.mubr.f32.mxu1 %v5161_v16 }
 0x3ab   :  { %v1350_v54 = vpop.f32.mrb[31].mxu1  ;;  %5720 = vmatpush3.bf16.msra.mxu0 %v5717_v26  ;;  %5808 = vmatpush3.bf16.msra.mxu1 %v5805_v19  ;;  %v288_v19 = vld [vmem:[%s8650_s5 + $0x220] sm:$0xff]  ;;  %v279_v26 = vld [vmem:[%s8650_s5 + $0x1d8] sm:$0xff] }
 0x3ac   :  { %v5721_v55 = vpack.c.bf16 %v5164_v20, %v1350_v54  ;;  %5810 = vmatprep.subr.bf16.mxu1 %v5809_v53  ;;  %v5813_v16 = vpack.c.bf16 %v289_v36, %v288_v19 }
 0x3ad   :  { %1706 = vmatmul.mubr.f32.gmra.mrb[38].mxu1 %v7088_v2 }
 0x3ae   :  { %5722 = vmatprep.subr.bf16.mxu0 %v5721_v55  ;;  %v7290_v3 = vpop.f32.mrb[32].mxu1  ;;  %1710 = vmatprep.mubr.f32.mxu1 %v1350_v54  ;;  %v263_v54 = vld [vmem:[%s8650_s5 + $0x158] sm:$0xff] }
 0x3af   :  { %5724 = vmatpush3.bf16.msra.mxu0 %v5721_v55  ;;  %v1518_v57 = vpop.f32.mrb[33].mxu1  ;;  %5812 = vmatpush3.bf16.msra.mxu1 %v5809_v53  ;;  %v5793_v53 = vpack.c.bf16 %v279_v26, %v278_v5  ;;  %v290_v55 = vld [vmem:[%s8650_s5 + $0x230] sm:$0xff] }
 0x3b0   :  { %v5733_v38 = vpack.c.bf16 %v7290_v3, %v1518_v57  ;;  %5814 = vmatprep.subr.bf16.mxu1 %v5813_v16 }
 0x3b1   :  { %1711 = vmatmul.mubr.f32.gmra.mrb[40].mxu1 %v7114_v10 }
 0x3b2   :  { %5174 = vmatmul.mubr.msk.f32.vlgmr.msra.gmra.mrb[28].mxu0 %vm303_vm0, %v7132_v25  ;;  %v7302_v32 = vpop.f32.mrb[34].mxu1  ;;  %5734 = vmatprep.subr.bf16.mxu0 %v5733_v38 }
 0x3b3   :  { %1715 = vmatprep.mubr.f32.mxu1 %v5164_v20  ;;  %v7304_v62 = vpop.f32.mrb[35].mxu1  ;;  %5736 = vmatpush3.bf16.msra.mxu0 %v5733_v38  ;;  %v262_v20 = vld [vmem:[%s8650_s5 + $0x150] sm:$0xff]  ;;  %v291_v38 = vld [vmem:[%s8650_s5 + $0x238] sm:$0xff] }
 0x3b4   :  { %v5737_v63 = vpack.c.bf16 %v7302_v32, %v7304_v62  ;;  %5176 = vmatprep.mubr.msk.f32.mxu0 %vm303_vm0, %v7139_v41  ;;  %5816 = vmatpush3.bf16.msra.mxu1 %v5813_v16  ;;  %v5817_v14 = vpack.c.bf16 %v291_v38, %v290_v55 }
 0x3b5   :  { %1716 = vmatmul.mubr.f32.gmra.mrb[42].mxu1 %v7119_v11 }
 0x3b6   :  { %5177 = vmatmul.mubr.msk.f32.gmra.mrb[30].mxu0 %vm303_vm0, %v7158_v22  ;;  %5738 = vmatprep.subr.bf16.mxu0 %v5737_v63 }
 0x3b7   :  { %5740 = vmatpush3.bf16.msra.mxu0 %v5737_v63  ;;  %5201 = vmatprep.mubr.msk.f32.mxu0 %vm303_vm0, %v7165_v47  ;;  %v281_v63 = vld [vmem:[%s8650_s5 + $0x1e8] sm:$0xff] }
 0x3b8   :  { %5774 = vmatprep.subr.bf16.mxu0 %v5773_v0  ;;  %5818 = vmatprep.subr.bf16.mxu1 %v5817_v14  ;;  %v5797_v0 = vpack.c.bf16 %v281_v63, %v280_v61 }
 0x3b9   :  { %5820 = vmatpush3.bf16.msra.mxu1 %v5817_v14 }
 0x3ba   :  { %5202 = vmatmul.mubr.msk.f32.vlgmr.msra.gmra.mrb[32].mxu0 %vm303_vm0, %v7186_v45 }
 0x3bb   :  { %5204 = vmatprep.mubr.msk.f32.mxu0 %vm303_vm0, %v7195_v52  ;;  %5776 = vmatpush3.bf16.msra.mxu0 %v5775_v59  ;;  %v293_v59 = vld [vmem:[%s8650_s5 + $0x248] sm:$0xff] }
 0x3bc   :  { %5778 = vmatprep.subr.bf16.mxu0 %v5777_v12  ;;  %v5821_v12 = vpack.c.bf16 %v293_v59, %v292_v6 }
 0x3be   :  { %5205 = vmatmul.mubr.msk.f32.gmra.mrb[34].mxu0 %vm303_vm0, %v7216_v24  ;;  %5822 = vmatprep.subr.bf16.mxu1 %v5821_v12 }
 0x3bf   :  { %1785 = vmatprep.mubr.f32.mxu0 %v1518_v57  ;;  %5780 = vmatpush3.bf16.msra.mxu0 %v5779_v21  ;;  %v5795_v57 = vpack.c.bf16 %v263_v54, %v262_v20  ;;  %v267_v21 = vld [vmem:[%s8650_s5 + $0x178] sm:$0xff] }
 0x3c0   :  { %5782 = vmatprep.subr.bf16.mxu0 %v5781_v27  ;;  %v294_v27 = vld [vmem:[%s8650_s5 + $0x250] sm:$0xff]  ;;  %5824 = vmatpush3.bf16.msra.mxu1 %v5821_v12  ;;  %v5803_v28 = vpack.c.bf16 %v267_v21, %v266_v18 }
 0x3c1   :  { %v5825_v34 = vpack.c.bf16 %v295_v29, %v294_v27  ;;  %v3939_v29 = vld [vmem:[%s8651_s8] ss:$0 sm:$0xff] }
 0x3c3   :  { %5784 = vmatpush3.bf16.msra.mxu0 %v5783_v37  ;;  %5826 = vmatprep.subr.bf16.mxu1 %v5825_v34  ;;  %v297_v37 = vld [vmem:[%s8650_s5 + $0x268] sm:$0xff] }
 0x3c4   :  { %5786 = vmatprep.subr.bf16.mxu0 %v5785_v39  ;;  %5828 = vmatpush3.bf16.msra.mxu1 %v5825_v34  ;;  %v5829_v39 = vpack.c.bf16 %v297_v37, %v296_v35 }
 0x3c6   :  { %5830 = vmatprep.subr.bf16.mxu1 %v5829_v39 }
 0x3c7   :  { %5788 = vmatpush3.bf16.msra.mxu0 %v5787_v8 }
 0x3c8   :  { %5790 = vmatprep.subr.bf16.mxu0 %v5789_v46  ;;  %5832 = vmatpush3.bf16.msra.mxu1 %v5829_v39 }
 0x3c9   :  { %5834 = vmatprep.subr.bf16.mxu1 %v5833_v43 }
 0x3cb   :  { %5792 = vmatpush3.bf16.msra.mxu0 %v5791_v15 }
 0x3cc   :  { %5794 = vmatprep.subr.bf16.mxu0 %v5793_v53  ;;  %5836 = vmatpush3.bf16.msra.mxu1 %v5833_v43 }
 0x3cf   :  { %5796 = vmatpush3.bf16.msra.mxu0 %v5795_v57 }
 0x3d0   :  { %5798 = vmatprep.subr.bf16.mxu0 %v5797_v0 }
 0x3d3   :  { %5800 = vmatpush3.bf16.msra.mxu0 %v5799_v7 }
 0x3d4   :  { %5802 = vmatprep.subr.bf16.mxu0 %v5801_v30 }
 0x3d7   :  { %5804 = vmatpush3.bf16.msra.mxu0 %v5803_v28 }
 0x47c   :  { %v4547_v44 = vpop.f32.mrb[36].mxu1 }
 0x47d   :  { %v4548_v8 = vpop.f32.mrb[37].mxu1 }
 0x47e   :  { %v4549_v46 = vadd.f32 %v4548_v8, %v4547_v44 }
 0x480   :  { %v4550_v49 = vpop.f32.mrb[38].mxu1  ;;  %v1703_v42 = vadd.f32 %v4549_v46, %v3939_v29 }
 0x481   :  { %v4551_v9 = vpop.f32.mrb[39].mxu1 }
 0x482   :  { %v7447_v19 = vadd.f32 %v4551_v9, %v4550_v49 }
 0x484   :  { %v4553_v15 = vpop.f32.mrb[40].mxu1  ;;  %v1708_v49 = vadd.f32 %v7447_v19, %v3939_v29 }
 0x485   :  { %v5175_v36 = vpop.f32.mrb[28].mxu0  ;;  %v4554_v16 = vpop.f32.mrb[41].mxu1 }
 0x486   :  { %v7449_v5 = vadd.f32 %v4554_v16, %v4553_v15  ;;  %v1425_v26 = vpop.f32.mrb[29].mxu0  ;;  %v1445_v54 = vmul.f32 2.0, %v5175_v36 }
 0x487   :  { %v1444_v53 = vmul.f32 2.0, %v1425_v26 }
 0x488   :  { %v4556_v20 = vpop.f32.mrb[42].mxu1  ;;  %v1449_v63 = vsub.f32 %v1445_v54, %v7088_v2  ;;  %v1713_v46 = vadd.f32 %v7449_v5, %v3939_v29 }
 0x489   :  { %v1448_v55 = vsub.f32 %v1444_v53, %v7093_v56  ;;  %v5178_v57 = vpop.f32.mrb[30].mxu0  ;;  %v4557_v38 = vpop.f32.mrb[43].mxu1 }
 0x48a   :  { %v7452_v14 = vadd.f32 %v4557_v38, %v4556_v20  ;;  %v1435_v61 = vpop.f32.mrb[31].mxu0  ;;  %v1447_v59 = vmul.f32 2.0, %v5178_v57 }
 0x48b   :  { %1786 = vmatmul.mubr.f32.vlgmr.msra.gmra.mrb[36].mxu0 %v1448_v55  ;;  %v1446_v0 = vmul.f32 2.0, %v1435_v61 }
 0x48c   :  { %1790 = vmatprep.mubr.f32.mxu0 %v7290_v3  ;;  %v1451_v27 = vsub.f32 %v1447_v59, %v7119_v11 }
 0x48d   :  { %v5203_v1 = vpop.f32.mrb[32].mxu0  ;;  %v1450_v12 = vsub.f32 %v1446_v0, %v7114_v10 }
 0x48e   :  { %v1623_v4 = vmul.f32 2.0, %v5203_v1  ;;  %v1603_v6 = vpop.f32.mrb[33].mxu0  ;;  %v1718_v1 = vadd.f32 %v7452_v14, %v3939_v29 }
 0x48f   :  { %v1622_v7 = vmul.f32 2.0, %v1603_v6  ;;  %1791 = vmatmul.mubr.f32.gmra.mrb[38].mxu0 %v1449_v63 }
 0x490   :  { %1795 = vmatprep.mubr.f32.mxu0 %v7304_v62  ;;  %v1627_v30 = vsub.f32 %v1623_v4, %v7088_v2  ;;  %v7467_v2 = vld [vmem:[%s8645_s2] sm:$0xff] }
 0x491   :  { %v1626_v13 = vsub.f32 %v1622_v7, %v7093_v56  ;;  %v5206_v17 = vpop.f32.mrb[34].mxu0  ;;  %v3920_v56 = vmul.f32 -1.442695, %v7181_v48 }
 0x492   :  { %v1625_v18 = vmul.f32 2.0, %v5206_v17  ;;  %v1613_v3 = vpop.f32.mrb[35].mxu0 }
 0x493   :  { %v1624_v21 = vmul.f32 2.0, %v1613_v3  ;;  %1796 = vmatmul.mubr.f32.gmra.mrb[40].mxu0 %v1450_v12  ;;  %5239 = vmatprep.mubr.f32.mxu1 %v1626_v13  ;;  %6214 = vpow2.f32 %v3920_v56 }
 0x494   :  { %1800 = vmatprep.mubr.f32.mxu0 %v7302_v32  ;;  %5240 = vmatmul.mubr.f32.vlgmr.msra.gmra.mrb[44].mxu1 %v1627_v30  ;;  %v1629_v28 = vsub.f32 %v1625_v18, %v7119_v11  ;;  %v3921_v11 = vmul.f32 -1.442695, %v7220_v58  ;;  %v3922_v32 = vmul.f32 -1.442695, %v7211_v23 }
 0x495   :  { %v1628_v62 = vsub.f32 %v1624_v21, %v7114_v10  ;;  %v3919_v10 = vmul.f32 -1.442695, %v7190_v50 }
 0x497   :  { %1801 = vmatmul.mubr.f32.gmra.mrb[42].mxu0 %v1451_v27  ;;  %5242 = vmatprep.mubr.f32.mxu1 %v1628_v62  ;;  %6216 = vpow2.f32 %v3919_v10 }
 0x498   :  { %5243 = vmatmul.mubr.f32.gmra.mrb[46].mxu1 %v1629_v28  ;;  %5253 = vmatprep.mubr.msk.f32.mxu0 %vm303_vm0, %v7467_v2  ;;  %6218 = vpow2.f32 %v3921_v11 }
 0x499   :  { %5295 = vmatprep.mubr.msk.f32.mxu1 %vm303_vm0, %v7165_v47  ;;  %6220 = vpow2.f32 %v3922_v32 }
 0x49d   :  { %v6215_v35 = vpop.eup %6214 }
 0x49e   :  { %v1251_v50 = vadd.f32 1.0, %v6215_v35 }
 0x4a0   :  { %6222 = vrcp.f32 %v1251_v50 }
 0x4a1   :  { %v6217_v39 = vpop.eup %6216 }
 0x4a2   :  { %v6219_v40 = vpop.eup %6218  ;;  %v1250_v44 = vadd.f32 1.0, %v6217_v39 }
 0x4a3   :  { %v1252_v9 = vadd.f32 1.0, %v6219_v40  ;;  %v6221_v16 = vpop.eup %6220 }
 0x4a4   :  { %6224 = vrcp.f32 %v1250_v44  ;;  %v1253_v38 = vadd.f32 1.0, %v6221_v16 }
 0x4a5   :  { %6226 = vrcp.f32 %v1252_v9 }
 0x4aa   :  { %v6223_v5 = vpop.eup %6222 }
 0x4ab   :  { %v1900_v30 = vsub.f32 1.0, %v6223_v5  ;;  %v1896_v27 = vmul.f32 %v7071_v33, %v6223_v5 }
 0x4ae   :  { %v6225_v13 = vpop.eup %6224 }
 0x4af   :  { %v6227_v17 = vpop.eup %6226  ;;  %v1899_v3 = vsub.f32 1.0, %v6225_v13  ;;  %v1895_v14 = vmul.f32 %v7080_v31, %v6225_v13 }
 0x4b0   :  { %v1901_v32 = vsub.f32 1.0, %v6227_v17  ;;  %v1897_v33 = vmul.f32 %v7098_v51, %v6227_v17  ;;  %v3940_v17 = vld [vmem:[%s8646_s3 + $0x280] sm:$0xff] }
 0x55e   :  { %v4591_v34 = vpop.f32.mrb[36].mxu0 }
 0x55f   :  { %v4592_v37 = vpop.f32.mrb[37].mxu0 }
 0x560   :  { %v4593_v48 = vadd.f32 %v4592_v37, %v4591_v34 }
 0x562   :  { %v4594_v43 = vpop.f32.mrb[38].mxu0  ;;  %v1788_v58 = vadd.f32 %v4593_v48, %v1703_v42 }
 0x563   :  { %v4595_v8 = vpop.f32.mrb[39].mxu0 }
 0x564   :  { %v4596_v23 = vadd.f32 %v4595_v8, %v4594_v43 }
 0x566   :  { %v4597_v15 = vpop.f32.mrb[40].mxu0  ;;  %v1793_v36 = vadd.f32 %v4596_v23, %v1708_v49 }
 0x567   :  { %v4598_v26 = vpop.f32.mrb[41].mxu0  ;;  %v5241_v53 = vpop.f32.mrb[44].mxu1 }
 0x568   :  { %v4599_v20 = vadd.f32 %v4598_v26, %v4597_v15  ;;  %v1878_v54 = vadd.f32 %v5241_v53, %v1793_v36  ;;  %v1872_v55 = vpop.f32.mrb[45].mxu1 }
 0x569   :  { %v1873_v57 = vadd.f32 %v1872_v55, %v1788_v58 }
 0x56a   :  { %6228 = vtanh.f32 %v1878_v54  ;;  %v4600_v61 = vpop.f32.mrb[42].mxu0  ;;  %v1798_v19 = vadd.f32 %v4599_v20, %v1713_v46 }
 0x56b   :  { %6230 = vtanh.f32 %v1873_v57  ;;  %v4601_v63 = vpop.f32.mrb[43].mxu0  ;;  %v5244_v0 = vpop.f32.mrb[46].mxu1 }
 0x56c   :  { %v4602_v4 = vadd.f32 %v4601_v63, %v4600_v61  ;;  %v1882_v6 = vpop.f32.mrb[47].mxu1  ;;  %6232 = vrcp.f32 %v1253_v38 }
 0x56d   :  { %v1883_v7 = vadd.f32 %v1882_v6, %v1798_v19 }
 0x56e   :  { %v1803_v59 = vadd.f32 %v4602_v4, %v1718_v1 }
 0x56f   :  { %6234 = vtanh.f32 %v1883_v7 }
 0x570   :  { %v1888_v12 = vadd.f32 %v5244_v0, %v1803_v59 }
 0x572   :  { %6236 = vtanh.f32 %v1888_v12  ;;  %v3957_v12 = vld [vmem:[%s8646_s3 + $0x308] sm:$0xff] }
 0x574   :  { %v6229_v18 = vpop.eup %6228 }
 0x575   :  { %v6231_v21 = vpop.eup %6230  ;;  %v1904_v62 = vmul.f32 %v6229_v18, %v1900_v30  ;;  %v3941_v30 = vld [vmem:[%s8646_s3 + $0x288] sm:$0xff]  ;;  %v3958_v18 = vld [vmem:[%s8646_s3 + $0x310] sm:$0xff] }
 0x576   :  { %v1903_v28 = vmul.f32 %v6231_v21, %v1899_v3  ;;  %v6233_v10 = vpop.eup %6232  ;;  %v3942_v21 = vld [vmem:[%s8646_s3 + $0x290] sm:$0xff] }
 0x577   :  { %v1908_v56 = vadd.f32 %v1904_v62, %v1896_v27  ;;  %v1902_v34 = vsub.f32 1.0, %v6233_v10  ;;  %v1898_v39 = vmul.f32 %v7106_v60, %v6233_v10  ;;  %v3943_v27 = vld [vmem:[%s8646_s3 + $0x298] sm:$0xff]  ;;  %v3960_v62 = vld [vmem:[%s8646_s3 + $0x320] sm:$0xff]  ;;  %v3962_v10 = vld [vmem:[%s8646_s3 + $0x330] sm:$0xff] }
 0x578   :  { %v1907_v11 = vadd.f32 %v1903_v28, %v1895_v14  ;;  %v3944_v28 = vld [vmem:[%s8646_s3 + $0x2a0] sm:$0xff] }
 0x579   :  { %v6235_v29 = vpop.eup %6234  ;;  %1912 = vst.msk [vmem:[%s8652_s12 + $0x8] sm:$0xff] %vm303_vm0, %v1908_v56 }
 0x57a   :  { %1919 = vrot.lane.b32.xlu0 %v1907_v11, %s6309_s23  ;;  %1911 = vst.msk [vmem:[%s8652_s12] sm:$0xff] %vm303_vm0, %v1907_v11  ;;  %v1905_v31 = vmul.f32 %v6235_v29, %v1901_v32  ;;  %v3946_v32 = vld [vmem:[%s8646_s3 + $0x2b0] sm:$0xff]  ;;  %v3947_v29 = vld [vmem:[%s8646_s3 + $0x2b8] sm:$0xff] }
 0x57c   :  { %v6237_v35 = vpop.eup %6236  ;;  %v1909_v37 = vadd.f32 %v1905_v31, %v1897_v33  ;;  %v3964_v33 = vld [vmem:[%s8646_s3 + $0x340] sm:$0xff]  ;;  %v5883_v31 = vpack.c.bf16 %v3947_v29, %v3946_v32 }
 0x57d   :  { %v1906_v42 = vmul.f32 %v6237_v35, %v1902_v34  ;;  %v3948_v35 = vld [vmem:[%s8646_s3 + $0x2c0] sm:$0xff] }
 0x57e   :  { %1921 = vrot.lane.b32.xlu0 %v1908_v56, %s6309_s23  ;;  %1923 = vrot.lane.b32.xlu1 %v1909_v37, %s6309_s23  ;;  %1913 = vst.msk [vmem:[%s8652_s12 + $0x10] sm:$0xff] %vm303_vm0, %v1909_v37  ;;  %v3945_v56 = vld [vmem:[%s8646_s3 + $0x2a8] sm:$0xff] }
 0x57f   :  { %v1910_v48 = vadd.f32 %v1906_v42, %v1898_v39  ;;  %v3949_v37 = vld [vmem:[%s8646_s3 + $0x2c8] sm:$0xff]  ;;  %v3966_v39 = vld [vmem:[%s8646_s3 + $0x350] sm:$0xff]  ;;  %v3967_v42 = vld [vmem:[%s8646_s3 + $0x358] sm:$0xff] }
 0x581   :  { %1914 = vst.msk [vmem:[%s8652_s12 + $0x18] sm:$0xff] %vm303_vm0, %v1910_v48 }
 0x582   :  { %1925 = vrot.lane.b32.xlu1 %v1910_v48, %s6309_s23  ;;  %v5887_v48 = vpack.c.bf16 %v3949_v37, %v3948_v35 }
 0x588   :  { %v52_v60 = vld [vmem:[%s8644_s1 + $0x20] sm:$0xff]  ;;  %v53_v50 = vld [vmem:[%s8644_s1 + $0x28] sm:$0xff]  ;;  %v54_v9 = vld [vmem:[%s8644_s1 + $0x30] sm:$0xff] }
 0x589   :  { %v2189_v43 = vsel %vm303_vm0, %v52_v60, 0.0  ;;  %v2190_v44 = vsel %vm303_vm0, %v53_v50, 0.0  ;;  %v55_v36 = vld [vmem:[%s8644_s1 + $0x38] sm:$0xff]  ;;  %v2191_v46 = vsel %vm303_vm0, %v54_v9, 0.0  ;;  %v3950_v60 = vld [vmem:[%s8646_s3 + $0x2d0] sm:$0xff]  ;;  %v3968_v50 = vld [vmem:[%s8646_s3 + $0x360] sm:$0xff] }
 0x58a   :  { %v2192_v54 = vsel %vm303_vm0, %v55_v36, 0.0  ;;  %v3970_v9 = vld [vmem:[%s8646_s3 + $0x370] sm:$0xff] }
 0x5ec   :  { %v1920_v51 = vpop.permute.xlu0 %1919 }
 0x5ed   :  { %v1931_v40 = vsel %vm303_vm0, 0.0, %v1920_v51  ;;  %v5889_v51 = vpack.c.bf16 %v3967_v42, %v3966_v39  ;;  %v3972_v42 = vld [vmem:[%s8646_s3 + $0x380] sm:$0xff] }
 0x5ee   :  { %v7512_v58 = vsel %vm1935_vm1, %v1931_v40, 0.0  ;;  %v3951_v40 = vld [vmem:[%s8646_s3 + $0x2d8] sm:$0xff] }
 0x5ef   :  { %v7527_v26 = vadd.f32 %v2189_v43, %v7512_v58  ;;  %v3969_v43 = vld [vmem:[%s8646_s3 + $0x368] sm:$0xff] }
 0x5f0   :  { %v1922_v8 = vpop.permute.xlu0 %1921  ;;  %v1924_v49 = vpop.permute.xlu1 %1923 }
 0x5f1   :  { %v1932_v23 = vsel %vm303_vm0, 0.0, %v1922_v8  ;;  %v1933_v15 = vsel %vm303_vm0, 0.0, %v1924_v49  ;;  %v5893_v8 = vpack.c.bf16 %v3969_v43, %v3968_v50  ;;  %v3952_v49 = vld [vmem:[%s8646_s3 + $0x2e0] sm:$0xff]  ;;  %v3974_v43 = vld [vmem:[%s8646_s3 + $0x390] sm:$0xff] }
 0x5f2   :  { %v7524_v16 = vsel %vm1935_vm1, %v1932_v23, 0.0  ;;  %v7534_v20 = vsel %vm1935_vm1, %v1933_v15, 0.0  ;;  %v3953_v23 = vld [vmem:[%s8646_s3 + $0x2e8] sm:$0xff]  ;;  %v3971_v15 = vld [vmem:[%s8646_s3 + $0x378] sm:$0xff] }
 0x5f3   :  { %v7530_v53 = vadd.f32 %v2190_v44, %v7524_v16  ;;  %v7544_v19 = vadd.f32 %v2191_v46, %v7534_v20  ;;  %v5891_v44 = vpack.c.bf16 %v3951_v40, %v3950_v60  ;;  %v5895_v36 = vpack.c.bf16 %v3953_v23, %v3952_v49  ;;  %v3991_v60 = vld [vmem:[%s8646_s3 + $0x418] sm:$0xff]  ;;  %v3993_v49 = vld [vmem:[%s8646_s3 + $0x428] sm:$0xff] }
 0x5f4   :  { %v1926_v55 = vpop.permute.xlu1 %1925  ;;  %v5897_v46 = vpack.c.bf16 %v3971_v15, %v3970_v9  ;;  %v7784_v23 = vld [vmem:[%s8645_s2 + $0x28] sm:$0xff]  ;;  %v7791_v9 = vld [vmem:[%s8645_s2 + $0x30] sm:$0xff] }
 0x5f5   :  { %v1934_v57 = vsel %vm303_vm0, 0.0, %v1926_v55  ;;  %v5837_v38 = vpack.c.bf16 %v7530_v53, %v7527_v26  ;;  %v3955_v55 = vld [vmem:[%s8646_s3 + $0x2f8] sm:$0xff] }
 0x5f6   :  { %v7541_v61 = vsel %vm1935_vm1, %v1934_v57, 0.0 }
 0x5f7   :  { %v7547_v63 = vadd.f32 %v2192_v54, %v7541_v61  ;;  %5838 = vmatprep.subr.bf16.mxu0 %v5837_v38  ;;  %v3954_v54 = vld [vmem:[%s8646_s3 + $0x2f0] sm:$0xff] }
 0x5f8   :  { %5840 = vmatpush3.bf16.msra.mxu0 %v5837_v38  ;;  %v5899_v57 = vpack.c.bf16 %v3955_v55, %v3954_v54  ;;  %v3977_v54 = vld [vmem:[%s8646_s3 + $0x3a8] sm:$0xff]  ;;  %v3994_v55 = vld [vmem:[%s8646_s3 + $0x430] sm:$0xff] }
 0x5f9   :  { %v5841_v0 = vpack.c.bf16 %v7547_v63, %v7544_v19 }
 0x5fb   :  { %5842 = vmatprep.subr.bf16.mxu0 %v5841_v0 }
 0x5fc   :  { %5844 = vmatpush3.bf16.msra.mxu0 %v5841_v0 }
 0x5ff   :  { %5254 = vmatmul.mubr.msk.f32.vlgmr.msra.gmra.mrb[44].mxu0 %vm303_vm0, %v7132_v25 }
 0x600   :  { %5256 = vmatprep.mubr.msk.f32.mxu0 %vm303_vm0, %v7139_v41 }
 0x603   :  { %5257 = vmatmul.mubr.msk.f32.gmra.mrb[46].mxu0 %vm303_vm0, %v7158_v22 }
 0x604   :  { %5267 = vmatprep.mubr.msk.f32.mxu0 %vm303_vm0, %v7467_v2  ;;  %v3956_v2 = vld [vmem:[%s8646_s3 + $0x300] sm:$0xff] }
 0x605   :  { %v5869_v13 = vpack.c.bf16 %v3957_v12, %v3956_v2  ;;  %v4007_v2 = vld [vmem:[%s8646_s3 + $0x498] sm:$0xff] }
 0x6d2   :  { %v7559_v1 = vpop.f32.mrb[44].mxu0 }
 0x6d3   :  { %v7561_v4 = vpop.f32.mrb[45].mxu0 }
 0x6d4   :  { %v5845_v6 = vpack.c.bf16 %v7559_v1, %v7561_v4 }
 0x6d6   :  { %v7565_v7 = vpop.f32.mrb[46].mxu0  ;;  %5846 = vmatprep.subr.bf16.mxu0 %v5845_v6 }
 0x6d7   :  { %v7567_v59 = vpop.f32.mrb[47].mxu0  ;;  %5848 = vmatpush3.bf16.msra.mxu0 %v5845_v6 }
 0x6d8   :  { %v5849_v5 = vpack.c.bf16 %v7565_v7, %v7567_v59 }
 0x6da   :  { %5850 = vmatprep.subr.bf16.mxu0 %v5849_v5 }
 0x6db   :  { %5852 = vmatpush3.bf16.msra.mxu0 %v5849_v5  ;;  %v4006_v5 = vld [vmem:[%s8646_s3 + $0x490] sm:$0xff] }
 0x6dc   :  { %5854 = vmatprep.subr.bf16.mxu0 %v5837_v38  ;;  %v5937_v12 = vpack.c.bf16 %v4007_v2, %v4006_v5  ;;  %v3978_v5 = vld [vmem:[%s8646_s3 + $0x3b0] sm:$0xff]  ;;  %v3979_v2 = vld [vmem:[%s8646_s3 + $0x3b8] sm:$0xff] }
 0x6de   :  { %5268 = vmatmul.mubr.msk.f32.vlgmr.msra.gmra.mrb[48].mxu0 %vm303_vm0, %v7132_v25  ;;  %v3959_v25 = vld [vmem:[%s8646_s3 + $0x318] sm:$0xff] }
 0x6df   :  { %5856 = vmatpush3.bf16.msra.mxu0 %v5837_v38  ;;  %5270 = vmatprep.mubr.msk.f32.mxu0 %vm303_vm0, %v7139_v41  ;;  %v5871_v41 = vpack.c.bf16 %v3941_v30, %v3940_v17  ;;  %v5873_v3 = vpack.c.bf16 %v3959_v25, %v3958_v18  ;;  %v4004_v38 = vld [vmem:[%s8646_s3 + $0x480] sm:$0xff]  ;;  %v4009_v17 = vld [vmem:[%s8646_s3 + $0x4a8] sm:$0xff]  ;;  %v4010_v18 = vld [vmem:[%s8646_s3 + $0x4b0] sm:$0xff] }
 0x6e0   :  { %5858 = vmatprep.subr.bf16.mxu0 %v5841_v0  ;;  %v4011_v25 = vld [vmem:[%s8646_s3 + $0x4b8] sm:$0xff] }
 0x6e2   :  { %5271 = vmatmul.mubr.msk.f32.gmra.mrb[50].mxu0 %vm303_vm0, %v7158_v22  ;;  %v3961_v22 = vld [vmem:[%s8646_s3 + $0x328] sm:$0xff] }
 0x6e3   :  { %5860 = vmatpush3.bf16.msra.mxu0 %v5841_v0  ;;  %5281 = vmatprep.mubr.msk.f32.mxu0 %vm303_vm0, %v7165_v47  ;;  %v5875_v47 = vpack.c.bf16 %v3943_v27, %v3942_v21  ;;  %v5877_v14 = vpack.c.bf16 %v3961_v22, %v3960_v62  ;;  %v4005_v0 = vld [vmem:[%s8646_s3 + $0x488] sm:$0xff]  ;;  %v4014_v62 = vld [vmem:[%s8646_s3 + $0x4d0] sm:$0xff]  ;;  %v4015_v22 = vld [vmem:[%s8646_s3 + $0x4d8] sm:$0xff] }
 0x6e4   :  { %5870 = vmatprep.subr.bf16.mxu0 %v5869_v13  ;;  %v5933_v6 = vpack.c.bf16 %v4005_v0, %v4004_v38  ;;  %v4008_v13 = vld [vmem:[%s8646_s3 + $0x4a0] sm:$0xff]  ;;  %v4013_v21 = vld [vmem:[%s8646_s3 + $0x4c8] sm:$0xff]  ;;  %v7810_v38 = vld [vmem:[%s8645_s2 + $0x38] sm:$0xff] }
 0x6e5   :  { %v5941_v30 = vpack.c.bf16 %v4009_v17, %v4008_v13  ;;  %v3997_v13 = vld [vmem:[%s8646_s3 + $0x448] sm:$0xff]  ;;  %v5915_v17 = vpack.c.bf16 %v3979_v2, %v3978_v5 }
 0x6e6   :  { %5282 = vmatmul.mubr.msk.f32.vlgmr.msra.gmra.mrb[52].mxu0 %vm303_vm0, %v7186_v45  ;;  %v3963_v45 = vld [vmem:[%s8646_s3 + $0x338] sm:$0xff] }
 0x6e7   :  { %5872 = vmatpush3.bf16.msra.mxu0 %v5871_v41  ;;  %5284 = vmatprep.mubr.msk.f32.mxu0 %vm303_vm0, %v7195_v52  ;;  %v5879_v52 = vpack.c.bf16 %v3945_v56, %v3944_v28  ;;  %v5881_v11 = vpack.c.bf16 %v3963_v45, %v3962_v10  ;;  %v5945_v41 = vpack.c.bf16 %v4011_v25, %v4010_v18  ;;  %v4017_v28 = vld [vmem:[%s8646_s3 + $0x4e8] sm:$0xff]  ;;  %v3980_v18 = vld [vmem:[%s8646_s3 + $0x3c0] sm:$0xff] }
 0x6e8   :  { %5874 = vmatprep.subr.bf16.mxu0 %v5873_v3  ;;  %v4012_v3 = vld [vmem:[%s8646_s3 + $0x4c0] sm:$0xff]  ;;  %v3981_v25 = vld [vmem:[%s8646_s3 + $0x3c8] sm:$0xff] }
 0x6e9   :  { %v5949_v27 = vpack.c.bf16 %v4013_v21, %v4012_v3  ;;  %v3999_v3 = vld [vmem:[%s8646_s3 + $0x458] sm:$0xff]  ;;  %v5919_v21 = vpack.c.bf16 %v3981_v25, %v3980_v18  ;;  %v4022_v18 = vld [vmem:[%s8647_s4 + $0x290] sm:$0xff] }
 0x6ea   :  { %5285 = vmatmul.mubr.msk.f32.gmra.mrb[54].mxu0 %vm303_vm0, %v7216_v24  ;;  %v3965_v24 = vld [vmem:[%s8646_s3 + $0x348] sm:$0xff]  ;;  %v4023_v25 = vld [vmem:[%s8647_s4 + $0x298] sm:$0xff] }
 0x6eb   :  { %5876 = vmatpush3.bf16.msra.mxu0 %v5875_v47  ;;  %2623 = vmatprep.mubr.f32.mxu0 %v7561_v4  ;;  %v5885_v34 = vpack.c.bf16 %v3965_v24, %v3964_v33  ;;  %v5953_v47 = vpack.c.bf16 %v4015_v22, %v4014_v62  ;;  %v3988_v24 = vld [vmem:[%s8646_s3 + $0x400] sm:$0xff]  ;;  %v3982_v62 = vld [vmem:[%s8646_s3 + $0x3d0] sm:$0xff]  ;;  %v3983_v22 = vld [vmem:[%s8646_s3 + $0x3d8] sm:$0xff] }
 0x6ec   :  { %5878 = vmatprep.subr.bf16.mxu0 %v5877_v14  ;;  %v4016_v14 = vld [vmem:[%s8646_s3 + $0x4e0] sm:$0xff] }
 0x6ed   :  { %v5957_v56 = vpack.c.bf16 %v4017_v28, %v4016_v14  ;;  %v4001_v14 = vld [vmem:[%s8646_s3 + $0x468] sm:$0xff]  ;;  %v5923_v28 = vpack.c.bf16 %v3983_v22, %v3982_v62 }
 0x6ef   :  { %5880 = vmatpush3.bf16.msra.mxu0 %v5879_v52 }
 0x6f0   :  { %5882 = vmatprep.subr.bf16.mxu0 %v5881_v11 }
 0x6f3   :  { %5884 = vmatpush3.bf16.msra.mxu0 %v5883_v31  ;;  %v3989_v31 = vld [vmem:[%s8646_s3 + $0x408] sm:$0xff] }
 0x6f4   :  { %5886 = vmatprep.subr.bf16.mxu0 %v5885_v34  ;;  %v5901_v39 = vpack.c.bf16 %v3989_v31, %v3988_v24  ;;  %v3985_v24 = vld [vmem:[%s8646_s3 + $0x3e8] sm:$0xff]  ;;  %v4002_v31 = vld [vmem:[%s8646_s3 + $0x470] sm:$0xff] }
 0x6f7   :  { %5888 = vmatpush3.bf16.msra.mxu0 %v5887_v48  ;;  %v3973_v48 = vld [vmem:[%s8646_s3 + $0x388] sm:$0xff] }
 0x6f8   :  { %5890 = vmatprep.subr.bf16.mxu0 %v5889_v51  ;;  %v3990_v51 = vld [vmem:[%s8646_s3 + $0x410] sm:$0xff]  ;;  %v5903_v40 = vpack.c.bf16 %v3973_v48, %v3972_v42 }
 0x6f9   :  { %v5905_v50 = vpack.c.bf16 %v3991_v60, %v3990_v51 }
 0x6fb   :  { %5892 = vmatpush3.bf16.msra.mxu0 %v5891_v44  ;;  %v3975_v44 = vld [vmem:[%s8646_s3 + $0x398] sm:$0xff] }
 0x6fc   :  { %5894 = vmatprep.subr.bf16.mxu0 %v5893_v8  ;;  %v3992_v8 = vld [vmem:[%s8646_s3 + $0x420] sm:$0xff]  ;;  %v5907_v15 = vpack.c.bf16 %v3975_v44, %v3974_v43  ;;  %v4037_v44 = vld [vmem:[%s8647_s4 + $0x308] sm:$0xff] }
 0x6fd   :  { %v4036_v43 = vld [vmem:[%s8647_s4 + $0x300] sm:$0xff] }
 0x6ff   :  { %5896 = vmatpush3.bf16.msra.mxu0 %v5895_v36  ;;  %v5909_v36 = vpack.c.bf16 %v3993_v49, %v3992_v8 }
 0x700   :  { %5898 = vmatprep.subr.bf16.mxu0 %v5897_v46  ;;  %v3976_v46 = vld [vmem:[%s8646_s3 + $0x3a0] sm:$0xff] }
 0x701   :  { %v5911_v0 = vpack.c.bf16 %v3977_v54, %v3976_v46  ;;  %v5965_v54 = vpack.c.bf16 %v4037_v44, %v4036_v43  ;;  %v4028_v44 = vld [vmem:[%s8647_s4 + $0x2c0] sm:$0xff] }
 0x703   :  { %5900 = vmatpush3.bf16.msra.mxu0 %v5899_v57  ;;  %v3995_v57 = vld [vmem:[%s8646_s3 + $0x438] sm:$0xff] }
 0x704   :  { %5934 = vmatprep.subr.bf16.mxu0 %v5933_v6 }
 0x706   :  { %2624 = vmatmul.mubr.f32.vlgmr.msra.gmra.mrb[56].mxu0 %v7527_v26 }
 0x707   :  { %2628 = vmatprep.mubr.f32.mxu0 %v7559_v1  ;;  %5936 = vmatpush3.bf16.msra.mxu0 %v5933_v6  ;;  %v5913_v6 = vpack.c.bf16 %v3995_v57, %v3994_v55  ;;  %v4020_v55 = vld [vmem:[%s8647_s4 + $0x280] sm:$0xff]  ;;  %v4021_v57 = vld [vmem:[%s8647_s4 + $0x288] sm:$0xff] }
 0x708   :  { %5938 = vmatprep.subr.bf16.mxu0 %v5937_v12  ;;  %v5967_v2 = vpack.c.bf16 %v4021_v57, %v4020_v55  ;;  %v4030_v55 = vld [vmem:[%s8647_s4 + $0x2d0] sm:$0xff]  ;;  %v4031_v57 = vld [vmem:[%s8647_s4 + $0x2d8] sm:$0xff] }
 0x70a   :  { %2629 = vmatmul.mubr.f32.gmra.mrb[58].mxu0 %v7530_v53 }
 0x70b   :  { %2633 = vmatprep.mubr.f32.mxu0 %v7567_v59  ;;  %5940 = vmatpush3.bf16.msra.mxu0 %v5937_v12  ;;  %v3996_v12 = vld [vmem:[%s8646_s3 + $0x440] sm:$0xff] }
 0x70c   :  { %5942 = vmatprep.subr.bf16.mxu0 %v5941_v30 }
 0x70e   :  { %2634 = vmatmul.mubr.f32.gmra.mrb[60].mxu0 %v7544_v19 }
 0x70f   :  { %2638 = vmatprep.mubr.f32.mxu0 %v7565_v7  ;;  %5944 = vmatpush3.bf16.msra.mxu0 %v5941_v30  ;;  %v5917_v30 = vpack.c.bf16 %v3997_v13, %v3996_v12 }
 0x710   :  { %5946 = vmatprep.subr.bf16.mxu0 %v5945_v41 }
 0x712   :  { %2639 = vmatmul.mubr.f32.gmra.mrb[62].mxu0 %v7547_v63 }
 0x713   :  { %5948 = vmatpush3.bf16.msra.mxu0 %v5945_v41  ;;  %v3998_v41 = vld [vmem:[%s8646_s3 + $0x450] sm:$0xff] }
 0x714   :  { %5950 = vmatprep.subr.bf16.mxu0 %v5949_v27 }
 0x717   :  { %5952 = vmatpush3.bf16.msra.mxu0 %v5949_v27  ;;  %v5921_v27 = vpack.c.bf16 %v3999_v3, %v3998_v41  ;;  %v4040_v41 = vld [vmem:[%s8647_s4 + $0x320] sm:$0xff] }
 0x718   :  { %5954 = vmatprep.subr.bf16.mxu0 %v5953_v47 }
 0x71b   :  { %5956 = vmatpush3.bf16.msra.mxu0 %v5953_v47  ;;  %v4000_v47 = vld [vmem:[%s8646_s3 + $0x460] sm:$0xff] }
 0x71c   :  { %5958 = vmatprep.subr.bf16.mxu0 %v5957_v56 }
 0x71f   :  { %5960 = vmatpush3.bf16.msra.mxu0 %v5957_v56  ;;  %v5925_v56 = vpack.c.bf16 %v4001_v14, %v4000_v47 }
 0x7b1   :  { %v7731_v10 = vpop.f32.mrb[48].mxu0 }
 0x7b2   :  { %v7733_v45 = vpop.f32.mrb[49].mxu0  ;;  %v2368_v12 = vmul.f32 2.0, %v7731_v10  ;;  %v4041_v10 = vld [vmem:[%s8647_s4 + $0x328] sm:$0xff] }
 0x7b3   :  { %v5973_v14 = vpack.c.bf16 %v4041_v10, %v4040_v41  ;;  %v4034_v41 = vld [vmem:[%s8647_s4 + $0x2f0] sm:$0xff]  ;;  %v4035_v10 = vld [vmem:[%s8647_s4 + $0x2f8] sm:$0xff] }
 0x7b4   :  { %v7913_v62 = vsub.f32 %v2368_v12, %v7530_v53  ;;  %v4050_v12 = vld [vmem:[%s8647_s4 + $0x370] sm:$0xff] }
 0x7b5   :  { %v7735_v52 = vpop.f32.mrb[50].mxu0 }
 0x7b6   :  { %v7737_v11 = vpop.f32.mrb[51].mxu0 }
 0x7b7   :  { %v2369_v22 = vmul.f32 2.0, %v7737_v11  ;;  %v4043_v11 = vld [vmem:[%s8647_s4 + $0x338] sm:$0xff] }
 0x7b9   :  { %v7739_v32 = vpop.f32.mrb[52].mxu0 }
 0x7ba   :  { %v7741_v29 = vpop.f32.mrb[53].mxu0 }
 0x7bb   :  { %v5861_v33 = vpack.c.bf16 %v7739_v32, %v7741_v29 }
 0x7bd   :  { %v7751_v34 = vpop.f32.mrb[54].mxu0  ;;  %5862 = vmatprep.subr.bf16.mxu1 %v5861_v33 }
 0x7be   :  { %v7753_v35 = vpop.f32.mrb[55].mxu0  ;;  %5864 = vmatpush3.bf16.msra.mxu1 %v5861_v33  ;;  %v3984_v33 = vld [vmem:[%s8646_s3 + $0x3e0] sm:$0xff] }
 0x7bf   :  { %v5865_v37 = vpack.c.bf16 %v7751_v34, %v7753_v35  ;;  %v5927_v48 = vpack.c.bf16 %v3985_v24, %v3984_v33  ;;  %v4042_v33 = vld [vmem:[%s8647_s4 + $0x330] sm:$0xff] }
 0x7c1   :  { %5866 = vmatprep.subr.bf16.mxu1 %v5865_v37 }
 0x7c2   :  { %5868 = vmatpush3.bf16.msra.mxu1 %v5865_v37  ;;  %v4003_v37 = vld [vmem:[%s8646_s3 + $0x478] sm:$0xff] }
 0x7c3   :  { %5902 = vmatprep.subr.bf16.mxu1 %v5901_v39  ;;  %v5929_v60 = vpack.c.bf16 %v4003_v37, %v4002_v31  ;;  %v2370_v31 = vmul.f32 2.0, %v7735_v52  ;;  %v7934_v37 = vsub.f32 %v2369_v22, %v7544_v19  ;;  %v4045_v52 = vld [vmem:[%s8647_s4 + $0x348] sm:$0xff] }
 0x7c5   :  { %5296 = vmatmul.mubr.msk.f32.vlgmr.msra.gmra.mrb[48].mxu1 %vm303_vm0, %v7784_v23 }
 0x7c6   :  { %5904 = vmatpush3.bf16.msra.mxu1 %v5903_v40  ;;  %5298 = vmatprep.mubr.msk.f32.mxu1 %vm303_vm0, %v7791_v9  ;;  %v3986_v40 = vld [vmem:[%s8646_s3 + $0x3f0] sm:$0xff] }
 0x7c7   :  { %5906 = vmatprep.subr.bf16.mxu1 %v5905_v50  ;;  %v3987_v50 = vld [vmem:[%s8646_s3 + $0x3f8] sm:$0xff] }
 0x7c9   :  { %5299 = vmatmul.mubr.msk.f32.gmra.mrb[50].mxu1 %vm303_vm0, %v7810_v38 }
 0x7ca   :  { %5908 = vmatpush3.bf16.msra.mxu1 %v5907_v15  ;;  %2708 = vmatprep.mubr.f32.mxu1 %v7741_v29  ;;  %v5931_v15 = vpack.c.bf16 %v3987_v50, %v3986_v40  ;;  %v7951_v50 = vsub.f32 %v2370_v31, %v7547_v63  ;;  %v4090_v31 = vld [vmem:[%s8647_s4 + $0x4b0] sm:$0xff] }
 0x7cb   :  { %5910 = vmatprep.subr.bf16.mxu1 %v5909_v36  ;;  %v2367_v36 = vmul.f32 2.0, %v7733_v45  ;;  %v4039_v45 = vld [vmem:[%s8647_s4 + $0x318] sm:$0xff] }
 0x7cd   :  { %v7894_v13 = vsub.f32 %v2367_v36, %v7527_v26 }
 0x7ce   :  { %5912 = vmatpush3.bf16.msra.mxu1 %v5911_v0  ;;  %v4038_v0 = vld [vmem:[%s8647_s4 + $0x310] sm:$0xff] }
 0x7cf   :  { %5914 = vmatprep.subr.bf16.mxu1 %v5913_v6 }
 0x7d2   :  { %5916 = vmatpush3.bf16.msra.mxu1 %v5915_v17 }
 0x7d3   :  { %5918 = vmatprep.subr.bf16.mxu1 %v5917_v30  ;;  %v5969_v30 = vpack.c.bf16 %v4039_v45, %v4038_v0  ;;  %v4048_v0 = vld [vmem:[%s8647_s4 + $0x360] sm:$0xff]  ;;  %v4049_v45 = vld [vmem:[%s8647_s4 + $0x368] sm:$0xff] }
 0x7d6   :  { %5920 = vmatpush3.bf16.msra.mxu1 %v5919_v21 }
 0x7d7   :  { %5922 = vmatprep.subr.bf16.mxu1 %v5921_v27  ;;  %v5971_v27 = vpack.c.bf16 %v4023_v25, %v4022_v18 }
 0x7d9   :  { %v4687_v39 = vpop.f32.mrb[56].mxu0 }
 0x7da   :  { %v4688_v42 = vpop.f32.mrb[57].mxu0  ;;  %5924 = vmatpush3.bf16.msra.mxu1 %v5923_v28  ;;  %v4024_v28 = vld [vmem:[%s8647_s4 + $0x2a0] sm:$0xff] }
 0x7db   :  { %v7863_v51 = vadd.f32 %v4688_v42, %v4687_v39  ;;  %5926 = vmatprep.subr.bf16.mxu1 %v5925_v56  ;;  %v4025_v56 = vld [vmem:[%s8647_s4 + $0x2a8] sm:$0xff]  ;;  %v5977_v39 = vpack.c.bf16 %v4043_v11, %v4042_v33  ;;  %v4026_v42 = vld [vmem:[%s8647_s4 + $0x2b0] sm:$0xff]  ;;  %v4088_v33 = vld [vmem:[%s8647_s4 + $0x4a0] sm:$0xff] }
 0x7dc   :  { %v5975_v24 = vpack.c.bf16 %v4025_v56, %v4024_v28  ;;  %v4087_v28 = vld [vmem:[%s8647_s4 + $0x498] sm:$0xff]  ;;  %v4089_v11 = vld [vmem:[%s8647_s4 + $0x4a8] sm:$0xff] }
 0x7dd   :  { %v4690_v8 = vpop.f32.mrb[58].mxu0 }
 0x7de   :  { %v4691_v49 = vpop.f32.mrb[59].mxu0  ;;  %5928 = vmatpush3.bf16.msra.mxu1 %v5927_v48  ;;  %v4027_v48 = vld [vmem:[%s8647_s4 + $0x2b8] sm:$0xff] }
 0x7df   :  { %v7878_v46 = vadd.f32 %v4691_v49, %v4690_v8  ;;  %5930 = vmatprep.subr.bf16.mxu1 %v5929_v60  ;;  %v4044_v60 = vld [vmem:[%s8647_s4 + $0x340] sm:$0xff]  ;;  %v5979_v40 = vpack.c.bf16 %v4027_v48, %v4026_v42  ;;  %v4029_v8 = vld [vmem:[%s8647_s4 + $0x2c8] sm:$0xff]  ;;  %v4046_v49 = vld [vmem:[%s8647_s4 + $0x350] sm:$0xff] }
 0x7e0   :  { %v5981_v43 = vpack.c.bf16 %v4045_v52, %v4044_v60  ;;  %v5983_v36 = vpack.c.bf16 %v4029_v8, %v4028_v44  ;;  %v4093_v48 = vld [vmem:[%s8647_s4 + $0x4c8] sm:$0xff]  ;;  %v4095_v52 = vld [vmem:[%s8647_s4 + $0x4d8] sm:$0xff]  ;;  %v4018_v8 = vld [vmem:[%s8646_s3 + $0x4f0] sm:$0xff] }
 0x7e1   :  { %v4693_v6 = vpop.f32.mrb[60].mxu0 }
 0x7e2   :  { %v4694_v5 = vpop.f32.mrb[61].mxu0  ;;  %5932 = vmatpush3.bf16.msra.mxu1 %v5931_v15  ;;  %v4047_v15 = vld [vmem:[%s8647_s4 + $0x358] sm:$0xff] }
 0x7e3   :  { %v7896_v17 = vadd.f32 %v4694_v5, %v4693_v6  ;;  %5966 = vmatprep.subr.bf16.mxu1 %v5965_v54  ;;  %v5985_v54 = vpack.c.bf16 %v4047_v15, %v4046_v49  ;;  %v5989_v6 = vpack.c.bf16 %v4049_v45, %v4048_v0  ;;  %v4032_v5 = vld [vmem:[%s8647_s4 + $0x2e0] sm:$0xff]  ;;  %v4019_v49 = vld [vmem:[%s8646_s3 + $0x4f8] sm:$0xff]  ;;  %v4069_v0 = vld [vmem:[%s8647_s4 + $0x408] sm:$0xff] }
 0x7e4   :  { %v5961_v15 = vpack.c.bf16 %v4019_v49, %v4018_v8  ;;  %v4060_v8 = vld [vmem:[%s8647_s4 + $0x3c0] sm:$0xff]  ;;  %v4061_v49 = vld [vmem:[%s8647_s4 + $0x3c8] sm:$0xff] }
 0x7e5   :  { %v4696_v3 = vpop.f32.mrb[62].mxu0  ;;  %2709 = vmatmul.mubr.f32.vlgmr.msra.gmra.mrb[52].mxu1 %v7894_v13 }
 0x7e6   :  { %v4697_v21 = vpop.f32.mrb[63].mxu0  ;;  %2713 = vmatprep.mubr.f32.mxu1 %v7739_v32  ;;  %5968 = vmatpush3.bf16.msra.mxu1 %v5967_v2  ;;  %v4033_v2 = vld [vmem:[%s8647_s4 + $0x2e8] sm:$0xff] }
 0x7e7   :  { %v7916_v47 = vadd.f32 %v4697_v21, %v4696_v3  ;;  %5970 = vmatprep.subr.bf16.mxu1 %v5969_v30  ;;  %v4051_v30 = vld [vmem:[%s8647_s4 + $0x378] sm:$0xff]  ;;  %v5991_v18 = vpack.c.bf16 %v4033_v2, %v4032_v5  ;;  %v4084_v3 = vld [vmem:[%s8647_s4 + $0x480] sm:$0xff]  ;;  %v4085_v21 = vld [vmem:[%s8647_s4 + $0x488] sm:$0xff]  ;;  %5962 = vmatprep.subr.bf16.mxu0 %v5961_v15 }
 0x7e8   :  { %v5993_v25 = vpack.c.bf16 %v4051_v30, %v4050_v12  ;;  %v6029_v22 = vpack.c.bf16 %v4085_v21, %v4084_v3  ;;  %5964 = vmatpush3.bf16.msra.mxu0 %v5961_v15  ;;  %v4052_v2 = vld [vmem:[%s8647_s4 + $0x380] sm:$0xff]  ;;  %v4053_v12 = vld [vmem:[%s8647_s4 + $0x388] sm:$0xff]  ;;  %v4078_v15 = vld [vmem:[%s8647_s4 + $0x450] sm:$0xff] }
 0x7e9   :  { %2714 = vmatmul.mubr.f32.gmra.mrb[54].mxu1 %v7913_v62  ;;  %v5999_v3 = vpack.c.bf16 %v4053_v12, %v4052_v2  ;;  %v4064_v2 = vld [vmem:[%s8647_s4 + $0x3e0] sm:$0xff]  ;;  %v4065_v12 = vld [vmem:[%s8647_s4 + $0x3e8] sm:$0xff] }
 0x7ea   :  { %2718 = vmatprep.mubr.f32.mxu1 %v7753_v35  ;;  %5972 = vmatpush3.bf16.msra.mxu1 %v5971_v27  ;;  %v5995_v27 = vpack.c.bf16 %v4035_v10, %v4034_v41 }
 0x7eb   :  { %5974 = vmatprep.subr.bf16.mxu1 %v5973_v14  ;;  %v4086_v14 = vld [vmem:[%s8647_s4 + $0x490] sm:$0xff] }
 0x7ec   :  { %v6033_v56 = vpack.c.bf16 %v4087_v28, %v4086_v14  ;;  %v4054_v28 = vld [vmem:[%s8647_s4 + $0x390] sm:$0xff] }
 0x7ed   :  { %2719 = vmatmul.mubr.f32.gmra.mrb[56].mxu1 %v7934_v37 }
 0x7ee   :  { %2723 = vmatprep.mubr.f32.mxu1 %v7751_v34  ;;  %5976 = vmatpush3.bf16.msra.mxu1 %v5975_v24  ;;  %v6037_v24 = vpack.c.bf16 %v4089_v11, %v4088_v33 }
 0x7ef   :  { %5978 = vmatprep.subr.bf16.mxu1 %v5977_v39  ;;  %v4091_v39 = vld [vmem:[%s8647_s4 + $0x4b8] sm:$0xff] }
 0x7f0   :  { %v6041_v42 = vpack.c.bf16 %v4091_v39, %v4090_v31 }
 0x7f1   :  { %2724 = vmatmul.mubr.f32.gmra.mrb[58].mxu1 %v7951_v50 }
 0x7f2   :  { %5980 = vmatpush3.bf16.msra.mxu1 %v5979_v40  ;;  %2908 = vmatprep.mubr.f32.mxu1 %v7561_v4  ;;  %v5987_v4 = vpack.c.bf16 %v4031_v57, %v4030_v55  ;;  %v4068_v57 = vld [vmem:[%s8647_s4 + $0x400] sm:$0xff] }
 0x7f3   :  { %5982 = vmatprep.subr.bf16.mxu1 %v5981_v43  ;;  %v4097_v43 = vld [vmem:[%s8647_s4 + $0x4e8] sm:$0xff]  ;;  %v5997_v45 = vpack.c.bf16 %v4069_v0, %v4068_v57  ;;  %v4062_v57 = vld [vmem:[%s8647_s4 + $0x3d0] sm:$0xff]  ;;  %v4063_v0 = vld [vmem:[%s8647_s4 + $0x3d8] sm:$0xff] }
 0x7f5   :  { %5998 = vmatprep.subr.bf16.mxu0 %v5997_v45  ;;  %v4080_v45 = vld [vmem:[%s8647_s4 + $0x460] sm:$0xff] }
 0x7f6   :  { %5984 = vmatpush3.bf16.msra.mxu1 %v5983_v36  ;;  %v4098_v36 = vld [vmem:[%s8647_s4 + $0x4f0] sm:$0xff] }
 0x7f7   :  { %5986 = vmatprep.subr.bf16.mxu1 %v5985_v54  ;;  %v4099_v54 = vld [vmem:[%s8647_s4 + $0x4f8] sm:$0xff] }
 0x7f8   :  { %v6057_v55 = vpack.c.bf16 %v4099_v54, %v4098_v36  ;;  %v4079_v36 = vld [vmem:[%s8647_s4 + $0x458] sm:$0xff]  ;;  %v6015_v54 = vpack.c.bf16 %v4061_v49, %v4060_v8 }
 0x7fa   :  { %5988 = vmatpush3.bf16.msra.mxu1 %v5987_v4 }
 0x7fb   :  { %5990 = vmatprep.subr.bf16.mxu1 %v5989_v6 }
 0x7fe   :  { %5992 = vmatpush3.bf16.msra.mxu1 %v5991_v18  ;;  %v4070_v18 = vld [vmem:[%s8647_s4 + $0x410] sm:$0xff] }
 0x7ff   :  { %5994 = vmatprep.subr.bf16.mxu1 %v5993_v25  ;;  %v4071_v25 = vld [vmem:[%s8647_s4 + $0x418] sm:$0xff] }
 0x800   :  { %v6001_v14 = vpack.c.bf16 %v4071_v25, %v4070_v18  ;;  %v4083_v18 = vld [vmem:[%s8647_s4 + $0x478] sm:$0xff]  ;;  %v6023_v25 = vpack.c.bf16 %v4065_v12, %v4064_v2 }
 0x802   :  { %5996 = vmatpush3.bf16.msra.mxu1 %v5995_v27 }
 0x803   :  { %6030 = vmatprep.subr.bf16.mxu1 %v6029_v22 }
 0x805   :  { %2909 = vmatmul.mubr.f32.vlgmr.msra.gmra.mrb[60].mxu1 %v7527_v26 }
 0x806   :  { %2913 = vmatprep.mubr.f32.mxu1 %v7559_v1  ;;  %6032 = vmatpush3.bf16.msra.mxu1 %v6029_v22  ;;  %v4092_v1 = vld [vmem:[%s8647_s4 + $0x4c0] sm:$0xff] }
 0x807   :  { %6034 = vmatprep.subr.bf16.mxu1 %v6033_v56  ;;  %v6045_v60 = vpack.c.bf16 %v4093_v48, %v4092_v1  ;;  %v4057_v1 = vld [vmem:[%s8647_s4 + $0x3a8] sm:$0xff] }
 0x809   :  { %2914 = vmatmul.mubr.f32.gmra.mrb[62].mxu1 %v7530_v53 }
 0x80a   :  { %2918 = vmatprep.mubr.f32.mxu1 %v7567_v59  ;;  %6036 = vmatpush3.bf16.msra.mxu1 %v6033_v56  ;;  %v4094_v59 = vld [vmem:[%s8647_s4 + $0x4d0] sm:$0xff]  ;;  %v4055_v56 = vld [vmem:[%s8647_s4 + $0x398] sm:$0xff] }
 0x80b   :  { %6038 = vmatprep.subr.bf16.mxu1 %v6037_v24  ;;  %v6049_v40 = vpack.c.bf16 %v4095_v52, %v4094_v59  ;;  %v4058_v59 = vld [vmem:[%s8647_s4 + $0x3b0] sm:$0xff]  ;;  %v4059_v52 = vld [vmem:[%s8647_s4 + $0x3b8] sm:$0xff] }
 0x80d   :  { %2919 = vmatmul.mubr.f32.gmra.mrb[64].mxu1 %v7544_v19 }
 0x80e   :  { %2923 = vmatprep.mubr.f32.mxu1 %v7565_v7  ;;  %6040 = vmatpush3.bf16.msra.mxu1 %v6037_v24  ;;  %v4096_v7 = vld [vmem:[%s8647_s4 + $0x4e0] sm:$0xff]  ;;  %v6003_v24 = vpack.c.bf16 %v4055_v56, %v4054_v28 }
 0x80f   :  { %6042 = vmatprep.subr.bf16.mxu1 %v6041_v42  ;;  %v6053_v44 = vpack.c.bf16 %v4097_v43, %v4096_v7  ;;  %v4077_v7 = vld [vmem:[%s8647_s4 + $0x448] sm:$0xff]  ;;  %v6011_v43 = vpack.c.bf16 %v4059_v52, %v4058_v59 }
 0x811   :  { %2924 = vmatmul.mubr.f32.gmra.mrb[66].mxu1 %v7547_v63 }
 0x812   :  { %6044 = vmatpush3.bf16.msra.mxu1 %v6041_v42  ;;  %v4056_v42 = vld [vmem:[%s8647_s4 + $0x3a0] sm:$0xff] }
 0x813   :  { %6046 = vmatprep.subr.bf16.mxu1 %v6045_v60  ;;  %v6007_v48 = vpack.c.bf16 %v4057_v1, %v4056_v42 }
 0x816   :  { %6048 = vmatpush3.bf16.msra.mxu1 %v6045_v60 }
 0x817   :  { %6050 = vmatprep.subr.bf16.mxu1 %v6049_v40 }
 0x81a   :  { %6052 = vmatpush3.bf16.msra.mxu1 %v6049_v40  ;;  %v8114_v40 = vld [vmem:[%s8645_s2] sm:$0xff] }
 0x81b   :  { %6054 = vmatprep.subr.bf16.mxu1 %v6053_v44 }
 0x81e   :  { %6056 = vmatpush3.bf16.msra.mxu1 %v6053_v44 }
 0x81f   :  { %6058 = vmatprep.subr.bf16.mxu1 %v6057_v55 }
 0x822   :  { %6060 = vmatpush3.bf16.msra.mxu1 %v6057_v55  ;;  %v6017_v55 = vpack.c.bf16 %v4079_v36, %v4078_v15 }
 0x898   :  { %v5297_v4 = vpop.f32.mrb[48].mxu1 }
 0x899   :  { %v2546_v6 = vmul.f32 2.0, %v5297_v4  ;;  %v2526_v5 = vpop.f32.mrb[49].mxu1  ;;  %v4081_v4 = vld [vmem:[%s8647_s4 + $0x468] sm:$0xff] }
 0x89a   :  { %v2545_v30 = vmul.f32 2.0, %v2526_v5  ;;  %v6021_v5 = vpack.c.bf16 %v4081_v4, %v4080_v45 }
 0x89b   :  { %v2550_v21 = vsub.f32 %v2546_v6, %v7530_v53  ;;  %v4073_v53 = vld [vmem:[%s8647_s4 + $0x428] sm:$0xff]  ;;  %v6019_v6 = vpack.c.bf16 %v4063_v0, %v4062_v57 }
 0x89c   :  { %v2549_v41 = vsub.f32 %v2545_v30, %v7527_v26  ;;  %v5300_v10 = vpop.f32.mrb[50].mxu1  ;;  %v4072_v26 = vld [vmem:[%s8647_s4 + $0x420] sm:$0xff]  ;;  %v4082_v30 = vld [vmem:[%s8647_s4 + $0x470] sm:$0xff] }
 0x89d   :  { %v2548_v27 = vmul.f32 2.0, %v5300_v10  ;;  %v2536_v22 = vpop.f32.mrb[51].mxu1  ;;  %v6005_v39 = vpack.c.bf16 %v4073_v53, %v4072_v26  ;;  %v4066_v10 = vld [vmem:[%s8647_s4 + $0x3f0] sm:$0xff] }
 0x89e   :  { %v2547_v33 = vmul.f32 2.0, %v2536_v22  ;;  %5333 = vmatprep.mubr.f32.mxu0 %v2549_v41  ;;  %5371 = vmatprep.mubr.f32.mxu1 %v2549_v41  ;;  %v6025_v41 = vpack.c.bf16 %v4083_v18, %v4082_v30 }
 0x89f   :  { %5334 = vmatmul.mubr.f32.vlgmr.msra.gmra.mrb[64].mxu0 %v2550_v21  ;;  %5372 = vmatmul.mubr.f32.vlgmr.msra.gmra.mrb[68].mxu1 %v2550_v21  ;;  %v2552_v31 = vsub.f32 %v2548_v27, %v7547_v63  ;;  %v4075_v63 = vld [vmem:[%s8647_s4 + $0x438] sm:$0xff]  ;;  %v4199_v21 = vld [vmem:[%s8648_s6 + $0x1] ss:$0 sm:$0xff] }
 0x8a0   :  { %v2551_v11 = vsub.f32 %v2547_v33, %v7544_v19  ;;  %6000 = vmatpush3.bf16.msra.mxu0 %v5999_v3  ;;  %v4074_v19 = vld [vmem:[%s8647_s4 + $0x430] sm:$0xff]  ;;  %v4067_v3 = vld [vmem:[%s8647_s4 + $0x3f8] sm:$0xff]  ;;  %v2626_v28 = vadd.f32 %v7863_v51, %v4199_v21  ;;  %v2636_v1 = vadd.f32 %v7896_v17, %v4199_v21 }
 0x8a1   :  { %6002 = vmatprep.subr.bf16.mxu0 %v6001_v14  ;;  %v6009_v60 = vpack.c.bf16 %v4075_v63, %v4074_v19  ;;  %v6027_v22 = vpack.c.bf16 %v4067_v3, %v4066_v10 }
 0x8a2   :  { %5336 = vmatprep.mubr.f32.mxu0 %v2551_v11  ;;  %5374 = vmatprep.mubr.f32.mxu1 %v2551_v11  ;;  %v2631_v11 = vadd.f32 %v7878_v46, %v4199_v21  ;;  %v2641_v46 = vadd.f32 %v7916_v47, %v4199_v21 }
 0x8a3   :  { %5337 = vmatmul.mubr.f32.gmra.mrb[66].mxu0 %v2552_v31  ;;  %5375 = vmatmul.mubr.f32.gmra.mrb[70].mxu1 %v2552_v31 }
 0x8a4   :  { %6004 = vmatpush3.bf16.msra.mxu0 %v6003_v24  ;;  %2993 = vmatprep.mubr.f32.mxu0 %v7741_v29  ;;  %v4076_v29 = vld [vmem:[%s8647_s4 + $0x440] sm:$0xff] }
 0x8a5   :  { %6006 = vmatprep.subr.bf16.mxu0 %v6005_v39  ;;  %5385 = vmatprep.mubr.msk.f32.mxu1 %vm303_vm0, %v8114_v40  ;;  %v6013_v44 = vpack.c.bf16 %v4077_v7, %v4076_v29 }
 0x8a8   :  { %6008 = vmatpush3.bf16.msra.mxu0 %v6007_v48 }
 0x8a9   :  { %6010 = vmatprep.subr.bf16.mxu0 %v6009_v60 }
 0x8ac   :  { %6012 = vmatpush3.bf16.msra.mxu0 %v6011_v43 }
 0x8ad   :  { %6014 = vmatprep.subr.bf16.mxu0 %v6013_v44 }
 0x8b0   :  { %6016 = vmatpush3.bf16.msra.mxu0 %v6015_v54 }
 0x8b1   :  { %6018 = vmatprep.subr.bf16.mxu0 %v6017_v55 }
 0x8b4   :  { %6020 = vmatpush3.bf16.msra.mxu0 %v6019_v6 }
 0x8b5   :  { %6022 = vmatprep.subr.bf16.mxu0 %v6021_v5 }
 0x8b8   :  { %6024 = vmatpush3.bf16.msra.mxu0 %v6023_v25  ;;  %v4731_v27 = vpop.f32.mrb[52].mxu1 }
 0x8b9   :  { %v4732_v14 = vpop.f32.mrb[53].mxu1  ;;  %6026 = vmatprep.subr.bf16.mxu0 %v6025_v41 }
 0x8ba   :  { %v4733_v56 = vadd.f32 %v4732_v14, %v4731_v27  ;;  %v8197_v14 = vld [vmem:[%s8644_s1 + $0x28] sm:$0xff] }
 0x8bc   :  { %6028 = vmatpush3.bf16.msra.mxu0 %v6027_v22  ;;  %v4734_v33 = vpop.f32.mrb[54].mxu1  ;;  %v2711_v26 = vadd.f32 %v4733_v56, %v2626_v28  ;;  %v8203_v56 = vld [vmem:[%s8644_s1 + $0x20] sm:$0xff] }
 0x8bd   :  { %v4735_v53 = vpop.f32.mrb[55].mxu1 }
 0x8be   :  { %v4736_v24 = vadd.f32 %v4735_v53, %v4734_v33 }
 0x8bf   :  { %2994 = vmatmul.mubr.f32.vlgmr.msra.gmra.mrb[68].mxu0 %v7894_v13 }
 0x8c0   :  { %2998 = vmatprep.mubr.f32.mxu0 %v7739_v32  ;;  %v4737_v31 = vpop.f32.mrb[56].mxu1  ;;  %v2716_v39 = vadd.f32 %v4736_v24, %v2631_v11 }
 0x8c1   :  { %v4738_v42 = vpop.f32.mrb[57].mxu1 }
 0x8c2   :  { %v4739_v19 = vadd.f32 %v4738_v42, %v4737_v31 }
 0x8c3   :  { %2999 = vmatmul.mubr.f32.gmra.mrb[70].mxu0 %v7913_v62 }
 0x8c4   :  { %3003 = vmatprep.mubr.f32.mxu0 %v7753_v35  ;;  %v4740_v51 = vpop.f32.mrb[58].mxu1  ;;  %v2721_v63 = vadd.f32 %v4739_v19, %v2636_v1  ;;  %v8217_v1 = vld [vmem:[%s8644_s1 + $0x38] sm:$0xff] }
 0x8c5   :  { %v4741_v48 = vpop.f32.mrb[59].mxu1 }
 0x8c6   :  { %v4742_v60 = vadd.f32 %v4741_v48, %v4740_v51 }
 0x8c7   :  { %3004 = vmatmul.mubr.f32.gmra.mrb[72].mxu0 %v7934_v37 }
 0x8c8   :  { %3008 = vmatprep.mubr.f32.mxu0 %v7751_v34  ;;  %v2726_v32 = vadd.f32 %v4742_v60, %v2641_v46  ;;  %v8226_v46 = vld [vmem:[%s8644_s1 + $0x30] sm:$0xff] }
 0x8cb   :  { %3009 = vmatmul.mubr.f32.gmra.mrb[74].mxu0 %v7951_v50 }
 0x8cc   :  { %5399 = vmatprep.mubr.msk.f32.mxu0 %vm303_vm0, %v8114_v40 }
 0x8d8   :  { %v4795_v13 = vpop.f32.mrb[60].mxu1 }
 0x8d9   :  { %v4796_v17 = vpop.f32.mrb[61].mxu1 }
 0x8da   :  { %v4797_v62 = vadd.f32 %v4796_v17, %v4795_v13 }
 0x8dc   :  { %v4798_v35 = vpop.f32.mrb[62].mxu1 }
 0x8dd   :  { %v4799_v59 = vpop.f32.mrb[63].mxu1 }
 0x8de   :  { %v8182_v52 = vadd.f32 %v4799_v59, %v4798_v35 }
 0x8e0   :  { %v4801_v29 = vpop.f32.mrb[64].mxu1 }
 0x8e1   :  { %v4802_v47 = vpop.f32.mrb[65].mxu1 }
 0x8e2   :  { %v8184_v7 = vadd.f32 %v4802_v47, %v4801_v29 }
 0x8e4   :  { %v4804_v37 = vpop.f32.mrb[66].mxu1 }
 0x8e5   :  { %v4805_v43 = vpop.f32.mrb[67].mxu1 }
 0x8e6   :  { %v8186_v34 = vadd.f32 %v4805_v43, %v4804_v37 }
 0x972   :  { %v5335_v44 = vpop.f32.mrb[64].mxu0  ;;  %v8188_v50 = vpop.f32.mrb[68].mxu1 }
 0x973   :  { %v2801_v8 = vadd.f32 %v5335_v44, %v2716_v39  ;;  %v2795_v40 = vpop.f32.mrb[65].mxu0  ;;  %v3080_v49 = vpop.f32.mrb[69].mxu1 }
 0x974   :  { %v2796_v15 = vadd.f32 %v2795_v40, %v2711_v26  ;;  %v4204_v26 = vld [vmem:[%s8649_s7 + $0x1] ss:$0 sm:$0xff] }
 0x975   :  { %v4201_v36 = vmul.f32 -1.442695, %v2801_v8  ;;  %v2911_v48 = vadd.f32 %v4797_v62, %v4204_v26  ;;  %v2916_v47 = vadd.f32 %v8182_v52, %v4204_v26 }
 0x976   :  { %v4200_v54 = vmul.f32 -1.442695, %v2796_v15  ;;  %v5338_v55 = vpop.f32.mrb[66].mxu0  ;;  %v8190_v57 = vpop.f32.mrb[70].mxu1 }
 0x977   :  { %6238 = vpow2.f32 %v4201_v36  ;;  %v2811_v0 = vadd.f32 %v5338_v55, %v2726_v32  ;;  %v2805_v45 = vpop.f32.mrb[67].mxu0  ;;  %v8192_v4 = vpop.f32.mrb[71].mxu1  ;;  %v4117_v55 = vld [vmem:[%s8650_s5 + $0x308] sm:$0xff] }
 0x978   :  { %6240 = vpow2.f32 %v4200_v54  ;;  %v2806_v6 = vadd.f32 %v2805_v45, %v2721_v63  ;;  %v4116_v54 = vld [vmem:[%s8650_s5 + $0x300] sm:$0xff] }
 0x979   :  { %v4203_v5 = vmul.f32 -1.442695, %v2811_v0 }
 0x97a   :  { %v4202_v2 = vmul.f32 -1.442695, %v2806_v6 }
 0x97b   :  { %6242 = vpow2.f32 %v4203_v5  ;;  %v8268_v5 = vld [vmem:[%s8645_s2 + $0x10] sm:$0xff] }
 0x97c   :  { %6244 = vpow2.f32 %v4202_v2  ;;  %v6093_v2 = vpack.c.bf16 %v4117_v55, %v4116_v54  ;;  %v4114_v55 = vld [vmem:[%s8650_s5 + $0x2f0] sm:$0xff] }
 0x981   :  { %v6239_v12 = vpop.eup %6238 }
 0x982   :  { %v6241_v30 = vpop.eup %6240  ;;  %v2827_v18 = vadd.f32 1.0, %v6239_v12  ;;  %v4100_v12 = vld [vmem:[%s8650_s5 + $0x280] sm:$0xff] }
 0x983   :  { %v2826_v25 = vadd.f32 1.0, %v6241_v30  ;;  %v4118_v30 = vld [vmem:[%s8650_s5 + $0x310] sm:$0xff] }
 0x984   :  { %6246 = vrcp.f32 %v2827_v18  ;;  %v4119_v18 = vld [vmem:[%s8650_s5 + $0x318] sm:$0xff] }
 0x985   :  { %v6243_v41 = vpop.eup %6242  ;;  %6248 = vrcp.f32 %v2826_v25  ;;  %v8287_v25 = vld [vmem:[%s8645_s2 + $0x18] sm:$0xff] }
 0x986   :  { %v6245_v10 = vpop.eup %6244  ;;  %v2829_v3 = vadd.f32 1.0, %v6243_v41 }
 0x987   :  { %v2828_v21 = vadd.f32 1.0, %v6245_v10  ;;  %v8297_v10 = vld [vmem:[%s8645_s2 + $0x20] sm:$0xff] }
 0x988   :  { %6250 = vrcp.f32 %v2829_v3 }
 0x989   :  { %6252 = vrcp.f32 %v2828_v21  ;;  %v6097_v21 = vpack.c.bf16 %v4119_v18, %v4118_v30 }
 0x98e   :  { %v6247_v27 = vpop.eup %6246 }
 0x98f   :  { %v6249_v22 = vpop.eup %6248  ;;  %v3124_v28 = vmul.f32 %v8197_v14, %v6247_v27  ;;  %v4102_v27 = vld [vmem:[%s8650_s5 + $0x290] sm:$0xff] }
 0x990   :  { %v3123_v33 = vmul.f32 %v8203_v56, %v6249_v22  ;;  %v4120_v22 = vld [vmem:[%s8650_s5 + $0x320] sm:$0xff] }
 0x991   :  { %v3128_v53 = vsel %vm303_vm0, %v3124_v28, 0.0  ;;  %v4121_v28 = vld [vmem:[%s8650_s5 + $0x328] sm:$0xff] }
 0x992   :  { %v6251_v11 = vpop.eup %6250  ;;  %v4839_v24 = vpop.f32.mrb[68].mxu0  ;;  %v3127_v31 = vsel %vm303_vm0, %v3123_v33, 0.0  ;;  %v8212_v39 = vadd.f32 %v3128_v53, %v7524_v16  ;;  %v4104_v53 = vld [vmem:[%s8650_s5 + $0x2a0] sm:$0xff] }
 0x993   :  { %v6253_v42 = vpop.eup %6252  ;;  %v3126_v19 = vmul.f32 %v8217_v1, %v6251_v11  ;;  %v4840_v51 = vpop.f32.mrb[69].mxu0  ;;  %v8221_v63 = vadd.f32 %v3127_v31, %v7512_v58  ;;  %v4105_v11 = vld [vmem:[%s8650_s5 + $0x2a8] sm:$0xff] }
 0x994   :  { %v3125_v16 = vmul.f32 %v8226_v46, %v6253_v42  ;;  %v4841_v60 = vadd.f32 %v4840_v51, %v4839_v24  ;;  %v4122_v24 = vld [vmem:[%s8650_s5 + $0x330] sm:$0xff]  ;;  %v4124_v51 = vld [vmem:[%s8650_s5 + $0x340] sm:$0xff] }
 0x995   :  { %v6061_v32 = vpack.c.bf16 %v8212_v39, %v8221_v63  ;;  %v3130_v13 = vsel %vm303_vm0, %v3126_v19, 0.0  ;;  %v4106_v42 = vld [vmem:[%s8650_s5 + $0x2b0] sm:$0xff]  ;;  %v4107_v19 = vld [vmem:[%s8650_s5 + $0x2b8] sm:$0xff] }
 0x996   :  { %v2996_v17 = vadd.f32 %v4841_v60, %v2911_v48  ;;  %v4842_v35 = vpop.f32.mrb[70].mxu0  ;;  %v3129_v59 = vsel %vm303_vm0, %v3125_v16, 0.0  ;;  %v8234_v58 = vadd.f32 %v3130_v13, %v7541_v61  ;;  %v2921_v61 = vadd.f32 %v8184_v7, %v4204_v26  ;;  %v8257_v7 = vld [vmem:[%s8645_s2 + $0x8] sm:$0xff]  ;;  %v4108_v60 = vld [vmem:[%s8650_s5 + $0x2c0] sm:$0xff]  ;;  %v4126_v13 = vld [vmem:[%s8650_s5 + $0x350] sm:$0xff] }
 0x997   :  { %v4843_v62 = vpop.f32.mrb[71].mxu0  ;;  %6062 = vmatprep.subr.bf16.mxu1 %v6061_v32  ;;  %v8237_v29 = vadd.f32 %v3129_v59, %v7534_v20  ;;  %v6107_v48 = vpack.c.bf16 %v4107_v19, %v4106_v42  ;;  %v4132_v42 = vld [vmem:[%s8650_s5 + $0x380] sm:$0xff]  ;;  %v4150_v19 = vld [vmem:[%s8650_s5 + $0x410] sm:$0xff] }
 0x998   :  { %v8240_v37 = vadd.f32 %v3080_v49, %v2996_v17  ;;  %v4844_v43 = vadd.f32 %v4843_v62, %v4842_v35  ;;  %6064 = vmatpush3.bf16.msra.mxu1 %v6061_v32  ;;  %v4127_v17 = vld [vmem:[%s8650_s5 + $0x358] sm:$0xff]  ;;  %v4110_v62 = vld [vmem:[%s8650_s5 + $0x2d0] sm:$0xff] }
 0x999   :  { %v6065_v44 = vpack.c.bf16 %v8234_v58, %v8237_v29  ;;  %v6113_v59 = vpack.c.bf16 %v4127_v17, %v4126_v13 }
 0x99a   :  { %v3001_v8 = vadd.f32 %v4844_v43, %v2916_v47  ;;  %v4845_v40 = vpop.f32.mrb[72].mxu0  ;;  %v4111_v47 = vld [vmem:[%s8650_s5 + $0x2d8] sm:$0xff]  ;;  %v4128_v43 = vld [vmem:[%s8650_s5 + $0x360] sm:$0xff] }
 0x99b   :  { %v4846_v15 = vpop.f32.mrb[73].mxu0  ;;  %6066 = vmatprep.subr.bf16.mxu1 %v6065_v44 }
 0x99c   :  { %v8246_v36 = vadd.f32 %v8188_v50, %v3001_v8  ;;  %v4847_v20 = vadd.f32 %v4846_v15, %v4845_v40  ;;  %6068 = vmatpush3.bf16.msra.mxu1 %v6065_v44  ;;  %v2926_v50 = vadd.f32 %v8186_v34, %v4204_v26  ;;  %v4101_v34 = vld [vmem:[%s8650_s5 + $0x288] sm:$0xff]  ;;  %v6101_v26 = vpack.c.bf16 %v4121_v28, %v4120_v22  ;;  %v4112_v15 = vld [vmem:[%s8650_s5 + $0x2e0] sm:$0xff] }
 0x99d   :  { %6078 = vmatprep.subr.bf16.mxu1 %v6061_v32  ;;  %v6095_v3 = vpack.c.bf16 %v4101_v34, %v4100_v12  ;;  %v6115_v8 = vpack.c.bf16 %v4111_v47, %v4110_v62  ;;  %v4166_v34 = vld [vmem:[%s8650_s5 + $0x490] sm:$0xff]  ;;  %v4155_v47 = vld [vmem:[%s8650_s5 + $0x438] sm:$0xff] }
 0x99e   :  { %v3006_v52 = vadd.f32 %v4847_v20, %v2921_v61  ;;  %v4848_v49 = vpop.f32.mrb[74].mxu0  ;;  %v4113_v61 = vld [vmem:[%s8650_s5 + $0x2e8] sm:$0xff]  ;;  %v4130_v20 = vld [vmem:[%s8650_s5 + $0x370] sm:$0xff] }
 0x99f   :  { %v4849_v0 = vpop.f32.mrb[75].mxu0  ;;  %5386 = vmatmul.mubr.msk.f32.vlgmr.msra.gmra.mrb[72].mxu1 %vm303_vm0, %v8257_v7  ;;  %v4154_v62 = vld [vmem:[%s8650_s5 + $0x430] sm:$0xff] }
 0x9a0   :  { %v8263_v45 = vadd.f32 %v8192_v4, %v3006_v52  ;;  %v4850_v6 = vadd.f32 %v4849_v0, %v4848_v49  ;;  %6080 = vmatpush3.bf16.msra.mxu1 %v6061_v32  ;;  %5388 = vmatprep.mubr.msk.f32.mxu1 %vm303_vm0, %v8268_v5  ;;  %v4109_v32 = vld [vmem:[%s8650_s5 + $0x2c8] sm:$0xff]  ;;  %v4131_v52 = vld [vmem:[%s8650_s5 + $0x378] sm:$0xff]  ;;  %v6119_v49 = vpack.c.bf16 %v4113_v61, %v4112_v15  ;;  %v4156_v61 = vld [vmem:[%s8650_s5 + $0x440] sm:$0xff] }
 0x9a1   :  { %6082 = vmatprep.subr.bf16.mxu1 %v6065_v44  ;;  %v6111_v35 = vpack.c.bf16 %v4109_v32, %v4108_v60  ;;  %v6121_v54 = vpack.c.bf16 %v4131_v52, %v4130_v20  ;;  %v4115_v0 = vld [vmem:[%s8650_s5 + $0x2f8] sm:$0xff]  ;;  %v4153_v60 = vld [vmem:[%s8650_s5 + $0x428] sm:$0xff]  ;;  %v6307_v32 = vld [vmem:[%s8645_s2 + $0x30] sm:$0xff] }
 0x9a2   :  { %v3011_v4 = vadd.f32 %v4850_v6, %v2926_v50  ;;  %v6123_v50 = vpack.c.bf16 %v4115_v0, %v4114_v55  ;;  %v4164_v6 = vld [vmem:[%s8650_s5 + $0x480] sm:$0xff]  ;;  %v4139_v15 = vld [vmem:[%s8650_s5 + $0x3b8] sm:$0xff]  ;;  %v4157_v20 = vld [vmem:[%s8650_s5 + $0x448] sm:$0xff] }
 0x9a3   :  { %5389 = vmatmul.mubr.msk.f32.gmra.mrb[74].mxu1 %vm303_vm0, %v8287_v25  ;;  %v4141_v55 = vld [vmem:[%s8650_s5 + $0x3c8] sm:$0xff]  ;;  %v4168_v0 = vld [vmem:[%s8650_s5 + $0x4a0] sm:$0xff] }
 0x9a4   :  { %v8292_v41 = vadd.f32 %v8190_v57, %v3011_v4  ;;  %6084 = vmatpush3.bf16.msra.mxu1 %v6065_v44  ;;  %5413 = vmatprep.mubr.msk.f32.mxu1 %vm303_vm0, %v8297_v10  ;;  %v4103_v57 = vld [vmem:[%s8650_s5 + $0x298] sm:$0xff]  ;;  %v4129_v44 = vld [vmem:[%s8650_s5 + $0x368] sm:$0xff] }
 0x9a5   :  { %6094 = vmatprep.subr.bf16.mxu1 %v6093_v2  ;;  %v6099_v33 = vpack.c.bf16 %v4103_v57, %v4102_v27  ;;  %v6117_v40 = vpack.c.bf16 %v4129_v44, %v4128_v43  ;;  %v4165_v2 = vld [vmem:[%s8650_s5 + $0x488] sm:$0xff]  ;;  %v4167_v4 = vld [vmem:[%s8650_s5 + $0x498] sm:$0xff] }
 0x9a6   :  { %v6157_v12 = vpack.c.bf16 %v4165_v2, %v4164_v6  ;;  %v6308_v43 = vld [vmem:[%s8645_s2 + $0x38] sm:$0xff]  ;;  %v4169_v6 = vld [vmem:[%s8650_s5 + $0x4a8] sm:$0xff] }
 0x9a7   :  { %5414 = vmatmul.mubr.msk.f32.vlgmr.msra.gmra.mrb[76].mxu1 %vm303_vm0, %v7784_v23  ;;  %v4123_v23 = vld [vmem:[%s8650_s5 + $0x338] sm:$0xff]  ;;  %v6165_v2 = vpack.c.bf16 %v4169_v6, %v4168_v0 }
 0x9a8   :  { %5416 = vmatprep.mubr.msk.f32.mxu1 %vm303_vm0, %v7791_v9  ;;  %6096 = vmatpush3.bf16.msra.mxu1 %v6095_v3  ;;  %v6103_v9 = vpack.c.bf16 %v4105_v11, %v4104_v53  ;;  %v6105_v31 = vpack.c.bf16 %v4123_v23, %v4122_v24  ;;  %v4148_v53 = vld [vmem:[%s8650_s5 + $0x400] sm:$0xff]  ;;  %v4149_v11 = vld [vmem:[%s8650_s5 + $0x408] sm:$0xff] }
 0x9a9   :  { %6098 = vmatprep.subr.bf16.mxu1 %v6097_v21  ;;  %v6161_v21 = vpack.c.bf16 %v4167_v4, %v4166_v34  ;;  %v4159_v34 = vld [vmem:[%s8650_s5 + $0x458] sm:$0xff] }
 0x9ab   :  { %5417 = vmatmul.mubr.msk.f32.gmra.mrb[78].mxu1 %vm303_vm0, %v7810_v38  ;;  %v4125_v38 = vld [vmem:[%s8650_s5 + $0x348] sm:$0xff] }
 0x9ac   :  { %6100 = vmatpush3.bf16.msra.mxu1 %v6099_v33  ;;  %v6109_v16 = vpack.c.bf16 %v4125_v38, %v4124_v51  ;;  %v4151_v51 = vld [vmem:[%s8650_s5 + $0x418] sm:$0xff] }
 0x9ad   :  { %6102 = vmatprep.subr.bf16.mxu1 %v6101_v26  ;;  %v6129_v38 = vpack.c.bf16 %v4151_v51, %v4150_v19  ;;  %v4162_v19 = vld [vmem:[%s8650_s5 + $0x470] sm:$0xff]  ;;  %v4163_v51 = vld [vmem:[%s8650_s5 + $0x478] sm:$0xff] }
 0x9b0   :  { %6104 = vmatpush3.bf16.msra.mxu1 %v6103_v9 }
 0x9b1   :  { %6106 = vmatprep.subr.bf16.mxu1 %v6105_v31  ;;  %v6125_v31 = vpack.c.bf16 %v4149_v11, %v4148_v53  ;;  %v4144_v53 = vld [vmem:[%s8650_s5 + $0x3e0] sm:$0xff]  ;;  %v4145_v11 = vld [vmem:[%s8650_s5 + $0x3e8] sm:$0xff] }
 0x9b4   :  { %6108 = vmatpush3.bf16.msra.mxu1 %v6107_v48  ;;  %v4134_v48 = vld [vmem:[%s8650_s5 + $0x390] sm:$0xff] }
 0x9b5   :  { %6110 = vmatprep.subr.bf16.mxu1 %v6109_v16  ;;  %v4135_v16 = vld [vmem:[%s8650_s5 + $0x398] sm:$0xff] }
 0x9b6   :  { %v6131_v13 = vpack.c.bf16 %v4135_v16, %v4134_v48  ;;  %v4147_v48 = vld [vmem:[%s8650_s5 + $0x3f8] sm:$0xff]  ;;  %v4174_v16 = vld [vmem:[%s8650_s5 + $0x4d0] sm:$0xff] }
 0x9b8   :  { %6112 = vmatpush3.bf16.msra.mxu1 %v6111_v35  ;;  %v4136_v35 = vld [vmem:[%s8650_s5 + $0x3a0] sm:$0xff] }
 0x9b9   :  { %6114 = vmatprep.subr.bf16.mxu1 %v6113_v59  ;;  %v4137_v59 = vld [vmem:[%s8650_s5 + $0x3a8] sm:$0xff] }
 0x9ba   :  { %v6135_v44 = vpack.c.bf16 %v4137_v59, %v4136_v35  ;;  %v4178_v35 = vld [vmem:[%s8650_s5 + $0x4f0] sm:$0xff]  ;;  %v4179_v59 = vld [vmem:[%s8650_s5 + $0x4f8] sm:$0xff] }
 0x9bc   :  { %6116 = vmatpush3.bf16.msra.mxu1 %v6115_v8  ;;  %v6137_v8 = vpack.c.bf16 %v4155_v47, %v4154_v62  ;;  %v6185_v62 = vpack.c.bf16 %v4179_v59, %v4178_v35 }
 0x9bd   :  { %6118 = vmatprep.subr.bf16.mxu1 %v6117_v40  ;;  %v4138_v40 = vld [vmem:[%s8650_s5 + $0x3b0] sm:$0xff] }
 0x9be   :  { %v6139_v52 = vpack.c.bf16 %v4139_v15, %v4138_v40 }
 0x9c0   :  { %6120 = vmatpush3.bf16.msra.mxu1 %v6119_v49  ;;  %v6141_v49 = vpack.c.bf16 %v4157_v20, %v4156_v61 }
 0x9c1   :  { %6122 = vmatprep.subr.bf16.mxu1 %v6121_v54  ;;  %v4140_v54 = vld [vmem:[%s8650_s5 + $0x3c0] sm:$0xff] }
 0x9c4   :  { %6124 = vmatpush3.bf16.msra.mxu1 %v6123_v50  ;;  %v6143_v50 = vpack.c.bf16 %v4141_v55, %v4140_v54 }
 0x9c5   :  { %6158 = vmatprep.subr.bf16.mxu1 %v6157_v12 }
 0xa72   :  { %v5387_v30 = vpop.f32.mrb[72].mxu1 }
 0xa73   :  { %v3201_v18 = vpop.f32.mrb[73].mxu1 }
 0xa74   :  { %v6069_v3 = vpack.c.bf16 %v5387_v30, %v3201_v18  ;;  %3561 = vmatprep.mubr.f32.mxu1 %v3201_v18  ;;  %v4143_v18 = vld [vmem:[%s8650_s5 + $0x3d8] sm:$0xff] }
 0xa75   :  { %3562 = vmatmul.mubr.f32.vlgmr.msra.gmra.mrb[80].mxu1 %v8221_v63 }
 0xa76   :  { %v5390_v27 = vpop.f32.mrb[74].mxu1  ;;  %6070 = vmatprep.subr.bf16.mxu0 %v6069_v3  ;;  %3566 = vmatprep.mubr.f32.mxu1 %v5387_v30  ;;  %v4142_v30 = vld [vmem:[%s8650_s5 + $0x3d0] sm:$0xff] }
 0xa77   :  { %v3211_v57 = vpop.f32.mrb[75].mxu1  ;;  %6072 = vmatpush3.bf16.msra.mxu0 %v6069_v3  ;;  %6160 = vmatpush3.bf16.msra.mxu1 %v6157_v12  ;;  %v4158_v12 = vld [vmem:[%s8650_s5 + $0x450] sm:$0xff] }
 0xa78   :  { %v6073_v22 = vpack.c.bf16 %v5390_v27, %v3211_v57  ;;  %6162 = vmatprep.subr.bf16.mxu1 %v6161_v21  ;;  %v6145_v4 = vpack.c.bf16 %v4159_v34, %v4158_v12  ;;  %v4170_v3 = vld [vmem:[%s8650_s5 + $0x4b0] sm:$0xff] }
 0xa79   :  { %3567 = vmatmul.mubr.f32.gmra.mrb[82].mxu1 %v8212_v39 }
 0xa7a   :  { %6074 = vmatprep.subr.bf16.mxu0 %v6073_v22  ;;  %v8399_v28 = vpop.f32.mrb[76].mxu1  ;;  %3571 = vmatprep.mubr.f32.mxu1 %v3211_v57 }
 0xa7b   :  { %6076 = vmatpush3.bf16.msra.mxu0 %v6073_v22  ;;  %v3379_v33 = vpop.f32.mrb[77].mxu1  ;;  %6164 = vmatpush3.bf16.msra.mxu1 %v6161_v21  ;;  %v6147_v21 = vpack.c.bf16 %v4143_v18, %v4142_v30  ;;  %v4160_v22 = vld [vmem:[%s8650_s5 + $0x460] sm:$0xff] }
 0xa7c   :  { %v6085_v26 = vpack.c.bf16 %v8399_v28, %v3379_v33  ;;  %6166 = vmatprep.subr.bf16.mxu1 %v6165_v2 }
 0xa7d   :  { %3572 = vmatmul.mubr.f32.gmra.mrb[84].mxu1 %v8237_v29 }
 0xa7e   :  { %5400 = vmatmul.mubr.msk.f32.vlgmr.msra.gmra.mrb[76].mxu0 %vm303_vm0, %v8257_v7  ;;  %v8411_v24 = vpop.f32.mrb[78].mxu1  ;;  %6086 = vmatprep.subr.bf16.mxu0 %v6085_v26  ;;  %v4133_v7 = vld [vmem:[%s8650_s5 + $0x388] sm:$0xff] }
 0xa7f   :  { %3576 = vmatprep.mubr.f32.mxu1 %v5390_v27  ;;  %v8413_v23 = vpop.f32.mrb[79].mxu1  ;;  %6088 = vmatpush3.bf16.msra.mxu0 %v6085_v26  ;;  %v4171_v27 = vld [vmem:[%s8650_s5 + $0x4b8] sm:$0xff] }
 0xa80   :  { %v6089_v9 = vpack.c.bf16 %v8411_v24, %v8413_v23  ;;  %5402 = vmatprep.mubr.msk.f32.mxu0 %vm303_vm0, %v8268_v5  ;;  %v6127_v5 = vpack.c.bf16 %v4133_v7, %v4132_v42  ;;  %6168 = vmatpush3.bf16.msra.mxu1 %v6165_v2  ;;  %v6169_v57 = vpack.c.bf16 %v4171_v27, %v4170_v3  ;;  %v4173_v42 = vld [vmem:[%s8650_s5 + $0x4c8] sm:$0xff] }
 0xa81   :  { %3577 = vmatmul.mubr.f32.gmra.mrb[86].mxu1 %v8234_v58 }
 0xa82   :  { %5403 = vmatmul.mubr.msk.f32.gmra.mrb[78].mxu0 %vm303_vm0, %v8287_v25  ;;  %6090 = vmatprep.subr.bf16.mxu0 %v6089_v9  ;;  %v4152_v25 = vld [vmem:[%s8650_s5 + $0x420] sm:$0xff] }
 0xa83   :  { %6092 = vmatpush3.bf16.msra.mxu0 %v6089_v9  ;;  %5427 = vmatprep.mubr.msk.f32.mxu0 %vm303_vm0, %v8297_v10  ;;  %v6306_v10 = vld [vmem:[%s8645_s2 + $0x28] sm:$0xff]  ;;  %v6133_v17 = vpack.c.bf16 %v4153_v60, %v4152_v25  ;;  %v4172_v9 = vld [vmem:[%s8650_s5 + $0x4c0] sm:$0xff]  ;;  %v4175_v60 = vld [vmem:[%s8650_s5 + $0x4d8] sm:$0xff] }
 0xa84   :  { %6126 = vmatprep.subr.bf16.mxu0 %v6125_v31  ;;  %6170 = vmatprep.subr.bf16.mxu1 %v6169_v57  ;;  %v6151_v31 = vpack.c.bf16 %v4145_v11, %v4144_v53  ;;  %v6173_v7 = vpack.c.bf16 %v4173_v42, %v4172_v9 }
 0xa85   :  { %6172 = vmatpush3.bf16.msra.mxu1 %v6169_v57 }
 0xa86   :  { %5428 = vmatmul.mubr.msk.f32.vlgmr.msra.gmra.mrb[80].mxu0 %vm303_vm0, %v6306_v10  ;;  %6174 = vmatprep.subr.bf16.mxu1 %v6173_v7  ;;  %v6177_v10 = vpack.c.bf16 %v4175_v60, %v4174_v16  ;;  %v4225_v16 = vld [vmem:[%s8651_s8 + $0x1] ss:$0 sm:$0xff] }
 0xa87   :  { %5430 = vmatprep.mubr.msk.f32.mxu0 %vm303_vm0, %v6307_v32  ;;  %6128 = vmatpush3.bf16.msra.mxu0 %v6127_v5  ;;  %v6153_v5 = vpack.c.bf16 %v4163_v51, %v4162_v19  ;;  %v4176_v32 = vld [vmem:[%s8650_s5 + $0x4e0] sm:$0xff]  ;;  %v4206_v51 = vmul.f32 -1.442695, %v8246_v36 }
 0xa88   :  { %6130 = vmatprep.subr.bf16.mxu0 %v6129_v38  ;;  %v4146_v38 = vld [vmem:[%s8650_s5 + $0x3f0] sm:$0xff] }
 0xa89   :  { %6176 = vmatpush3.bf16.msra.mxu1 %v6173_v7  ;;  %v6155_v25 = vpack.c.bf16 %v4147_v48, %v4146_v38  ;;  %v4207_v38 = vmul.f32 -1.442695, %v8263_v45  ;;  %6254 = vpow2.f32 %v4206_v51  ;;  %v4208_v48 = vmul.f32 -1.442695, %v8292_v41 }
 0xa8a   :  { %5431 = vmatmul.mubr.msk.f32.gmra.mrb[82].mxu0 %vm303_vm0, %v6308_v43  ;;  %6178 = vmatprep.subr.bf16.mxu1 %v6177_v10 }
 0xa8b   :  { %3646 = vmatprep.mubr.f32.mxu0 %v3379_v33  ;;  %6132 = vmatpush3.bf16.msra.mxu0 %v6131_v13  ;;  %v4161_v33 = vld [vmem:[%s8650_s5 + $0x468] sm:$0xff] }
 0xa8c   :  { %6134 = vmatprep.subr.bf16.mxu0 %v6133_v17  ;;  %v6149_v26 = vpack.c.bf16 %v4161_v33, %v4160_v22  ;;  %v4177_v13 = vld [vmem:[%s8650_s5 + $0x4e8] sm:$0xff] }
 0xa8d   :  { %6180 = vmatpush3.bf16.msra.mxu1 %v6177_v10  ;;  %v6181_v17 = vpack.c.bf16 %v4177_v13, %v4176_v32 }
 0xa8f   :  { %6136 = vmatpush3.bf16.msra.mxu0 %v6135_v44  ;;  %6182 = vmatprep.subr.bf16.mxu1 %v6181_v17 }
 0xa90   :  { %6138 = vmatprep.subr.bf16.mxu0 %v6137_v8 }
 0xa91   :  { %6184 = vmatpush3.bf16.msra.mxu1 %v6181_v17 }
 0xa92   :  { %6186 = vmatprep.subr.bf16.mxu1 %v6185_v62 }
 0xa93   :  { %6140 = vmatpush3.bf16.msra.mxu0 %v6139_v52  ;;  %v6255_v60 = vpop.eup %6254 }
 0xa94   :  { %6142 = vmatprep.subr.bf16.mxu0 %v6141_v49  ;;  %v3112_v17 = vadd.f32 1.0, %v6255_v60 }
 0xa95   :  { %6188 = vmatpush3.bf16.msra.mxu1 %v6185_v62 }
 0xa97   :  { %6144 = vmatpush3.bf16.msra.mxu0 %v6143_v50 }
 0xa98   :  { %6146 = vmatprep.subr.bf16.mxu0 %v6145_v4 }
 0xa9b   :  { %6148 = vmatpush3.bf16.msra.mxu0 %v6147_v21 }
 0xa9c   :  { %6150 = vmatprep.subr.bf16.mxu0 %v6149_v26 }
 0xa9f   :  { %6152 = vmatpush3.bf16.msra.mxu0 %v6151_v31 }
 0xaa0   :  { %6154 = vmatprep.subr.bf16.mxu0 %v6153_v5  ;;  %v4205_v5 = vmul.f32 -1.442695, %v8240_v37 }
 0xaa2   :  { %6256 = vpow2.f32 %v4205_v5 }
 0xaa3   :  { %6156 = vmatpush3.bf16.msra.mxu0 %v6155_v25  ;;  %6258 = vpow2.f32 %v4207_v38 }
 0xaa4   :  { %6260 = vpow2.f32 %v4208_v48 }
 0xaa5   :  { %6262 = vrcp.f32 %v3112_v17 }
 0xaac   :  { %v6257_v32 = vpop.eup %6256 }
 0xaad   :  { %v6259_v37 = vpop.eup %6258  ;;  %v3111_v59 = vadd.f32 1.0, %v6257_v32 }
 0xaaf   :  { %6264 = vrcp.f32 %v3111_v59 }
 0xb48   :  { %v4935_v47 = vpop.f32.mrb[80].mxu1 }
 0xb49   :  { %v4936_v43 = vpop.f32.mrb[81].mxu1 }
 0xb4a   :  { %v8562_v44 = vadd.f32 %v4936_v43, %v4935_v47  ;;  %v3113_v43 = vadd.f32 1.0, %v6259_v37 }
 0xb4c   :  { %v4938_v8 = vpop.f32.mrb[82].mxu1  ;;  %v3564_v36 = vadd.f32 %v8562_v44, %v4225_v16  ;;  %6266 = vrcp.f32 %v3113_v43 }
 0xb4d   :  { %v4939_v40 = vpop.f32.mrb[83].mxu1 }
 0xb4e   :  { %v8564_v15 = vadd.f32 %v4939_v40, %v4938_v8 }
 0xb50   :  { %v4941_v61 = vpop.f32.mrb[84].mxu1  ;;  %v3569_v41 = vadd.f32 %v8564_v15, %v4225_v16 }
 0xb51   :  { %v5401_v20 = vpop.f32.mrb[76].mxu0  ;;  %v4942_v52 = vpop.f32.mrb[85].mxu1 }
 0xb52   :  { %v8566_v49 = vadd.f32 %v4942_v52, %v4941_v61  ;;  %v3286_v54 = vpop.f32.mrb[77].mxu0  ;;  %v3306_v50 = vmul.f32 2.0, %v5401_v20  ;;  %v6261_v61 = vpop.eup %6260 }
 0xb53   :  { %v3305_v55 = vmul.f32 2.0, %v3286_v54 }
 0xb54   :  { %v4944_v0 = vpop.f32.mrb[86].mxu1  ;;  %v3310_v30 = vsub.f32 %v3306_v50, %v8212_v39  ;;  %v3574_v44 = vadd.f32 %v8566_v49, %v4225_v16  ;;  %v6263_v49 = vpop.eup %6262 }
 0xb55   :  { %v3309_v6 = vsub.f32 %v3305_v55, %v8221_v63  ;;  %v5404_v2 = vpop.f32.mrb[78].mxu0  ;;  %v4945_v12 = vpop.f32.mrb[87].mxu1 }
 0xb56   :  { %v8569_v34 = vadd.f32 %v4945_v12, %v4944_v0  ;;  %v3296_v4 = vpop.f32.mrb[79].mxu0  ;;  %v3308_v22 = vmul.f32 2.0, %v5404_v2 }
 0xb57   :  { %3647 = vmatmul.mubr.f32.vlgmr.msra.gmra.mrb[84].mxu0 %v3309_v6  ;;  %v3307_v18 = vmul.f32 2.0, %v3296_v4  ;;  %v3114_v6 = vadd.f32 1.0, %v6261_v61 }
 0xb58   :  { %3651 = vmatprep.mubr.f32.mxu0 %v8399_v28  ;;  %v3312_v42 = vsub.f32 %v3308_v22, %v8234_v58  ;;  %v6265_v22 = vpop.eup %6264 }
 0xb59   :  { %v5429_v3 = vpop.f32.mrb[80].mxu0  ;;  %v3311_v33 = vsub.f32 %v3307_v18, %v8237_v29 }
 0xb5a   :  { %v3484_v21 = vmul.f32 2.0, %v5429_v3  ;;  %v3464_v27 = vpop.f32.mrb[81].mxu0 }
 0xb5b   :  { %v3483_v57 = vmul.f32 2.0, %v3464_v27  ;;  %3652 = vmatmul.mubr.f32.gmra.mrb[86].mxu0 %v3310_v30  ;;  %v3579_v30 = vadd.f32 %v8569_v34, %v4225_v16  ;;  %v3756_v34 = vmul.f32 %v8203_v56, %v6265_v22 }
 0xb5c   :  { %3656 = vmatprep.mubr.f32.mxu0 %v8413_v23  ;;  %v3488_v11 = vsub.f32 %v3484_v21, %v8212_v39  ;;  %v3777_v39 = vld [vmem:[%s8653_s9] sm:$0xff] }
 0xb5d   :  { %v3487_v26 = vsub.f32 %v3483_v57, %v8221_v63  ;;  %v5432_v53 = vpop.f32.mrb[82].mxu0  ;;  %v3778_v63 = vld [vmem:[%s8653_s9 + $0x8] sm:$0xff] }
 0xb5e   :  { %v3486_v9 = vmul.f32 2.0, %v5432_v53  ;;  %v3474_v28 = vpop.f32.mrb[83].mxu0  ;;  %v6189_v19 = vpack.c.bf16 %v3778_v63, %v3777_v39 }
 0xb5f   :  { %v3485_v31 = vmul.f32 2.0, %v3474_v28  ;;  %3657 = vmatmul.mubr.f32.gmra.mrb[88].mxu0 %v3311_v33  ;;  %5465 = vmatprep.mubr.f32.mxu1 %v3487_v26  ;;  %v6267_v33 = vpop.eup %6266  ;;  %v3761_v26 = vsub.f32 1.0, %v6263_v49  ;;  %v3757_v28 = vmul.f32 %v8197_v14, %v6263_v49 }
 0xb60   :  { %3661 = vmatprep.mubr.f32.mxu0 %v8411_v24  ;;  %5466 = vmatmul.mubr.f32.vlgmr.msra.gmra.mrb[88].mxu1 %v3488_v11  ;;  %v3490_v7 = vsub.f32 %v3486_v9, %v8234_v58  ;;  %v3780_v58 = vld [vmem:[%s8653_s9 + $0x18] sm:$0xff]  ;;  %v3760_v11 = vsub.f32 1.0, %v6265_v22  ;;  %v3762_v63 = vsub.f32 1.0, %v6267_v33  ;;  %v3758_v14 = vmul.f32 %v8226_v46, %v6267_v33 }
 0xb61   :  { %v3489_v23 = vsub.f32 %v3485_v31, %v8237_v29  ;;  %6190 = vmatprep.subr.bf16.mxu0 %v6189_v19  ;;  %v3779_v29 = vld [vmem:[%s8653_s9 + $0x10] sm:$0xff] }
 0xb62   :  { %6192 = vmatpush3.bf16.msra.mxu0 %v6189_v19  ;;  %v6193_v24 = vpack.c.bf16 %v3780_v58, %v3779_v29 }
 0xb63   :  { %3662 = vmatmul.mubr.f32.gmra.mrb[90].mxu0 %v3312_v42  ;;  %5468 = vmatprep.mubr.f32.mxu1 %v3489_v23 }
 0xb64   :  { %5469 = vmatmul.mubr.f32.gmra.mrb[90].mxu1 %v3490_v7  ;;  %6194 = vmatprep.subr.bf16.mxu0 %v6193_v24 }
 0xb66   :  { %6196 = vmatpush3.bf16.msra.mxu0 %v6193_v24 }
 0xc2a   :  { %v4979_v25 = vpop.f32.mrb[84].mxu0 }
 0xc2b   :  { %v4980_v10 = vpop.f32.mrb[85].mxu0 }
 0xc2c   :  { %v4981_v13 = vadd.f32 %v4980_v10, %v4979_v25 }
 0xc2e   :  { %v4982_v45 = vpop.f32.mrb[86].mxu0  ;;  %v3649_v35 = vadd.f32 %v4981_v13, %v3564_v36 }
 0xc2f   :  { %v4983_v62 = vpop.f32.mrb[87].mxu0 }
 0xc30   :  { %v4984_v47 = vadd.f32 %v4983_v62, %v4982_v45 }
 0xc32   :  { %v4985_v8 = vpop.f32.mrb[88].mxu0  ;;  %v3654_v40 = vadd.f32 %v4984_v47, %v3569_v41 }
 0xc33   :  { %v4986_v20 = vpop.f32.mrb[89].mxu0  ;;  %v5467_v52 = vpop.f32.mrb[88].mxu1 }
 0xc34   :  { %v4987_v54 = vadd.f32 %v4986_v20, %v4985_v8  ;;  %v3739_v55 = vadd.f32 %v5467_v52, %v3654_v40  ;;  %v3733_v0 = vpop.f32.mrb[89].mxu1 }
 0xc35   :  { %v3734_v50 = vadd.f32 %v3733_v0, %v3649_v35 }
 0xc36   :  { %6268 = vtanh.f32 %v3739_v55  ;;  %v4988_v2 = vpop.f32.mrb[90].mxu0  ;;  %v3659_v15 = vadd.f32 %v4987_v54, %v3574_v44 }
 0xc37   :  { %6270 = vtanh.f32 %v3734_v50  ;;  %v4989_v12 = vpop.f32.mrb[91].mxu0  ;;  %v5470_v4 = vpop.f32.mrb[90].mxu1 }
 0xc38   :  { %v4990_v18 = vadd.f32 %v4989_v12, %v4988_v2  ;;  %v3743_v3 = vpop.f32.mrb[91].mxu1  ;;  %6272 = vrcp.f32 %v3114_v6 }
 0xc39   :  { %v3744_v21 = vadd.f32 %v3743_v3, %v3659_v15 }
 0xc3a   :  { %v3664_v27 = vadd.f32 %v4990_v18, %v3579_v30 }
 0xc3b   :  { %6274 = vtanh.f32 %v3744_v21 }
 0xc3c   :  { %v3749_v57 = vadd.f32 %v5470_v4, %v3664_v27 }
 0xc3e   :  { %6276 = vtanh.f32 %v3749_v57 }
 0xc40   :  { %v6269_v53 = vpop.eup %6268 }
 0xc41   :  { %v6271_v9 = vpop.eup %6270  ;;  %v3765_v31 = vmul.f32 %v6269_v53, %v3761_v26 }
 0xc42   :  { %v3764_v42 = vmul.f32 %v6271_v9, %v3760_v11  ;;  %v6273_v7 = vpop.eup %6272 }
 0xc43   :  { %v3769_v23 = vadd.f32 %v3765_v31, %v3757_v28  ;;  %v3763_v29 = vsub.f32 1.0, %v6273_v7  ;;  %v3759_v51 = vmul.f32 %v8217_v1, %v6273_v7  ;;  %v4230_v1 = vld [vmem:[%s8654_s10] ss:$0 sm:$0xff] }
 0xc44   :  { %v3768_v39 = vadd.f32 %v3764_v42, %v3756_v34 }
 0xc45   :  { %v6275_v19 = vpop.eup %6274  ;;  %4227 = vst.msk [vmem:[%s8652_s12 + $0x28] sm:$0xff] %vm303_vm0, %v3769_v23 }
 0xc46   :  { %4226 = vst.msk [vmem:[%s8652_s12 + $0x20] sm:$0xff] %vm303_vm0, %v3768_v39  ;;  %5479 = vmatprep.mubr.msk.f32.mxu0 %vm303_vm0, %v3768_v39  ;;  %v3766_v56 = vmul.f32 %v6275_v19, %v3762_v63 }
 0xc47   :  { %5480 = vmatmul.mubr.msk.f32.vlgmr.msra.gmra.mrb[92].mxu0 %vm303_vm0, %v3769_v23 }
 0xc48   :  { %v6277_v58 = vpop.eup %6276  ;;  %v3770_v24 = vadd.f32 %v3766_v56, %v3758_v14 }
 0xc49   :  { %v3767_v5 = vmul.f32 %v6277_v58, %v3763_v29 }
 0xc4a   :  { %4228 = vst.msk [vmem:[%s8652_s12 + $0x30] sm:$0xff] %vm303_vm0, %v3770_v24  ;;  %5482 = vmatprep.mubr.msk.f32.mxu0 %vm303_vm0, %v3770_v24 }
 0xc4b   :  { %v3771_v38 = vadd.f32 %v3767_v5, %v3759_v51 }
 0xc4d   :  { %4229 = vst.msk [vmem:[%s8652_s12 + $0x38] sm:$0xff] %vm303_vm0, %v3771_v38  ;;  %5483 = vmatmul.mubr.msk.f32.gmra.mrb[94].mxu0 %vm303_vm0, %v3771_v38 }
 0xd1a   :  { %v5481_v46 = vpop.f32.mrb[92].mxu0 }
 0xd1b   :  { %v3872_v48 = vadd.f32 %v5481_v46, %v4230_v1  ;;  %v3866_v16 = vpop.f32.mrb[93].mxu0 }
 0xd1c   :  { %v3867_v25 = vadd.f32 %v4230_v1, %v3866_v16 }
 0xd1d   :  { %3886 = vst [vmem:[%s8655_s11 + $0x8] sm:$0xff] %v3872_v48 }
 0xd1e   :  { %3885 = vst [vmem:[%s8655_s11] sm:$0xff] %v3867_v25 }
 0xd20   :  { %v5484_v60 = vpop.f32.mrb[94].mxu0 }
 0xd21   :  { %v3882_v10 = vadd.f32 %v5484_v60, %v4230_v1  ;;  %v3876_v32 = vpop.f32.mrb[95].mxu0 }
 0xd22   :  { %v3877_v36 = vadd.f32 %v4230_v1, %v3876_v32 }
 0xd23   :  { %3888 = vst [vmem:[%s8655_s11 + $0x18] sm:$0xff] %v3882_v10 }
 0xd24   :  { %3887 = vst [vmem:[%s8655_s11 + $0x10] sm:$0xff] %v3877_v36 }

</bundles_post_ra>
